<compile_context>
chip_gen: v5e
topology: v5e:2x2
jax: 0.10.0
libtpu: 0.0.40
codegen_flags: <defaults>
</compile_context>

<pallas_src>
import numpy as np
import jax
import jax.numpy as jnp
from jax.experimental import pallas as pl
from jax.experimental.pallas import tpu as pltpu

# ---------------- model dimensions (match the PyTorch defaults) ----------------
INPUT_DIM = 3
AUX_DIM = 4
HIDDEN = 20
FEATURES = 12

HP = 32            # HIDDEN padded to a 32-lane block
FP = 32            # FEATURES padded to a 32-lane block
BP = 8             # batch padded to 8 sublanes
XC = 16            # packed per-step input width: [x_fwd(3) | x_bwd(3) | aux(4) | 1 | pad]
LEAKY_SLOPE = 0.01  # nn.LeakyReLU() default

# ---------------- packed parameter buffer layout (bf16, lane width 256) --------
# Every row-block start is 16-aligned (bf16 sublane tile).
_R_WCOMB = 0     # (16, 256)  [Wx_fw | Wx_bw | W_aux | bias] -> fused Bi-LSTM gates
_R_WHH_BI = 16   # (64, 256)  block-diagonal Bi-LSTM recurrent weights [fw | bw rows]
_R_WIH2F = 80    # (64, 256)  bi output -> LSTM2 gate sub-columns of the fused 2/3 block
_R_B2ROW = 144   # (1, 256)   LSTM2 bias (b_ih+b_hh) in LSTM2 sub-columns
_R_B3ROW = 160   # (1, 256)   CollectLSTM bias in LSTM3 sub-columns
_R_W23 = 176     # (64, 256)  fused stage-2/3 recurrent block [h2 rows | h3 rows]
_R_WFC = 240     # (32, 256)  FC weights at [0:12, 0:20]
_R_BFC = 272     # (1, 256)   FC bias at lanes 0:20
_R_WFC2 = 288    # (1, 256)   FC2 weight row at lanes 0:20 (VPU reduction path)
_R_BFC2 = 304    # (1, 256)   FC2 bias at lane 0
_P_ROWS = 320

# torch gate order (i, f, g, o) -> packed gate order (i, f, o, g)
_TORCH2TGT = (0, 1, 3, 2)


# ---------------- kernel helpers ----------------
def _gate_update(gates, c, hp):
    """gates: (BP, 4*hp) laid out as [i | f | o | g]; c: (BP, hp).
    One sigmoid region + one tanh region (plus tanh(c))."""
    sg = jax.nn.sigmoid(gates[:, 0:3 * hp])
    g = jnp.tanh(gates[:, 3 * hp:4 * hp])
    i = sg[:, 0:hp]
    f = sg[:, hp:2 * hp]
    o = sg[:, 2 * hp:3 * hp]
    c_new = f * c + i * g
    h_new = o * jnp.tanh(c_new)
    return h_new, c_new


# ---------------- the Pallas kernel ----------------
def _model4_kernel(x_ref, p_ref, y_ref, gsum_s, hseq_s, bi_s, gadd_s):
    f32 = jnp.float32
    bf16 = jnp.bfloat16
    T = x_ref.shape[0] // BP

    def mm(a, b):
        return jnp.dot(a, b, preferred_element_type=f32)

    # ---- prologue: ONE matmul builds every per-step additive gate term of the
    #      fused Bi-LSTM (fw x-proj + time-reversed bw x-proj + aux + bias) ----
    gsum_s[...] = mm(x_ref[...], p_ref[_R_WCOMB:_R_WCOMB + XC, :])     # (T*BP, 256)

    whh_bi = p_ref[_R_WHH_BI:_R_WHH_BI + 2 * HP, :]                    # (64, 256) bf16

    # ---- stage 1: fused forward+backward Bi-LSTM, one matmul per serial step ----
    # state layout: [h_fw 0:32 | h_bw 32:64]; gate blocks of 64 = [fw | bw].
    h = jnp.zeros((BP, 2 * HP), f32)
    c = jnp.zeros((BP, 2 * HP), f32)
    for t in range(T):
        gates = mm(h.astype(bf16), whh_bi) + gsum_s[t * BP:(t + 1) * BP, :]
        h, c = _gate_update(gates, c, 2 * HP)
        hseq_s[t * BP:(t + 1) * BP, :] = h            # single full-row store per step

    # ---- post-loop: assemble Bi-LSTM output bi[t] = [h_fw(t) | h_bw(t)] ----
    bi_s[:, 0:HP] = hseq_s[:, 0:HP]
    for t in range(T):
        r = T - 1 - t
        bi_s[t * BP:(t + 1) * BP, HP:2 * HP] = hseq_s[r * BP:(r + 1) * BP, HP:2 * HP]

    # ---- prologue for fused LSTM2 + CollectLSTM (one-step skew) ----
    # gate blocks of 64 = [LSTM2 sub 0:32 | LSTM3 sub 32:64]
    proj2 = mm(bi_s[...].astype(bf16), p_ref[_R_WIH2F:_R_WIH2F + 2 * HP, :])
    b2row = p_ref[_R_B2ROW:_R_B2ROW + 1, :].astype(f32)
    b3row = p_ref[_R_B3ROW:_R_B3ROW + 1, :].astype(f32)
    gadd_s[0:BP, :] = proj2[0:BP, :] + b2row                       # tau = 0 (no b3)
    gadd_s[BP:T * BP, :] = proj2[BP:T * BP, :] + (b2row + b3row)   # tau = 1..T-1
    gadd_s[T * BP:(T + 1) * BP, :] = jnp.zeros((BP, 8 * HP), f32) + b3row   # tau = T

    # ---- stage 2+3: fused LSTM2 / CollectLSTM recurrence, one matmul per step ----
    # state [h2 | h3]; at step tau LSTM2 produces h2(tau), LSTM3 produces h3(tau-1).
    w23 = p_ref[_R_W23:_R_W23 + 2 * HP, :]                             # (64, 256) bf16
    h23 = jnp.zeros((BP, 2 * HP), f32)
    c23 = jnp.zeros((BP, 2 * HP), f32)
    for tau in range(T + 1):
        gates = mm(h23.astype(bf16), w23) + gadd_s[tau * BP:(tau + 1) * BP, :]
        h23, c23 = _gate_update(gates, c23, 2 * HP)
    h3 = h23[:, HP:2 * HP]            # CollectLSTM final hidden (features, padded)

    # ---- stage 4: FC -> LeakyReLU -> FC2 (VPU multiply + lane reduce) -> Sigmoid ----
    wfc = p_ref[_R_WFC:_R_WFC + FP, 0:HP]
    bfc = p_ref[_R_BFC:_R_BFC + 1, 0:HP].astype(f32)
    fc = mm(h3.astype(bf16), wfc) + bfc
    fc = jnp.where(fc > 0, fc, LEAKY_SLOPE * fc)
    wfc2_row = p_ref[_R_WFC2:_R_WFC2 + 1, 0:HP].astype(f32)
    bfc2 = p_ref[_R_BFC2:_R_BFC2 + 1, 0:1].astype(f32)
    s = jnp.sum(fc * wfc2_row, axis=-1, keepdims=True) + bfc2          # (BP, 1)
    out0 = jax.nn.sigmoid(s)

    # ---- single full-tile (8, 128) output store; wrapper slices [:B] ----
    out_blk = out0 + jnp.zeros((BP, HP), f32)       # scalar broadcast across lanes 0:32
    y_ref[...] = jnp.concatenate(
        [out_blk, h3, jnp.zeros((BP, 128 - 2 * HP), f32)], axis=1)


# ---------------- wrapper ----------------
def model4_forward(trace, aux, packed_params):
    """trace: (B, T, 3), aux: (B, 4, 1), packed_params: (320, 256) bf16."""
    B, T, _ = trace.shape
    assert B <= BP
    trace_f = trace.astype(jnp.float32)
    aux_f = aux.astype(jnp.float32).reshape(B, AUX_DIM)

    # packed per-step input rows: [x(t) | x(T-1-t) | aux | 1 | pad]; batch padded to 8
    x_fwd = jnp.transpose(trace_f, (1, 0, 2))                 # (T, B, 3)
    x_bwd = x_fwd[::-1]                                       # time-reversed
    xc = jnp.zeros((T, BP, XC), jnp.float32)
    xc = xc.at[:, :B, 0:INPUT_DIM].set(x_fwd)
    xc = xc.at[:, :B, INPUT_DIM:2 * INPUT_DIM].set(x_bwd)
    xc = xc.at[:, :B, 2 * INPUT_DIM:2 * INPUT_DIM + AUX_DIM].set(
        jnp.broadcast_to(aux_f[None], (T, B, AUX_DIM)))
    xc = xc.at[:, :B, 2 * INPUT_DIM + AUX_DIM].set(1.0)
    xc = xc.reshape(T * BP, XC).astype(jnp.bfloat16)

    vmem = pl.BlockSpec(memory_space=pltpu.MemorySpace.VMEM)
    y = pl.pallas_call(
        _model4_kernel,
        out_shape=jax.ShapeDtypeStruct((BP, 128), jnp.float32),
        in_specs=[vmem, vmem],
        out_specs=vmem,
        scratch_shapes=[
            pltpu.VMEM((T * BP, 8 * HP), jnp.float32),        # gsum: Bi-LSTM additive terms
            pltpu.VMEM((T * BP, 2 * HP), jnp.float32),        # hseq: raw fused Bi-LSTM states
            pltpu.VMEM((T * BP, 2 * HP), jnp.float32),        # bi:   [h_fw(t) | h_bw(t)]
            pltpu.VMEM(((T + 1) * BP, 8 * HP), jnp.float32),  # gadd: fused LSTM2/3 additive terms
        ],
    )(xc, packed_params)

    out = y[:B, 0:1]
    features = y[:B, HP:HP + FEATURES]
    return out, features


# ---------------- deterministic parameter init (PyTorch-style uniform) --------
def _uniform(key, shape, bound):
    return jax.random.uniform(key, shape, jnp.float32, -bound, bound)


def _init_lstm(key, in_dim, hidden):
    bound = 1.0 / np.sqrt(hidden)
    k = jax.random.split(key, 4)
    return (_uniform(k[0], (4 * hidden, in_dim), bound),   # w_ih (torch layout)
            _uniform(k[1], (4 * hidden, hidden), bound),   # w_hh
            _uniform(k[2], (4 * hidden,), bound),          # b_ih
            _uniform(k[3], (4 * hidden,), bound))          # b_hh


def _init_linear(key, in_dim, out_dim):
    bound = 1.0 / np.sqrt(in_dim)
    k = jax.random.split(key, 2)
    return (_uniform(k[0], (out_dim, in_dim), bound),      # w (torch layout)
            _uniform(k[1], (out_dim,), bound))             # b


def make_params(key):
    keys = jax.random.split(key, 6)
    return {
        'bi_f': _init_lstm(keys[0], INPUT_DIM + AUX_DIM, HIDDEN),
        'bi_b': _init_lstm(keys[1], INPUT_DIM + AUX_DIM, HIDDEN),
        'lstm2': _init_lstm(keys[2], 2 * HIDDEN, HIDDEN),
        'lstm3': _init_lstm(keys[3], HIDDEN, FEATURES),
        'fc': _init_linear(keys[4], FEATURES, HIDDEN),
        'fc2': _init_linear(keys[5], HIDDEN, 1),
    }


# ---------------- pack / permute / pad parameters into one bf16 buffer ---------
def pack_params(p):
    H, F = HIDDEN, FEATURES
    P = np.zeros((_P_ROWS, 256), np.float32)

    # --- fused Bi-LSTM: gate block width 64 = [fw sub 0:32 | bw sub 32:64] ---
    for d, name in enumerate(('bi_f', 'bi_b')):
        w_ih, w_hh, b_ih, b_hh = (np.asarray(a) for a in p[name])
        for kt in range(4):
            c0 = _TORCH2TGT[kt] * 2 * HP + d * HP
            rows = slice(kt * H, (kt + 1) * H)
            P[_R_WCOMB + 3 * d:_R_WCOMB + 3 * d + 3, c0:c0 + H] = w_ih[rows, :INPUT_DIM].T
            P[_R_WCOMB + 6:_R_WCOMB + 10, c0:c0 + H] = w_ih[rows, INPUT_DIM:].T
            P[_R_WCOMB + 10, c0:c0 + H] = b_ih[rows] + b_hh[rows]
            r0 = _R_WHH_BI + d * HP
            P[r0:r0 + H, c0:c0 + H] = w_hh[rows, :].T

    # --- fused LSTM2 + CollectLSTM: gate block width 64 = [LSTM2 0:32 | LSTM3 32:64] ---
    w_ih2, w_hh2, b_ih2, b_hh2 = (np.asarray(a) for a in p['lstm2'])
    w_ih3, w_hh3, b_ih3, b_hh3 = (np.asarray(a) for a in p['lstm3'])
    for kt in range(4):
        kp = _TORCH2TGT[kt]
        # LSTM2 sub-columns
        c2 = kp * 2 * HP
        rows2 = slice(kt * H, (kt + 1) * H)
        P[_R_WIH2F:_R_WIH2F + H, c2:c2 + H] = w_ih2[rows2, 0:H].T            # from h_fw
        P[_R_WIH2F + HP:_R_WIH2F + HP + H, c2:c2 + H] = w_ih2[rows2, H:2 * H].T  # from h_bw
        P[_R_B2ROW, c2:c2 + H] = b_ih2[rows2] + b_hh2[rows2]
        P[_R_W23:_R_W23 + H, c2:c2 + H] = w_hh2[rows2, :].T                  # h2 -> LSTM2
        # CollectLSTM (LSTM3) sub-columns
        c3 = kp * 2 * HP + HP
        rows3 = slice(kt * F, (kt + 1) * F)
        P[_R_W23:_R_W23 + H, c3:c3 + F] = w_ih3[rows3, :].T                  # h2 -> LSTM3
        P[_R_W23 + HP:_R_W23 + HP + F, c3:c3 + F] = w_hh3[rows3, :].T        # h3 -> LSTM3
        P[_R_B3ROW, c3:c3 + F] = b_ih3[rows3] + b_hh3[rows3]

    # --- FC / FC2 heads ---
    w_fc, b_fc = (np.asarray(a) for a in p['fc'])
    w_fc2, b_fc2 = (np.asarray(a) for a in p['fc2'])
    P[_R_WFC:_R_WFC + F, 0:H] = w_fc.T
    P[_R_BFC, 0:H] = b_fc
    P[_R_WFC2, 0:H] = w_fc2[0]
    P[_R_BFC2, 0] = b_fc2[0]
    return jnp.asarray(P).astype(jnp.bfloat16)


# ---------------- pure-JAX reference (torch-faithful, f32, un-permuted) --------
def _lstm_seq_ref(xs, w_ih, w_hh, b_ih, b_hh, reverse=False):
    hi = jax.lax.Precision.HIGHEST
    B = xs[0].shape[0]
    H = w_hh.shape[1]
    h = jnp.zeros((B, H), jnp.float32)
    c = jnp.zeros((B, H), jnp.float32)
    T = len(xs)
    order = range(T - 1, -1, -1) if reverse else range(T)
    ys = [None] * T
    for t in order:
        gates = (jnp.dot(xs[t], w_ih.T, precision=hi)
                 + jnp.dot(h, w_hh.T, precision=hi) + b_ih + b_hh)
        i = jax.nn.sigmoid(gates[:, 0:H])
        f = jax.nn.sigmoid(gates[:, H:2 * H])
        g = jnp.tanh(gates[:, 2 * H:3 * H])
        o = jax.nn.sigmoid(gates[:, 3 * H:4 * H])
        c = f * c + i * g
        h = o * jnp.tanh(c)
        ys[t] = h
    return ys, h


def reference_forward(trace, aux, p):
    hi = jax.lax.Precision.HIGHEST
    B, T, _ = trace.shape
    aux_tiled = jnp.tile(jnp.transpose(aux, (0, 2, 1)), (1, T, 1))
    x = jnp.concatenate([trace, aux_tiled], axis=2).astype(jnp.float32)
    xs = [x[:, t, :] for t in range(T)]

    ys_f, _ = _lstm_seq_ref(xs, *p['bi_f'], reverse=False)
    ys_b, _ = _lstm_seq_ref(xs, *p['bi_b'], reverse=True)
    bi = [jnp.concatenate([ys_f[t], ys_b[t]], axis=-1) for t in range(T)]
    ys2, _ = _lstm_seq_ref(bi, *p['lstm2'])
    _, h3 = _lstm_seq_ref(ys2, *p['lstm3'])
    features = h3

    w_fc, b_fc = p['fc']
    w_fc2, b_fc2 = p['fc2']
    fc = jnp.dot(features, w_fc.T, precision=hi) + b_fc
    fc = jnp.where(fc > 0, fc, LEAKY_SLOPE * fc)
    out = jax.nn.sigmoid(jnp.dot(fc, w_fc2.T, precision=hi) + b_fc2)
    return out, features


if __name__ == "__main__":
    B, T = 2, 8
    key = jax.random.PRNGKey(0)
    k_trace, k_aux, k_params = jax.random.split(key, 3)

    trace = jax.random.normal(k_trace, (B, T, INPUT_DIM), jnp.float32)
    aux = jax.random.normal(k_aux, (B, AUX_DIM, 1), jnp.float32)
    params = make_params(k_params)
    packed = pack_params(params)

    out, features = model4_forward(trace, aux, packed)
    out = jax.block_until_ready(out)
    features = jax.block_until_ready(features)

    ref_out, ref_feat = reference_forward(trace, aux, params)

    assert out.shape == (B, 1) and features.shape == (B, FEATURES)
    assert bool(jnp.all(jnp.isfinite(out))) and bool(jnp.all(jnp.isfinite(features)))
    # bf16 MXU operands (per perf review) with f32 accumulation / cell state:
    # tolerance relaxed accordingly vs. the all-f32 reference.
    np.testing.assert_allclose(np.asarray(out), np.asarray(ref_out), atol=1e-2, rtol=1e-2)
    np.testing.assert_allclose(np.asarray(features), np.asarray(ref_feat),
                               atol=1e-2, rtol=1e-2)

    print("KERNEL_OK")
</pallas_src>

<mosaic_0001>
module attributes {stable_mosaic.version = 11 : i64} {
  func.func @_model4_kernel(%arg0: memref<64x16xbf16, #tpu.memory_space<vmem>>, %arg1: memref<320x256xbf16, #tpu.memory_space<vmem>>, %arg2: memref<8x128xf32, #tpu.memory_space<vmem>>, %arg3: memref<64x256xf32, #tpu.memory_space<vmem>>, %arg4: memref<64x64xf32, #tpu.memory_space<vmem>>, %arg5: memref<64x64xf32, #tpu.memory_space<vmem>>, %arg6: memref<72x256xf32, #tpu.memory_space<vmem>>) attributes {dimension_semantics = [], scalar_prefetch = 0 : i64, scratch_operands = 4 : i64, tpu.core_type = #tpu.core_type<tc>} {
    %c0 = arith.constant 0 : index
    %c0_0 = arith.constant 0 : index
    %0 = vector.load %arg0[%c0, %c0_0] : memref<64x16xbf16, #tpu.memory_space<vmem>>, vector<64x16xbf16>
    %c0_1 = arith.constant 0 : index
    %c0_2 = arith.constant 0 : index
    %1 = vector.load %arg1[%c0_1, %c0_2] : memref<320x256xbf16, #tpu.memory_space<vmem>>, vector<16x256xbf16>
    %cst = arith.constant dense<0.000000e+00> : vector<64x256xf32>
    %2 = tpu.matmul %0, %1, %cst {dimension_numbers = #tpu.dot_dimension_numbers<[1], [0], [0], [1], [0, 0, 1, 1], [], []>} : vector<64x16xbf16>, vector<16x256xbf16>, vector<64x256xf32> -> vector<64x256xf32>
    %c0_3 = arith.constant 0 : index
    %c0_4 = arith.constant 0 : index
    %3 = vector.load %arg3[%c0_3, %c0_4] : memref<64x256xf32, #tpu.memory_space<vmem>>, vector<64x256xf32>
    tpu.vector_store %arg3[%c0_3, %c0_4], %2 {strides = array<i32>} : memref<64x256xf32, #tpu.memory_space<vmem>>, vector<64x256xf32>,
    %c16 = arith.constant 16 : index
    %c0_5 = arith.constant 0 : index
    %4 = vector.load %arg1[%c16, %c0_5] : memref<320x256xbf16, #tpu.memory_space<vmem>>, vector<64x256xbf16>
    %cst_6 = arith.constant 0.000000e+00 : f32
    %5 = vector.broadcast %cst_6 : f32 to vector<8x64xf32>
    %cst_7 = arith.constant 0.000000e+00 : f32
    %6 = vector.broadcast %cst_7 : f32 to vector<8x64xf32>
    %7 = arith.truncf %5 : vector<8x64xf32> to vector<8x64xbf16>
    %cst_8 = arith.constant dense<0.000000e+00> : vector<8x256xf32>
    %8 = tpu.matmul %7, %4, %cst_8 {dimension_numbers = #tpu.dot_dimension_numbers<[1], [0], [0], [1], [0, 0, 1, 1], [], []>} : vector<8x64xbf16>, vector<64x256xbf16>, vector<8x256xf32> -> vector<8x256xf32>
    %c0_9 = arith.constant 0 : index
    %c0_10 = arith.constant 0 : index
    %9 = vector.load %arg3[%c0_9, %c0_10] : memref<64x256xf32, #tpu.memory_space<vmem>>, vector<8x256xf32>
    %10 = arith.addf %8, %9 : vector<8x256xf32>
    %11 = vector.extract_strided_slice %10 {offsets = [0, 0], sizes = [8, 192], strides = [1, 1]} : vector<8x256xf32> to vector<8x192xf32>
    %12 = arith.negf %11 : vector<8x192xf32>
    %13 = math.exp %12 : vector<8x192xf32>
    %cst_11 = arith.constant 1.000000e+00 : f32
    %14 = vector.broadcast %cst_11 : f32 to vector<8x192xf32>
    %15 = arith.addf %14, %13 : vector<8x192xf32>
    %16 = arith.divf %14, %15 : vector<8x192xf32>
    %17 = vector.extract_strided_slice %10 {offsets = [0, 192], sizes = [8, 64], strides = [1, 1]} : vector<8x256xf32> to vector<8x64xf32>
    %18 = math.tanh %17 : vector<8x64xf32>
    %19 = vector.extract_strided_slice %16 {offsets = [0, 0], sizes = [8, 64], strides = [1, 1]} : vector<8x192xf32> to vector<8x64xf32>
    %20 = vector.extract_strided_slice %16 {offsets = [0, 64], sizes = [8, 64], strides = [1, 1]} : vector<8x192xf32> to vector<8x64xf32>
    %21 = vector.extract_strided_slice %16 {offsets = [0, 128], sizes = [8, 64], strides = [1, 1]} : vector<8x192xf32> to vector<8x64xf32>
    %22 = arith.mulf %20, %6 : vector<8x64xf32>
    %23 = arith.mulf %19, %18 : vector<8x64xf32>
    %24 = arith.addf %22, %23 : vector<8x64xf32>
    %25 = math.tanh %24 : vector<8x64xf32>
    %26 = arith.mulf %21, %25 : vector<8x64xf32>
    %c0_12 = arith.constant 0 : index
    %c0_13 = arith.constant 0 : index
    %27 = vector.load %arg4[%c0_12, %c0_13] : memref<64x64xf32, #tpu.memory_space<vmem>>, vector<8x64xf32>
    tpu.vector_store %arg4[%c0_12, %c0_13], %26 {strides = array<i32>} : memref<64x64xf32, #tpu.memory_space<vmem>>, vector<8x64xf32>,
    %28 = arith.truncf %26 : vector<8x64xf32> to vector<8x64xbf16>
    %cst_14 = arith.constant dense<0.000000e+00> : vector<8x256xf32>
    %29 = tpu.matmul %28, %4, %cst_14 {dimension_numbers = #tpu.dot_dimension_numbers<[1], [0], [0], [1], [0, 0, 1, 1], [], []>} : vector<8x64xbf16>, vector<64x256xbf16>, vector<8x256xf32> -> vector<8x256xf32>
    %c8 = arith.constant 8 : index
    %c0_15 = arith.constant 0 : index
    %30 = vector.load %arg3[%c8, %c0_15] : memref<64x256xf32, #tpu.memory_space<vmem>>, vector<8x256xf32>
    %31 = arith.addf %29, %30 : vector<8x256xf32>
    %32 = vector.extract_strided_slice %31 {offsets = [0, 0], sizes = [8, 192], strides = [1, 1]} : vector<8x256xf32> to vector<8x192xf32>
    %33 = arith.negf %32 : vector<8x192xf32>
    %34 = math.exp %33 : vector<8x192xf32>
    %cst_16 = arith.constant 1.000000e+00 : f32
    %35 = vector.broadcast %cst_16 : f32 to vector<8x192xf32>
    %36 = arith.addf %35, %34 : vector<8x192xf32>
    %37 = arith.divf %35, %36 : vector<8x192xf32>
    %38 = vector.extract_strided_slice %31 {offsets = [0, 192], sizes = [8, 64], strides = [1, 1]} : vector<8x256xf32> to vector<8x64xf32>
    %39 = math.tanh %38 : vector<8x64xf32>
    %40 = vector.extract_strided_slice %37 {offsets = [0, 0], sizes = [8, 64], strides = [1, 1]} : vector<8x192xf32> to vector<8x64xf32>
    %41 = vector.extract_strided_slice %37 {offsets = [0, 64], sizes = [8, 64], strides = [1, 1]} : vector<8x192xf32> to vector<8x64xf32>
    %42 = vector.extract_strided_slice %37 {offsets = [0, 128], sizes = [8, 64], strides = [1, 1]} : vector<8x192xf32> to vector<8x64xf32>
    %43 = arith.mulf %41, %24 : vector<8x64xf32>
    %44 = arith.mulf %40, %39 : vector<8x64xf32>
    %45 = arith.addf %43, %44 : vector<8x64xf32>
    %46 = math.tanh %45 : vector<8x64xf32>
    %47 = arith.mulf %42, %46 : vector<8x64xf32>
    %c8_17 = arith.constant 8 : index
    %c0_18 = arith.constant 0 : index
    %48 = vector.load %arg4[%c8_17, %c0_18] : memref<64x64xf32, #tpu.memory_space<vmem>>, vector<8x64xf32>
    tpu.vector_store %arg4[%c8_17, %c0_18], %47 {strides = array<i32>} : memref<64x64xf32, #tpu.memory_space<vmem>>, vector<8x64xf32>,
    %49 = arith.truncf %47 : vector<8x64xf32> to vector<8x64xbf16>
    %cst_19 = arith.constant dense<0.000000e+00> : vector<8x256xf32>
    %50 = tpu.matmul %49, %4, %cst_19 {dimension_numbers = #tpu.dot_dimension_numbers<[1], [0], [0], [1], [0, 0, 1, 1], [], []>} : vector<8x64xbf16>, vector<64x256xbf16>, vector<8x256xf32> -> vector<8x256xf32>
    %c16_20 = arith.constant 16 : index
    %c0_21 = arith.constant 0 : index
    %51 = vector.load %arg3[%c16_20, %c0_21] : memref<64x256xf32, #tpu.memory_space<vmem>>, vector<8x256xf32>
    %52 = arith.addf %50, %51 : vector<8x256xf32>
    %53 = vector.extract_strided_slice %52 {offsets = [0, 0], sizes = [8, 192], strides = [1, 1]} : vector<8x256xf32> to vector<8x192xf32>
    %54 = arith.negf %53 : vector<8x192xf32>
    %55 = math.exp %54 : vector<8x192xf32>
    %cst_22 = arith.constant 1.000000e+00 : f32
    %56 = vector.broadcast %cst_22 : f32 to vector<8x192xf32>
    %57 = arith.addf %56, %55 : vector<8x192xf32>
    %58 = arith.divf %56, %57 : vector<8x192xf32>
    %59 = vector.extract_strided_slice %52 {offsets = [0, 192], sizes = [8, 64], strides = [1, 1]} : vector<8x256xf32> to vector<8x64xf32>
    %60 = math.tanh %59 : vector<8x64xf32>
    %61 = vector.extract_strided_slice %58 {offsets = [0, 0], sizes = [8, 64], strides = [1, 1]} : vector<8x192xf32> to vector<8x64xf32>
    %62 = vector.extract_strided_slice %58 {offsets = [0, 64], sizes = [8, 64], strides = [1, 1]} : vector<8x192xf32> to vector<8x64xf32>
    %63 = vector.extract_strided_slice %58 {offsets = [0, 128], sizes = [8, 64], strides = [1, 1]} : vector<8x192xf32> to vector<8x64xf32>
    %64 = arith.mulf %62, %45 : vector<8x64xf32>
    %65 = arith.mulf %61, %60 : vector<8x64xf32>
    %66 = arith.addf %64, %65 : vector<8x64xf32>
    %67 = math.tanh %66 : vector<8x64xf32>
    %68 = arith.mulf %63, %67 : vector<8x64xf32>
    %c16_23 = arith.constant 16 : index
    %c0_24 = arith.constant 0 : index
    %69 = vector.load %arg4[%c16_23, %c0_24] : memref<64x64xf32, #tpu.memory_space<vmem>>, vector<8x64xf32>
    tpu.vector_store %arg4[%c16_23, %c0_24], %68 {strides = array<i32>} : memref<64x64xf32, #tpu.memory_space<vmem>>, vector<8x64xf32>,
    %70 = arith.truncf %68 : vector<8x64xf32> to vector<8x64xbf16>
    %cst_25 = arith.constant dense<0.000000e+00> : vector<8x256xf32>
    %71 = tpu.matmul %70, %4, %cst_25 {dimension_numbers = #tpu.dot_dimension_numbers<[1], [0], [0], [1], [0, 0, 1, 1], [], []>} : vector<8x64xbf16>, vector<64x256xbf16>, vector<8x256xf32> -> vector<8x256xf32>
    %c24 = arith.constant 24 : index
    %c0_26 = arith.constant 0 : index
    %72 = vector.load %arg3[%c24, %c0_26] : memref<64x256xf32, #tpu.memory_space<vmem>>, vector<8x256xf32>
    %73 = arith.addf %71, %72 : vector<8x256xf32>
    %74 = vector.extract_strided_slice %73 {offsets = [0, 0], sizes = [8, 192], strides = [1, 1]} : vector<8x256xf32> to vector<8x192xf32>
    %75 = arith.negf %74 : vector<8x192xf32>
    %76 = math.exp %75 : vector<8x192xf32>
    %cst_27 = arith.constant 1.000000e+00 : f32
    %77 = vector.broadcast %cst_27 : f32 to vector<8x192xf32>
    %78 = arith.addf %77, %76 : vector<8x192xf32>
    %79 = arith.divf %77, %78 : vector<8x192xf32>
    %80 = vector.extract_strided_slice %73 {offsets = [0, 192], sizes = [8, 64], strides = [1, 1]} : vector<8x256xf32> to vector<8x64xf32>
    %81 = math.tanh %80 : vector<8x64xf32>
    %82 = vector.extract_strided_slice %79 {offsets = [0, 0], sizes = [8, 64], strides = [1, 1]} : vector<8x192xf32> to vector<8x64xf32>
    %83 = vector.extract_strided_slice %79 {offsets = [0, 64], sizes = [8, 64], strides = [1, 1]} : vector<8x192xf32> to vector<8x64xf32>
    %84 = vector.extract_strided_slice %79 {offsets = [0, 128], sizes = [8, 64], strides = [1, 1]} : vector<8x192xf32> to vector<8x64xf32>
    %85 = arith.mulf %83, %66 : vector<8x64xf32>
    %86 = arith.mulf %82, %81 : vector<8x64xf32>
    %87 = arith.addf %85, %86 : vector<8x64xf32>
    %88 = math.tanh %87 : vector<8x64xf32>
    %89 = arith.mulf %84, %88 : vector<8x64xf32>
    %c24_28 = arith.constant 24 : index
    %c0_29 = arith.constant 0 : index
    %90 = vector.load %arg4[%c24_28, %c0_29] : memref<64x64xf32, #tpu.memory_space<vmem>>, vector<8x64xf32>
    tpu.vector_store %arg4[%c24_28, %c0_29], %89 {strides = array<i32>} : memref<64x64xf32, #tpu.memory_space<vmem>>, vector<8x64xf32>,
    %91 = arith.truncf %89 : vector<8x64xf32> to vector<8x64xbf16>
    %cst_30 = arith.constant dense<0.000000e+00> : vector<8x256xf32>
    %92 = tpu.matmul %91, %4, %cst_30 {dimension_numbers = #tpu.dot_dimension_numbers<[1], [0], [0], [1], [0, 0, 1, 1], [], []>} : vector<8x64xbf16>, vector<64x256xbf16>, vector<8x256xf32> -> vector<8x256xf32>
    %c32 = arith.constant 32 : index
    %c0_31 = arith.constant 0 : index
    %93 = vector.load %arg3[%c32, %c0_31] : memref<64x256xf32, #tpu.memory_space<vmem>>, vector<8x256xf32>
    %94 = arith.addf %92, %93 : vector<8x256xf32>
    %95 = vector.extract_strided_slice %94 {offsets = [0, 0], sizes = [8, 192], strides = [1, 1]} : vector<8x256xf32> to vector<8x192xf32>
    %96 = arith.negf %95 : vector<8x192xf32>
    %97 = math.exp %96 : vector<8x192xf32>
    %cst_32 = arith.constant 1.000000e+00 : f32
    %98 = vector.broadcast %cst_32 : f32 to vector<8x192xf32>
    %99 = arith.addf %98, %97 : vector<8x192xf32>
    %100 = arith.divf %98, %99 : vector<8x192xf32>
    %101 = vector.extract_strided_slice %94 {offsets = [0, 192], sizes = [8, 64], strides = [1, 1]} : vector<8x256xf32> to vector<8x64xf32>
    %102 = math.tanh %101 : vector<8x64xf32>
    %103 = vector.extract_strided_slice %100 {offsets = [0, 0], sizes = [8, 64], strides = [1, 1]} : vector<8x192xf32> to vector<8x64xf32>
    %104 = vector.extract_strided_slice %100 {offsets = [0, 64], sizes = [8, 64], strides = [1, 1]} : vector<8x192xf32> to vector<8x64xf32>
    %105 = vector.extract_strided_slice %100 {offsets = [0, 128], sizes = [8, 64], strides = [1, 1]} : vector<8x192xf32> to vector<8x64xf32>
    %106 = arith.mulf %104, %87 : vector<8x64xf32>
    %107 = arith.mulf %103, %102 : vector<8x64xf32>
    %108 = arith.addf %106, %107 : vector<8x64xf32>
    %109 = math.tanh %108 : vector<8x64xf32>
    %110 = arith.mulf %105, %109 : vector<8x64xf32>
    %c32_33 = arith.constant 32 : index
    %c0_34 = arith.constant 0 : index
    %111 = vector.load %arg4[%c32_33, %c0_34] : memref<64x64xf32, #tpu.memory_space<vmem>>, vector<8x64xf32>
    tpu.vector_store %arg4[%c32_33, %c0_34], %110 {strides = array<i32>} : memref<64x64xf32, #tpu.memory_space<vmem>>, vector<8x64xf32>,
    %112 = arith.truncf %110 : vector<8x64xf32> to vector<8x64xbf16>
    %cst_35 = arith.constant dense<0.000000e+00> : vector<8x256xf32>
    %113 = tpu.matmul %112, %4, %cst_35 {dimension_numbers = #tpu.dot_dimension_numbers<[1], [0], [0], [1], [0, 0, 1, 1], [], []>} : vector<8x64xbf16>, vector<64x256xbf16>, vector<8x256xf32> -> vector<8x256xf32>
    %c40 = arith.constant 40 : index
    %c0_36 = arith.constant 0 : index
    %114 = vector.load %arg3[%c40, %c0_36] : memref<64x256xf32, #tpu.memory_space<vmem>>, vector<8x256xf32>
    %115 = arith.addf %113, %114 : vector<8x256xf32>
    %116 = vector.extract_strided_slice %115 {offsets = [0, 0], sizes = [8, 192], strides = [1, 1]} : vector<8x256xf32> to vector<8x192xf32>
    %117 = arith.negf %116 : vector<8x192xf32>
    %118 = math.exp %117 : vector<8x192xf32>
    %cst_37 = arith.constant 1.000000e+00 : f32
    %119 = vector.broadcast %cst_37 : f32 to vector<8x192xf32>
    %120 = arith.addf %119, %118 : vector<8x192xf32>
    %121 = arith.divf %119, %120 : vector<8x192xf32>
    %122 = vector.extract_strided_slice %115 {offsets = [0, 192], sizes = [8, 64], strides = [1, 1]} : vector<8x256xf32> to vector<8x64xf32>
    %123 = math.tanh %122 : vector<8x64xf32>
    %124 = vector.extract_strided_slice %121 {offsets = [0, 0], sizes = [8, 64], strides = [1, 1]} : vector<8x192xf32> to vector<8x64xf32>
    %125 = vector.extract_strided_slice %121 {offsets = [0, 64], sizes = [8, 64], strides = [1, 1]} : vector<8x192xf32> to vector<8x64xf32>
    %126 = vector.extract_strided_slice %121 {offsets = [0, 128], sizes = [8, 64], strides = [1, 1]} : vector<8x192xf32> to vector<8x64xf32>
    %127 = arith.mulf %125, %108 : vector<8x64xf32>
    %128 = arith.mulf %124, %123 : vector<8x64xf32>
    %129 = arith.addf %127, %128 : vector<8x64xf32>
    %130 = math.tanh %129 : vector<8x64xf32>
    %131 = arith.mulf %126, %130 : vector<8x64xf32>
    %c40_38 = arith.constant 40 : index
    %c0_39 = arith.constant 0 : index
    %132 = vector.load %arg4[%c40_38, %c0_39] : memref<64x64xf32, #tpu.memory_space<vmem>>, vector<8x64xf32>
    tpu.vector_store %arg4[%c40_38, %c0_39], %131 {strides = array<i32>} : memref<64x64xf32, #tpu.memory_space<vmem>>, vector<8x64xf32>,
    %133 = arith.truncf %131 : vector<8x64xf32> to vector<8x64xbf16>
    %cst_40 = arith.constant dense<0.000000e+00> : vector<8x256xf32>
    %134 = tpu.matmul %133, %4, %cst_40 {dimension_numbers = #tpu.dot_dimension_numbers<[1], [0], [0], [1], [0, 0, 1, 1], [], []>} : vector<8x64xbf16>, vector<64x256xbf16>, vector<8x256xf32> -> vector<8x256xf32>
    %c48 = arith.constant 48 : index
    %c0_41 = arith.constant 0 : index
    %135 = vector.load %arg3[%c48, %c0_41] : memref<64x256xf32, #tpu.memory_space<vmem>>, vector<8x256xf32>
    %136 = arith.addf %134, %135 : vector<8x256xf32>
    %137 = vector.extract_strided_slice %136 {offsets = [0, 0], sizes = [8, 192], strides = [1, 1]} : vector<8x256xf32> to vector<8x192xf32>
    %138 = arith.negf %137 : vector<8x192xf32>
    %139 = math.exp %138 : vector<8x192xf32>
    %cst_42 = arith.constant 1.000000e+00 : f32
    %140 = vector.broadcast %cst_42 : f32 to vector<8x192xf32>
    %141 = arith.addf %140, %139 : vector<8x192xf32>
    %142 = arith.divf %140, %141 : vector<8x192xf32>
    %143 = vector.extract_strided_slice %136 {offsets = [0, 192], sizes = [8, 64], strides = [1, 1]} : vector<8x256xf32> to vector<8x64xf32>
    %144 = math.tanh %143 : vector<8x64xf32>
    %145 = vector.extract_strided_slice %142 {offsets = [0, 0], sizes = [8, 64], strides = [1, 1]} : vector<8x192xf32> to vector<8x64xf32>
    %146 = vector.extract_strided_slice %142 {offsets = [0, 64], sizes = [8, 64], strides = [1, 1]} : vector<8x192xf32> to vector<8x64xf32>
    %147 = vector.extract_strided_slice %142 {offsets = [0, 128], sizes = [8, 64], strides = [1, 1]} : vector<8x192xf32> to vector<8x64xf32>
    %148 = arith.mulf %146, %129 : vector<8x64xf32>
    %149 = arith.mulf %145, %144 : vector<8x64xf32>
    %150 = arith.addf %148, %149 : vector<8x64xf32>
    %151 = math.tanh %150 : vector<8x64xf32>
    %152 = arith.mulf %147, %151 : vector<8x64xf32>
    %c48_43 = arith.constant 48 : index
    %c0_44 = arith.constant 0 : index
    %153 = vector.load %arg4[%c48_43, %c0_44] : memref<64x64xf32, #tpu.memory_space<vmem>>, vector<8x64xf32>
    tpu.vector_store %arg4[%c48_43, %c0_44], %152 {strides = array<i32>} : memref<64x64xf32, #tpu.memory_space<vmem>>, vector<8x64xf32>,
    %154 = arith.truncf %152 : vector<8x64xf32> to vector<8x64xbf16>
    %cst_45 = arith.constant dense<0.000000e+00> : vector<8x256xf32>
    %155 = tpu.matmul %154, %4, %cst_45 {dimension_numbers = #tpu.dot_dimension_numbers<[1], [0], [0], [1], [0, 0, 1, 1], [], []>} : vector<8x64xbf16>, vector<64x256xbf16>, vector<8x256xf32> -> vector<8x256xf32>
    %c56 = arith.constant 56 : index
    %c0_46 = arith.constant 0 : index
    %156 = vector.load %arg3[%c56, %c0_46] : memref<64x256xf32, #tpu.memory_space<vmem>>, vector<8x256xf32>
    %157 = arith.addf %155, %156 : vector<8x256xf32>
    %158 = vector.extract_strided_slice %157 {offsets = [0, 0], sizes = [8, 192], strides = [1, 1]} : vector<8x256xf32> to vector<8x192xf32>
    %159 = arith.negf %158 : vector<8x192xf32>
    %160 = math.exp %159 : vector<8x192xf32>
    %cst_47 = arith.constant 1.000000e+00 : f32
    %161 = vector.broadcast %cst_47 : f32 to vector<8x192xf32>
    %162 = arith.addf %161, %160 : vector<8x192xf32>
    %163 = arith.divf %161, %162 : vector<8x192xf32>
    %164 = vector.extract_strided_slice %157 {offsets = [0, 192], sizes = [8, 64], strides = [1, 1]} : vector<8x256xf32> to vector<8x64xf32>
    %165 = math.tanh %164 : vector<8x64xf32>
    %166 = vector.extract_strided_slice %163 {offsets = [0, 0], sizes = [8, 64], strides = [1, 1]} : vector<8x192xf32> to vector<8x64xf32>
    %167 = vector.extract_strided_slice %163 {offsets = [0, 64], sizes = [8, 64], strides = [1, 1]} : vector<8x192xf32> to vector<8x64xf32>
    %168 = vector.extract_strided_slice %163 {offsets = [0, 128], sizes = [8, 64], strides = [1, 1]} : vector<8x192xf32> to vector<8x64xf32>
    %169 = arith.mulf %167, %150 : vector<8x64xf32>
    %170 = arith.mulf %166, %165 : vector<8x64xf32>
    %171 = arith.addf %169, %170 : vector<8x64xf32>
    %172 = math.tanh %171 : vector<8x64xf32>
    %173 = arith.mulf %168, %172 : vector<8x64xf32>
    %c56_48 = arith.constant 56 : index
    %c0_49 = arith.constant 0 : index
    %174 = vector.load %arg4[%c56_48, %c0_49] : memref<64x64xf32, #tpu.memory_space<vmem>>, vector<8x64xf32>
    tpu.vector_store %arg4[%c56_48, %c0_49], %173 {strides = array<i32>} : memref<64x64xf32, #tpu.memory_space<vmem>>, vector<8x64xf32>,
    %c0_50 = arith.constant 0 : index
    %c0_51 = arith.constant 0 : index
    %175 = vector.load %arg4[%c0_50, %c0_51] : memref<64x64xf32, #tpu.memory_space<vmem>>, vector<64x32xf32>
    %c0_52 = arith.constant 0 : index
    %c0_53 = arith.constant 0 : index
    %176 = vector.load %arg5[%c0_52, %c0_53] : memref<64x64xf32, #tpu.memory_space<vmem>>, vector<64x32xf32>
    tpu.vector_store %arg5[%c0_52, %c0_53], %175 {strides = array<i32>} : memref<64x64xf32, #tpu.memory_space<vmem>>, vector<64x32xf32>,
    %c56_54 = arith.constant 56 : index
    %c32_55 = arith.constant 32 : index
    %177 = vector.load %arg4[%c56_54, %c32_55] : memref<64x64xf32, #tpu.memory_space<vmem>>, vector<8x32xf32>
    %c0_56 = arith.constant 0 : index
    %c32_57 = arith.constant 32 : index
    %178 = vector.load %arg5[%c0_56, %c32_57] : memref<64x64xf32, #tpu.memory_space<vmem>>, vector<8x32xf32>
    tpu.vector_store %arg5[%c0_56, %c32_57], %177 {strides = array<i32>} : memref<64x64xf32, #tpu.memory_space<vmem>>, vector<8x32xf32>,
    %c48_58 = arith.constant 48 : index
    %c32_59 = arith.constant 32 : index
    %179 = vector.load %arg4[%c48_58, %c32_59] : memref<64x64xf32, #tpu.memory_space<vmem>>, vector<8x32xf32>
    %c8_60 = arith.constant 8 : index
    %c32_61 = arith.constant 32 : index
    %180 = vector.load %arg5[%c8_60, %c32_61] : memref<64x64xf32, #tpu.memory_space<vmem>>, vector<8x32xf32>
    tpu.vector_store %arg5[%c8_60, %c32_61], %179 {strides = array<i32>} : memref<64x64xf32, #tpu.memory_space<vmem>>, vector<8x32xf32>,
    %c40_62 = arith.constant 40 : index
    %c32_63 = arith.constant 32 : index
    %181 = vector.load %arg4[%c40_62, %c32_63] : memref<64x64xf32, #tpu.memory_space<vmem>>, vector<8x32xf32>
    %c16_64 = arith.constant 16 : index
    %c32_65 = arith.constant 32 : index
    %182 = vector.load %arg5[%c16_64, %c32_65] : memref<64x64xf32, #tpu.memory_space<vmem>>, vector<8x32xf32>
    tpu.vector_store %arg5[%c16_64, %c32_65], %181 {strides = array<i32>} : memref<64x64xf32, #tpu.memory_space<vmem>>, vector<8x32xf32>,
    %c32_66 = arith.constant 32 : index
    %c32_67 = arith.constant 32 : index
    %183 = vector.load %arg4[%c32_66, %c32_67] : memref<64x64xf32, #tpu.memory_space<vmem>>, vector<8x32xf32>
    %c24_68 = arith.constant 24 : index
    %c32_69 = arith.constant 32 : index
    %184 = vector.load %arg5[%c24_68, %c32_69] : memref<64x64xf32, #tpu.memory_space<vmem>>, vector<8x32xf32>
    tpu.vector_store %arg5[%c24_68, %c32_69], %183 {strides = array<i32>} : memref<64x64xf32, #tpu.memory_space<vmem>>, vector<8x32xf32>,
    %c24_70 = arith.constant 24 : index
    %c32_71 = arith.constant 32 : index
    %185 = vector.load %arg4[%c24_70, %c32_71] : memref<64x64xf32, #tpu.memory_space<vmem>>, vector<8x32xf32>
    %c32_72 = arith.constant 32 : index
    %c32_73 = arith.constant 32 : index
    %186 = vector.load %arg5[%c32_72, %c32_73] : memref<64x64xf32, #tpu.memory_space<vmem>>, vector<8x32xf32>
    tpu.vector_store %arg5[%c32_72, %c32_73], %185 {strides = array<i32>} : memref<64x64xf32, #tpu.memory_space<vmem>>, vector<8x32xf32>,
    %c16_74 = arith.constant 16 : index
    %c32_75 = arith.constant 32 : index
    %187 = vector.load %arg4[%c16_74, %c32_75] : memref<64x64xf32, #tpu.memory_space<vmem>>, vector<8x32xf32>
    %c40_76 = arith.constant 40 : index
    %c32_77 = arith.constant 32 : index
    %188 = vector.load %arg5[%c40_76, %c32_77] : memref<64x64xf32, #tpu.memory_space<vmem>>, vector<8x32xf32>
    tpu.vector_store %arg5[%c40_76, %c32_77], %187 {strides = array<i32>} : memref<64x64xf32, #tpu.memory_space<vmem>>, vector<8x32xf32>,
    %c8_78 = arith.constant 8 : index
    %c32_79 = arith.constant 32 : index
    %189 = vector.load %arg4[%c8_78, %c32_79] : memref<64x64xf32, #tpu.memory_space<vmem>>, vector<8x32xf32>
    %c48_80 = arith.constant 48 : index
    %c32_81 = arith.constant 32 : index
    %190 = vector.load %arg5[%c48_80, %c32_81] : memref<64x64xf32, #tpu.memory_space<vmem>>, vector<8x32xf32>
    tpu.vector_store %arg5[%c48_80, %c32_81], %189 {strides = array<i32>} : memref<64x64xf32, #tpu.memory_space<vmem>>, vector<8x32xf32>,
    %c0_82 = arith.constant 0 : index
    %c32_83 = arith.constant 32 : index
    %191 = vector.load %arg4[%c0_82, %c32_83] : memref<64x64xf32, #tpu.memory_space<vmem>>, vector<8x32xf32>
    %c56_84 = arith.constant 56 : index
    %c32_85 = arith.constant 32 : index
    %192 = vector.load %arg5[%c56_84, %c32_85] : memref<64x64xf32, #tpu.memory_space<vmem>>, vector<8x32xf32>
    tpu.vector_store %arg5[%c56_84, %c32_85], %191 {strides = array<i32>} : memref<64x64xf32, #tpu.memory_space<vmem>>, vector<8x32xf32>,
    %c0_86 = arith.constant 0 : index
    %c0_87 = arith.constant 0 : index
    %193 = vector.load %arg5[%c0_86, %c0_87] : memref<64x64xf32, #tpu.memory_space<vmem>>, vector<64x64xf32>
    %194 = arith.truncf %193 : vector<64x64xf32> to vector<64x64xbf16>
    %c80 = arith.constant 80 : index
    %c0_88 = arith.constant 0 : index
    %195 = vector.load %arg1[%c80, %c0_88] : memref<320x256xbf16, #tpu.memory_space<vmem>>, vector<64x256xbf16>
    %cst_89 = arith.constant dense<0.000000e+00> : vector<64x256xf32>
    %196 = tpu.matmul %194, %195, %cst_89 {dimension_numbers = #tpu.dot_dimension_numbers<[1], [0], [0], [1], [0, 0, 1, 1], [], []>} : vector<64x64xbf16>, vector<64x256xbf16>, vector<64x256xf32> -> vector<64x256xf32>
    %c144 = arith.constant 144 : index
    %c0_90 = arith.constant 0 : index
    %197 = vector.load %arg1[%c144, %c0_90] : memref<320x256xbf16, #tpu.memory_space<vmem>>, vector<1x256xbf16>
    %198 = arith.extf %197 : vector<1x256xbf16> to vector<1x256xf32>
    %c160 = arith.constant 160 : index
    %c0_91 = arith.constant 0 : index
    %199 = vector.load %arg1[%c160, %c0_91] : memref<320x256xbf16, #tpu.memory_space<vmem>>, vector<1x256xbf16>
    %200 = arith.extf %199 : vector<1x256xbf16> to vector<1x256xf32>
    %201 = vector.extract_strided_slice %196 {offsets = [0, 0], sizes = [8, 256], strides = [1, 1]} : vector<64x256xf32> to vector<8x256xf32>
    %202 = vector.broadcast %198 : vector<1x256xf32> to vector<8x256xf32>
    %203 = arith.addf %201, %202 : vector<8x256xf32>
    %c0_92 = arith.constant 0 : index
    %c0_93 = arith.constant 0 : index
    %204 = vector.load %arg6[%c0_92, %c0_93] : memref<72x256xf32, #tpu.memory_space<vmem>>, vector<8x256xf32>
    tpu.vector_store %arg6[%c0_92, %c0_93], %203 {strides = array<i32>} : memref<72x256xf32, #tpu.memory_space<vmem>>, vector<8x256xf32>,
    %205 = vector.extract_strided_slice %196 {offsets = [8, 0], sizes = [56, 256], strides = [1, 1]} : vector<64x256xf32> to vector<56x256xf32>
    %206 = arith.addf %198, %200 : vector<1x256xf32>
    %207 = vector.broadcast %206 : vector<1x256xf32> to vector<56x256xf32>
    %208 = arith.addf %205, %207 : vector<56x256xf32>
    %c8_94 = arith.constant 8 : index
    %c0_95 = arith.constant 0 : index
    %209 = vector.load %arg6[%c8_94, %c0_95] : memref<72x256xf32, #tpu.memory_space<vmem>>, vector<56x256xf32>
    tpu.vector_store %arg6[%c8_94, %c0_95], %208 {strides = array<i32>} : memref<72x256xf32, #tpu.memory_space<vmem>>, vector<56x256xf32>,
    %cst_96 = arith.constant 0.000000e+00 : f32
    %210 = vector.broadcast %cst_96 : f32 to vector<8x256xf32>
    %211 = vector.broadcast %200 : vector<1x256xf32> to vector<8x256xf32>
    %212 = arith.addf %210, %211 : vector<8x256xf32>
    %c64 = arith.constant 64 : index
    %c0_97 = arith.constant 0 : index
    %213 = vector.load %arg6[%c64, %c0_97] : memref<72x256xf32, #tpu.memory_space<vmem>>, vector<8x256xf32>
    tpu.vector_store %arg6[%c64, %c0_97], %212 {strides = array<i32>} : memref<72x256xf32, #tpu.memory_space<vmem>>, vector<8x256xf32>,
    %c176 = arith.constant 176 : index
    %c0_98 = arith.constant 0 : index
    %214 = vector.load %arg1[%c176, %c0_98] : memref<320x256xbf16, #tpu.memory_space<vmem>>, vector<64x256xbf16>
    %cst_99 = arith.constant 0.000000e+00 : f32
    %215 = vector.broadcast %cst_99 : f32 to vector<8x64xf32>
    %cst_100 = arith.constant 0.000000e+00 : f32
    %216 = vector.broadcast %cst_100 : f32 to vector<8x64xf32>
    %217 = arith.truncf %215 : vector<8x64xf32> to vector<8x64xbf16>
    %cst_101 = arith.constant dense<0.000000e+00> : vector<8x256xf32>
    %218 = tpu.matmul %217, %214, %cst_101 {dimension_numbers = #tpu.dot_dimension_numbers<[1], [0], [0], [1], [0, 0, 1, 1], [], []>} : vector<8x64xbf16>, vector<64x256xbf16>, vector<8x256xf32> -> vector<8x256xf32>
    %c0_102 = arith.constant 0 : index
    %c0_103 = arith.constant 0 : index
    %219 = vector.load %arg6[%c0_102, %c0_103] : memref<72x256xf32, #tpu.memory_space<vmem>>, vector<8x256xf32>
    %220 = arith.addf %218, %219 : vector<8x256xf32>
    %221 = vector.extract_strided_slice %220 {offsets = [0, 0], sizes = [8, 192], strides = [1, 1]} : vector<8x256xf32> to vector<8x192xf32>
    %222 = arith.negf %221 : vector<8x192xf32>
    %223 = math.exp %222 : vector<8x192xf32>
    %cst_104 = arith.constant 1.000000e+00 : f32
    %224 = vector.broadcast %cst_104 : f32 to vector<8x192xf32>
    %225 = arith.addf %224, %223 : vector<8x192xf32>
    %226 = arith.divf %224, %225 : vector<8x192xf32>
    %227 = vector.extract_strided_slice %220 {offsets = [0, 192], sizes = [8, 64], strides = [1, 1]} : vector<8x256xf32> to vector<8x64xf32>
    %228 = math.tanh %227 : vector<8x64xf32>
    %229 = vector.extract_strided_slice %226 {offsets = [0, 0], sizes = [8, 64], strides = [1, 1]} : vector<8x192xf32> to vector<8x64xf32>
    %230 = vector.extract_strided_slice %226 {offsets = [0, 64], sizes = [8, 64], strides = [1, 1]} : vector<8x192xf32> to vector<8x64xf32>
    %231 = vector.extract_strided_slice %226 {offsets = [0, 128], sizes = [8, 64], strides = [1, 1]} : vector<8x192xf32> to vector<8x64xf32>
    %232 = arith.mulf %230, %216 : vector<8x64xf32>
    %233 = arith.mulf %229, %228 : vector<8x64xf32>
    %234 = arith.addf %232, %233 : vector<8x64xf32>
    %235 = math.tanh %234 : vector<8x64xf32>
    %236 = arith.mulf %231, %235 : vector<8x64xf32>
    %237 = arith.truncf %236 : vector<8x64xf32> to vector<8x64xbf16>
    %cst_105 = arith.constant dense<0.000000e+00> : vector<8x256xf32>
    %238 = tpu.matmul %237, %214, %cst_105 {dimension_numbers = #tpu.dot_dimension_numbers<[1], [0], [0], [1], [0, 0, 1, 1], [], []>} : vector<8x64xbf16>, vector<64x256xbf16>, vector<8x256xf32> -> vector<8x256xf32>
    %c8_106 = arith.constant 8 : index
    %c0_107 = arith.constant 0 : index
    %239 = vector.load %arg6[%c8_106, %c0_107] : memref<72x256xf32, #tpu.memory_space<vmem>>, vector<8x256xf32>
    %240 = arith.addf %238, %239 : vector<8x256xf32>
    %241 = vector.extract_strided_slice %240 {offsets = [0, 0], sizes = [8, 192], strides = [1, 1]} : vector<8x256xf32> to vector<8x192xf32>
    %242 = arith.negf %241 : vector<8x192xf32>
    %243 = math.exp %242 : vector<8x192xf32>
    %cst_108 = arith.constant 1.000000e+00 : f32
    %244 = vector.broadcast %cst_108 : f32 to vector<8x192xf32>
    %245 = arith.addf %244, %243 : vector<8x192xf32>
    %246 = arith.divf %244, %245 : vector<8x192xf32>
    %247 = vector.extract_strided_slice %240 {offsets = [0, 192], sizes = [8, 64], strides = [1, 1]} : vector<8x256xf32> to vector<8x64xf32>
    %248 = math.tanh %247 : vector<8x64xf32>
    %249 = vector.extract_strided_slice %246 {offsets = [0, 0], sizes = [8, 64], strides = [1, 1]} : vector<8x192xf32> to vector<8x64xf32>
    %250 = vector.extract_strided_slice %246 {offsets = [0, 64], sizes = [8, 64], strides = [1, 1]} : vector<8x192xf32> to vector<8x64xf32>
    %251 = vector.extract_strided_slice %246 {offsets = [0, 128], sizes = [8, 64], strides = [1, 1]} : vector<8x192xf32> to vector<8x64xf32>
    %252 = arith.mulf %250, %234 : vector<8x64xf32>
    %253 = arith.mulf %249, %248 : vector<8x64xf32>
    %254 = arith.addf %252, %253 : vector<8x64xf32>
    %255 = math.tanh %254 : vector<8x64xf32>
    %256 = arith.mulf %251, %255 : vector<8x64xf32>
    %257 = arith.truncf %256 : vector<8x64xf32> to vector<8x64xbf16>
    %cst_109 = arith.constant dense<0.000000e+00> : vector<8x256xf32>
    %258 = tpu.matmul %257, %214, %cst_109 {dimension_numbers = #tpu.dot_dimension_numbers<[1], [0], [0], [1], [0, 0, 1, 1], [], []>} : vector<8x64xbf16>, vector<64x256xbf16>, vector<8x256xf32> -> vector<8x256xf32>
    %c16_110 = arith.constant 16 : index
    %c0_111 = arith.constant 0 : index
    %259 = vector.load %arg6[%c16_110, %c0_111] : memref<72x256xf32, #tpu.memory_space<vmem>>, vector<8x256xf32>
    %260 = arith.addf %258, %259 : vector<8x256xf32>
    %261 = vector.extract_strided_slice %260 {offsets = [0, 0], sizes = [8, 192], strides = [1, 1]} : vector<8x256xf32> to vector<8x192xf32>
    %262 = arith.negf %261 : vector<8x192xf32>
    %263 = math.exp %262 : vector<8x192xf32>
    %cst_112 = arith.constant 1.000000e+00 : f32
    %264 = vector.broadcast %cst_112 : f32 to vector<8x192xf32>
    %265 = arith.addf %264, %263 : vector<8x192xf32>
    %266 = arith.divf %264, %265 : vector<8x192xf32>
    %267 = vector.extract_strided_slice %260 {offsets = [0, 192], sizes = [8, 64], strides = [1, 1]} : vector<8x256xf32> to vector<8x64xf32>
    %268 = math.tanh %267 : vector<8x64xf32>
    %269 = vector.extract_strided_slice %266 {offsets = [0, 0], sizes = [8, 64], strides = [1, 1]} : vector<8x192xf32> to vector<8x64xf32>
    %270 = vector.extract_strided_slice %266 {offsets = [0, 64], sizes = [8, 64], strides = [1, 1]} : vector<8x192xf32> to vector<8x64xf32>
    %271 = vector.extract_strided_slice %266 {offsets = [0, 128], sizes = [8, 64], strides = [1, 1]} : vector<8x192xf32> to vector<8x64xf32>
    %272 = arith.mulf %270, %254 : vector<8x64xf32>
    %273 = arith.mulf %269, %268 : vector<8x64xf32>
    %274 = arith.addf %272, %273 : vector<8x64xf32>
    %275 = math.tanh %274 : vector<8x64xf32>
    %276 = arith.mulf %271, %275 : vector<8x64xf32>
    %277 = arith.truncf %276 : vector<8x64xf32> to vector<8x64xbf16>
    %cst_113 = arith.constant dense<0.000000e+00> : vector<8x256xf32>
    %278 = tpu.matmul %277, %214, %cst_113 {dimension_numbers = #tpu.dot_dimension_numbers<[1], [0], [0], [1], [0, 0, 1, 1], [], []>} : vector<8x64xbf16>, vector<64x256xbf16>, vector<8x256xf32> -> vector<8x256xf32>
    %c24_114 = arith.constant 24 : index
    %c0_115 = arith.constant 0 : index
    %279 = vector.load %arg6[%c24_114, %c0_115] : memref<72x256xf32, #tpu.memory_space<vmem>>, vector<8x256xf32>
    %280 = arith.addf %278, %279 : vector<8x256xf32>
    %281 = vector.extract_strided_slice %280 {offsets = [0, 0], sizes = [8, 192], strides = [1, 1]} : vector<8x256xf32> to vector<8x192xf32>
    %282 = arith.negf %281 : vector<8x192xf32>
    %283 = math.exp %282 : vector<8x192xf32>
    %cst_116 = arith.constant 1.000000e+00 : f32
    %284 = vector.broadcast %cst_116 : f32 to vector<8x192xf32>
    %285 = arith.addf %284, %283 : vector<8x192xf32>
    %286 = arith.divf %284, %285 : vector<8x192xf32>
    %287 = vector.extract_strided_slice %280 {offsets = [0, 192], sizes = [8, 64], strides = [1, 1]} : vector<8x256xf32> to vector<8x64xf32>
    %288 = math.tanh %287 : vector<8x64xf32>
    %289 = vector.extract_strided_slice %286 {offsets = [0, 0], sizes = [8, 64], strides = [1, 1]} : vector<8x192xf32> to vector<8x64xf32>
    %290 = vector.extract_strided_slice %286 {offsets = [0, 64], sizes = [8, 64], strides = [1, 1]} : vector<8x192xf32> to vector<8x64xf32>
    %291 = vector.extract_strided_slice %286 {offsets = [0, 128], sizes = [8, 64], strides = [1, 1]} : vector<8x192xf32> to vector<8x64xf32>
    %292 = arith.mulf %290, %274 : vector<8x64xf32>
    %293 = arith.mulf %289, %288 : vector<8x64xf32>
    %294 = arith.addf %292, %293 : vector<8x64xf32>
    %295 = math.tanh %294 : vector<8x64xf32>
    %296 = arith.mulf %291, %295 : vector<8x64xf32>
    %297 = arith.truncf %296 : vector<8x64xf32> to vector<8x64xbf16>
    %cst_117 = arith.constant dense<0.000000e+00> : vector<8x256xf32>
    %298 = tpu.matmul %297, %214, %cst_117 {dimension_numbers = #tpu.dot_dimension_numbers<[1], [0], [0], [1], [0, 0, 1, 1], [], []>} : vector<8x64xbf16>, vector<64x256xbf16>, vector<8x256xf32> -> vector<8x256xf32>
    %c32_118 = arith.constant 32 : index
    %c0_119 = arith.constant 0 : index
    %299 = vector.load %arg6[%c32_118, %c0_119] : memref<72x256xf32, #tpu.memory_space<vmem>>, vector<8x256xf32>
    %300 = arith.addf %298, %299 : vector<8x256xf32>
    %301 = vector.extract_strided_slice %300 {offsets = [0, 0], sizes = [8, 192], strides = [1, 1]} : vector<8x256xf32> to vector<8x192xf32>
    %302 = arith.negf %301 : vector<8x192xf32>
    %303 = math.exp %302 : vector<8x192xf32>
    %cst_120 = arith.constant 1.000000e+00 : f32
    %304 = vector.broadcast %cst_120 : f32 to vector<8x192xf32>
    %305 = arith.addf %304, %303 : vector<8x192xf32>
    %306 = arith.divf %304, %305 : vector<8x192xf32>
    %307 = vector.extract_strided_slice %300 {offsets = [0, 192], sizes = [8, 64], strides = [1, 1]} : vector<8x256xf32> to vector<8x64xf32>
    %308 = math.tanh %307 : vector<8x64xf32>
    %309 = vector.extract_strided_slice %306 {offsets = [0, 0], sizes = [8, 64], strides = [1, 1]} : vector<8x192xf32> to vector<8x64xf32>
    %310 = vector.extract_strided_slice %306 {offsets = [0, 64], sizes = [8, 64], strides = [1, 1]} : vector<8x192xf32> to vector<8x64xf32>
    %311 = vector.extract_strided_slice %306 {offsets = [0, 128], sizes = [8, 64], strides = [1, 1]} : vector<8x192xf32> to vector<8x64xf32>
    %312 = arith.mulf %310, %294 : vector<8x64xf32>
    %313 = arith.mulf %309, %308 : vector<8x64xf32>
    %314 = arith.addf %312, %313 : vector<8x64xf32>
    %315 = math.tanh %314 : vector<8x64xf32>
    %316 = arith.mulf %311, %315 : vector<8x64xf32>
    %317 = arith.truncf %316 : vector<8x64xf32> to vector<8x64xbf16>
    %cst_121 = arith.constant dense<0.000000e+00> : vector<8x256xf32>
    %318 = tpu.matmul %317, %214, %cst_121 {dimension_numbers = #tpu.dot_dimension_numbers<[1], [0], [0], [1], [0, 0, 1, 1], [], []>} : vector<8x64xbf16>, vector<64x256xbf16>, vector<8x256xf32> -> vector<8x256xf32>
    %c40_122 = arith.constant 40 : index
    %c0_123 = arith.constant 0 : index
    %319 = vector.load %arg6[%c40_122, %c0_123] : memref<72x256xf32, #tpu.memory_space<vmem>>, vector<8x256xf32>
    %320 = arith.addf %318, %319 : vector<8x256xf32>
    %321 = vector.extract_strided_slice %320 {offsets = [0, 0], sizes = [8, 192], strides = [1, 1]} : vector<8x256xf32> to vector<8x192xf32>
    %322 = arith.negf %321 : vector<8x192xf32>
    %323 = math.exp %322 : vector<8x192xf32>
    %cst_124 = arith.constant 1.000000e+00 : f32
    %324 = vector.broadcast %cst_124 : f32 to vector<8x192xf32>
    %325 = arith.addf %324, %323 : vector<8x192xf32>
    %326 = arith.divf %324, %325 : vector<8x192xf32>
    %327 = vector.extract_strided_slice %320 {offsets = [0, 192], sizes = [8, 64], strides = [1, 1]} : vector<8x256xf32> to vector<8x64xf32>
    %328 = math.tanh %327 : vector<8x64xf32>
    %329 = vector.extract_strided_slice %326 {offsets = [0, 0], sizes = [8, 64], strides = [1, 1]} : vector<8x192xf32> to vector<8x64xf32>
    %330 = vector.extract_strided_slice %326 {offsets = [0, 64], sizes = [8, 64], strides = [1, 1]} : vector<8x192xf32> to vector<8x64xf32>
    %331 = vector.extract_strided_slice %326 {offsets = [0, 128], sizes = [8, 64], strides = [1, 1]} : vector<8x192xf32> to vector<8x64xf32>
    %332 = arith.mulf %330, %314 : vector<8x64xf32>
    %333 = arith.mulf %329, %328 : vector<8x64xf32>
    %334 = arith.addf %332, %333 : vector<8x64xf32>
    %335 = math.tanh %334 : vector<8x64xf32>
    %336 = arith.mulf %331, %335 : vector<8x64xf32>
    %337 = arith.truncf %336 : vector<8x64xf32> to vector<8x64xbf16>
    %cst_125 = arith.constant dense<0.000000e+00> : vector<8x256xf32>
    %338 = tpu.matmul %337, %214, %cst_125 {dimension_numbers = #tpu.dot_dimension_numbers<[1], [0], [0], [1], [0, 0, 1, 1], [], []>} : vector<8x64xbf16>, vector<64x256xbf16>, vector<8x256xf32> -> vector<8x256xf32>
    %c48_126 = arith.constant 48 : index
    %c0_127 = arith.constant 0 : index
    %339 = vector.load %arg6[%c48_126, %c0_127] : memref<72x256xf32, #tpu.memory_space<vmem>>, vector<8x256xf32>
    %340 = arith.addf %338, %339 : vector<8x256xf32>
    %341 = vector.extract_strided_slice %340 {offsets = [0, 0], sizes = [8, 192], strides = [1, 1]} : vector<8x256xf32> to vector<8x192xf32>
    %342 = arith.negf %341 : vector<8x192xf32>
    %343 = math.exp %342 : vector<8x192xf32>
    %cst_128 = arith.constant 1.000000e+00 : f32
    %344 = vector.broadcast %cst_128 : f32 to vector<8x192xf32>
    %345 = arith.addf %344, %343 : vector<8x192xf32>
    %346 = arith.divf %344, %345 : vector<8x192xf32>
    %347 = vector.extract_strided_slice %340 {offsets = [0, 192], sizes = [8, 64], strides = [1, 1]} : vector<8x256xf32> to vector<8x64xf32>
    %348 = math.tanh %347 : vector<8x64xf32>
    %349 = vector.extract_strided_slice %346 {offsets = [0, 0], sizes = [8, 64], strides = [1, 1]} : vector<8x192xf32> to vector<8x64xf32>
    %350 = vector.extract_strided_slice %346 {offsets = [0, 64], sizes = [8, 64], strides = [1, 1]} : vector<8x192xf32> to vector<8x64xf32>
    %351 = vector.extract_strided_slice %346 {offsets = [0, 128], sizes = [8, 64], strides = [1, 1]} : vector<8x192xf32> to vector<8x64xf32>
    %352 = arith.mulf %350, %334 : vector<8x64xf32>
    %353 = arith.mulf %349, %348 : vector<8x64xf32>
    %354 = arith.addf %352, %353 : vector<8x64xf32>
    %355 = math.tanh %354 : vector<8x64xf32>
    %356 = arith.mulf %351, %355 : vector<8x64xf32>
    %357 = arith.truncf %356 : vector<8x64xf32> to vector<8x64xbf16>
    %cst_129 = arith.constant dense<0.000000e+00> : vector<8x256xf32>
    %358 = tpu.matmul %357, %214, %cst_129 {dimension_numbers = #tpu.dot_dimension_numbers<[1], [0], [0], [1], [0, 0, 1, 1], [], []>} : vector<8x64xbf16>, vector<64x256xbf16>, vector<8x256xf32> -> vector<8x256xf32>
    %c56_130 = arith.constant 56 : index
    %c0_131 = arith.constant 0 : index
    %359 = vector.load %arg6[%c56_130, %c0_131] : memref<72x256xf32, #tpu.memory_space<vmem>>, vector<8x256xf32>
    %360 = arith.addf %358, %359 : vector<8x256xf32>
    %361 = vector.extract_strided_slice %360 {offsets = [0, 0], sizes = [8, 192], strides = [1, 1]} : vector<8x256xf32> to vector<8x192xf32>
    %362 = arith.negf %361 : vector<8x192xf32>
    %363 = math.exp %362 : vector<8x192xf32>
    %cst_132 = arith.constant 1.000000e+00 : f32
    %364 = vector.broadcast %cst_132 : f32 to vector<8x192xf32>
    %365 = arith.addf %364, %363 : vector<8x192xf32>
    %366 = arith.divf %364, %365 : vector<8x192xf32>
    %367 = vector.extract_strided_slice %360 {offsets = [0, 192], sizes = [8, 64], strides = [1, 1]} : vector<8x256xf32> to vector<8x64xf32>
    %368 = math.tanh %367 : vector<8x64xf32>
    %369 = vector.extract_strided_slice %366 {offsets = [0, 0], sizes = [8, 64], strides = [1, 1]} : vector<8x192xf32> to vector<8x64xf32>
    %370 = vector.extract_strided_slice %366 {offsets = [0, 64], sizes = [8, 64], strides = [1, 1]} : vector<8x192xf32> to vector<8x64xf32>
    %371 = vector.extract_strided_slice %366 {offsets = [0, 128], sizes = [8, 64], strides = [1, 1]} : vector<8x192xf32> to vector<8x64xf32>
    %372 = arith.mulf %370, %354 : vector<8x64xf32>
    %373 = arith.mulf %369, %368 : vector<8x64xf32>
    %374 = arith.addf %372, %373 : vector<8x64xf32>
    %375 = math.tanh %374 : vector<8x64xf32>
    %376 = arith.mulf %371, %375 : vector<8x64xf32>
    %377 = arith.truncf %376 : vector<8x64xf32> to vector<8x64xbf16>
    %cst_133 = arith.constant dense<0.000000e+00> : vector<8x256xf32>
    %378 = tpu.matmul %377, %214, %cst_133 {dimension_numbers = #tpu.dot_dimension_numbers<[1], [0], [0], [1], [0, 0, 1, 1], [], []>} : vector<8x64xbf16>, vector<64x256xbf16>, vector<8x256xf32> -> vector<8x256xf32>
    %c64_134 = arith.constant 64 : index
    %c0_135 = arith.constant 0 : index
    %379 = vector.load %arg6[%c64_134, %c0_135] : memref<72x256xf32, #tpu.memory_space<vmem>>, vector<8x256xf32>
    %380 = arith.addf %378, %379 : vector<8x256xf32>
    %381 = vector.extract_strided_slice %380 {offsets = [0, 0], sizes = [8, 192], strides = [1, 1]} : vector<8x256xf32> to vector<8x192xf32>
    %382 = arith.negf %381 : vector<8x192xf32>
    %383 = math.exp %382 : vector<8x192xf32>
    %cst_136 = arith.constant 1.000000e+00 : f32
    %384 = vector.broadcast %cst_136 : f32 to vector<8x192xf32>
    %385 = arith.addf %384, %383 : vector<8x192xf32>
    %386 = arith.divf %384, %385 : vector<8x192xf32>
    %387 = vector.extract_strided_slice %380 {offsets = [0, 192], sizes = [8, 64], strides = [1, 1]} : vector<8x256xf32> to vector<8x64xf32>
    %388 = math.tanh %387 : vector<8x64xf32>
    %389 = vector.extract_strided_slice %386 {offsets = [0, 0], sizes = [8, 64], strides = [1, 1]} : vector<8x192xf32> to vector<8x64xf32>
    %390 = vector.extract_strided_slice %386 {offsets = [0, 64], sizes = [8, 64], strides = [1, 1]} : vector<8x192xf32> to vector<8x64xf32>
    %391 = vector.extract_strided_slice %386 {offsets = [0, 128], sizes = [8, 64], strides = [1, 1]} : vector<8x192xf32> to vector<8x64xf32>
    %392 = arith.mulf %390, %374 : vector<8x64xf32>
    %393 = arith.mulf %389, %388 : vector<8x64xf32>
    %394 = arith.addf %392, %393 : vector<8x64xf32>
    %395 = math.tanh %394 : vector<8x64xf32>
    %396 = arith.mulf %391, %395 : vector<8x64xf32>
    %397 = vector.extract_strided_slice %396 {offsets = [0, 32], sizes = [8, 32], strides = [1, 1]} : vector<8x64xf32> to vector<8x32xf32>
    %c240 = arith.constant 240 : index
    %c0_137 = arith.constant 0 : index
    %398 = vector.load %arg1[%c240, %c0_137] : memref<320x256xbf16, #tpu.memory_space<vmem>>, vector<32x32xbf16>
    %c272 = arith.constant 272 : index
    %c0_138 = arith.constant 0 : index
    %399 = vector.load %arg1[%c272, %c0_138] : memref<320x256xbf16, #tpu.memory_space<vmem>>, vector<1x32xbf16>
    %400 = arith.extf %399 : vector<1x32xbf16> to vector<1x32xf32>
    %401 = arith.truncf %397 : vector<8x32xf32> to vector<8x32xbf16>
    %cst_139 = arith.constant dense<0.000000e+00> : vector<8x32xf32>
    %402 = tpu.matmul %401, %398, %cst_139 {dimension_numbers = #tpu.dot_dimension_numbers<[1], [0], [0], [1], [0, 0, 1, 1], [], []>} : vector<8x32xbf16>, vector<32x32xbf16>, vector<8x32xf32> -> vector<8x32xf32>
    %403 = vector.broadcast %400 : vector<1x32xf32> to vector<8x32xf32>
    %404 = arith.addf %402, %403 : vector<8x32xf32>
    %cst_140 = arith.constant 0.000000e+00 : f32
    %405 = vector.broadcast %cst_140 : f32 to vector<8x32xf32>
    %406 = arith.cmpf ogt, %404, %405 : vector<8x32xf32>
    %cst_141 = arith.constant 0.00999999977 : f32
    %407 = vector.broadcast %cst_141 : f32 to vector<8x32xf32>
    %408 = arith.mulf %407, %404 : vector<8x32xf32>
    %409 = arith.select %406, %404, %408 : vector<8x32xi1>, vector<8x32xf32>
    %c288 = arith.constant 288 : index
    %c0_142 = arith.constant 0 : index
    %410 = vector.load %arg1[%c288, %c0_142] : memref<320x256xbf16, #tpu.memory_space<vmem>>, vector<1x32xbf16>
    %411 = arith.extf %410 : vector<1x32xbf16> to vector<1x32xf32>
    %c304 = arith.constant 304 : index
    %c0_143 = arith.constant 0 : index
    %412 = vector.load %arg1[%c304, %c0_143] : memref<320x256xbf16, #tpu.memory_space<vmem>>, vector<1x1xbf16>
    %413 = arith.extf %412 : vector<1x1xbf16> to vector<1x1xf32>
    %414 = vector.broadcast %411 : vector<1x32xf32> to vector<8x32xf32>
    %415 = arith.mulf %409, %414 : vector<8x32xf32>
    %cst_144 = arith.constant dense<0.000000e+00> : vector<8xf32>
    %416 = vector.multi_reduction <add>, %415, %cst_144 [1] : vector<8x32xf32> to vector<8xf32>
    %417 = vector.shape_cast %416 : vector<8xf32> to vector<8x1xf32>
    %418 = vector.broadcast %413 : vector<1x1xf32> to vector<8x1xf32>
    %419 = arith.addf %417, %418 : vector<8x1xf32>
    %420 = arith.negf %419 : vector<8x1xf32>
    %421 = math.exp %420 : vector<8x1xf32>
    %cst_145 = arith.constant 1.000000e+00 : f32
    %422 = vector.broadcast %cst_145 : f32 to vector<8x1xf32>
    %423 = arith.addf %422, %421 : vector<8x1xf32>
    %424 = arith.divf %422, %423 : vector<8x1xf32>
    %cst_146 = arith.constant 0.000000e+00 : f32
    %425 = vector.broadcast %cst_146 : f32 to vector<8x32xf32>
    %426 = vector.broadcast %424 : vector<8x1xf32> to vector<8x32xf32>
    %427 = arith.addf %426, %425 : vector<8x32xf32>
    %cst_147 = arith.constant 0.000000e+00 : f32
    %428 = vector.broadcast %cst_147 : f32 to vector<8x64xf32>
    %429 = tpu.concatenate %427, %397, %428 in 1 : vector<8x32xf32>, vector<8x32xf32>, vector<8x64xf32> -> vector<8x128xf32>
    %c0_148 = arith.constant 0 : index
    %c0_149 = arith.constant 0 : index
    %430 = vector.load %arg2[%c0_148, %c0_149] : memref<8x128xf32, #tpu.memory_space<vmem>>, vector<8x128xf32>
    tpu.vector_store %arg2[%c0_148, %c0_149], %429 {strides = array<i32>} : memref<8x128xf32, #tpu.memory_space<vmem>>, vector<8x128xf32>,
    return
  }
}

</mosaic_0001>

<bundles_post_ra>
// kernel: tpu_custom_call.1
= control target key start
LH: loop header
LB: loop body
LE: loop exit
PB: predicated region body
PF: predicated region fallthrough
CT: control target
= control target key end

     0   :  { %7 = vsyncpa [#allocation7], 0  ;;  %s3071_s0 = inlined_call_operand.vmem [shape: bf16[64,16], index: 0, kind: input, shape index: {}]   ;;  %s3072_s1 = inlined_call_operand.hbm [shape: bf16[320,256], index: 1, kind: input, shape index: {}]   ;;  %s3073_s2 = inlined_call_operand.hbm [shape: f32[8,128], index: 2, kind: output, shape index: {}]  }
   0x1   :  { %8 = vsyncpa [#allocation8], 0  ;;  %s15_s11 = sshll.u32 %s3072_s1, 4  ;;  %s2575_s12 = smov [#allocation6]   ;;  %s16_s11 = int_to_ptr.hbm [resolvable:$true] %s15_s11 }
   0x2   :  { %s17_s13 = sshll.u32 %s2575_s12, 4  ;;  %s2576_s14 = smov 128   ;;  %s18_s13 = int_to_ptr.vmem [resolvable:$true] %s17_s13 }
   0x3   :  { %s2577_s15 = smov 8  }
   0x4   :  { %23 = dma.hbm_to_vmem [thread:$0]  %s16_s11, 5120, %s18_s13, [#allocation7], %s2576_s14, %s2576_s14, %s2577_s15  }
   0x5   :  { %2571 = dma.done.wait [#allocation7], 5120  }
   0x6   :  { %2572 = vsyncadd [#allocation7], 4294962176  ;;  %v2578_v0 = vmov 0   ;;  %v2286_v1 = vld [vmem:[#allocation6 + $0x44] sm:$0xf]  ;;  %vm69_vm0 = vcmask 130048  }
   0x7   :  { %2313 = vset.pattern.permute.xlu2 %v2578_v0  ;;  %2314 = vset.pattern.permute.xlu0 %v2578_v0  ;;  %v2124_v2 = vld [vmem:[#allocation6 + $0x48] sm:$0xf0]  ;;  %v2284_v3 = vld [vmem:[#allocation6 + $0x34] sm:$0xf]  ;;  %v2116_v5 = vld [vmem:[#allocation6 + $0x38] sm:$0xf0] }
   0x8   :  { %v2602_v4 = vor.u32 %v2286_v1, %v2124_v2  ;;  %v2282_v6 = vld [vmem:[#allocation6 + $0x24] sm:$0xf]  ;;  %v2084_v8 = vld [vmem:[#allocation6 + $0x8] sm:$0xf0]  ;;  %v2605_v9 = vor.u32 %v2284_v3, %v2116_v5  ;;  %v2122_v13 = vld [vmem:[#allocation6 + $0x40] sm:$0xf] }
   0x9   :  { %v2278_v7 = vld [vmem:[#allocation6 + $0x4] sm:$0xf]  ;;  %v2108_v10 = vld [vmem:[#allocation6 + $0x28] sm:$0xf0]  ;;  %v2287_v14 = vld [vmem:[#allocation6 + $0x44] sm:$0xf0] }
   0xa   :  { %227 = vmatpush.bf16.msra.mxu3 %v2602_v4  ;;  %v2087_v11 = vor.u32 %v2278_v7, %v2084_v8  ;;  %v2274_v12 = vld [vmem:[%s3071_s0] sm:$0xff]  ;;  %v2114_v15 = vld [vmem:[#allocation6 + $0x30] sm:$0xf]  ;;  %v2285_v16 = vld [vmem:[#allocation6 + $0x34] sm:$0xf0]  ;;  %v2610_v17 = vor.u32 %v2287_v14, %v2122_v13  ;;  %v2614_v20 = vor.u32 %v2282_v6, %v2108_v10  ;;  %s2579_s17 = smov 64  }
   0xb   :  { %v2082_v18 = vld [vmem:[#allocation6] sm:$0xf]  ;;  %v2279_v19 = vld [vmem:[#allocation6 + $0x4] sm:$0xf0]  ;;  %v2280_v21 = vld [vmem:[#allocation6 + $0x14] sm:$0xf]  ;;  %v2617_v22 = vor.u32 %v2285_v16, %v2114_v15 }
   0xc   :  { %118 = vmatpush.bf16.msra.mxu1 %v2087_v11  ;;  %214 = vmatpush.bf16.msra.mxu2 %v2610_v17  ;;  %v2083_v23 = vor.u32 %v2279_v19, %v2082_v18  ;;  %v2100_v24 = vld [vmem:[#allocation6 + $0x18] sm:$0xf0]  ;;  %v2106_v25 = vld [vmem:[#allocation6 + $0x20] sm:$0xf]  ;;  %v2283_v26 = vld [vmem:[#allocation6 + $0x24] sm:$0xf0] }
   0xd   :  { %v2623_v27 = vor.u32 %v2280_v21, %v2100_v24  ;;  %v2626_v28 = vor.u32 %v2283_v26, %v2106_v25  ;;  %v2098_v29 = vld [vmem:[#allocation6 + $0x10] sm:$0xf]  ;;  %v2281_v30 = vld [vmem:[#allocation6 + $0x14] sm:$0xf0]  ;;  %vm206_vm9 = vcmask 523264   ;;  %vm924_vm10 = vcmask 261120  }
   0xe   :  { %228 = vmatpush.bf16.msra.mxu3 %v2605_v9  ;;  %89 = vmatpush.bf16.msra.mxu0 %v2083_v23  ;;  %v2633_v31 = vor.u32 %v2281_v30, %v2098_v29  ;;  %s2581_s24 = smov [#allocation9]   ;;  %s2054_s28 = sshll.u32 %s3073_s2, 4  ;;  %s2055_s28 = int_to_ptr.hbm [resolvable:$true] %s2054_s28 }
   0xf   :  { %2092 = vmatmul.msk.bf16.vlgmr.msra.gmra.mxu1 %vm69_vm0, %v2274_v12  ;;  %s2052_s25 = sshll.u32 %s2581_s24, 4  ;;  %s2053_s25 = int_to_ptr.vmem [resolvable:$true] %s2052_s25 }
  0x10   :  { %583 = vmatpush.bf16.msrb.mxu1 %v2602_v4  ;;  %215 = vmatpush.bf16.msra.mxu2 %v2617_v22 }
  0x11   :  { %2088 = vmatmul.msk.bf16.vlgmr.msra.gmra.mxu0 %vm69_vm0, %v2274_v12 }
  0x12   :  { %570 = vmatpush.bf16.msrb.mxu0 %v2610_v17  ;;  %229 = vmatpush.bf16.msra.mxu3 %v2614_v20 }
  0x14   :  { %584 = vmatpush.bf16.msrb.mxu1 %v2605_v9  ;;  %216 = vmatpush.bf16.msra.mxu2 %v2626_v28 }
  0x16   :  { %571 = vmatpush.bf16.msrb.mxu0 %v2617_v22  ;;  %230 = vmatpush.bf16.msra.mxu3 %v2623_v27 }
  0x18   :  { %585 = vmatpush.bf16.msrb.mxu1 %v2614_v20  ;;  %217 = vmatpush.bf16.msra.mxu2 %v2633_v31 }
  0x19   :  { %231 = vmatmul.bf16.vlgmr.msra.gmra.mxu3 %v2578_v0 }
  0x1a   :  { %316 = vmatpush.bf16.msrb.mxu3 %v2602_v4  ;;  %572 = vmatpush.bf16.msrb.mxu0 %v2626_v28 }
  0x1b   :  { %218 = vmatmul.bf16.vlgmr.msra.gmra.mxu2 %v2578_v0 }
  0x1c   :  { %586 = vmatpush.bf16.msrb.mxu1 %v2623_v27  ;;  %303 = vmatpush.bf16.msrb.mxu2 %v2610_v17 }
  0x1e   :  { %317 = vmatpush.bf16.msrb.mxu3 %v2605_v9  ;;  %573 = vmatpush.bf16.msrb.mxu0 %v2633_v31 }
  0x20   :  { %761 = vmatpush.bf16.msra.mxu1 %v2602_v4  ;;  %304 = vmatpush.bf16.msrb.mxu2 %v2617_v22 }
  0x22   :  { %318 = vmatpush.bf16.msrb.mxu3 %v2614_v20  ;;  %748 = vmatpush.bf16.msra.mxu0 %v2610_v17 }
  0x24   :  { %762 = vmatpush.bf16.msra.mxu1 %v2605_v9  ;;  %305 = vmatpush.bf16.msrb.mxu2 %v2626_v28 }
  0x26   :  { %319 = vmatpush.bf16.msrb.mxu3 %v2623_v27  ;;  %749 = vmatpush.bf16.msra.mxu0 %v2617_v22 }
  0x28   :  { %763 = vmatpush.bf16.msra.mxu1 %v2614_v20  ;;  %306 = vmatpush.bf16.msrb.mxu2 %v2633_v31 }
  0x2a   :  { %405 = vmatpush.bf16.msra.mxu3 %v2602_v4  ;;  %750 = vmatpush.bf16.msra.mxu0 %v2626_v28 }
  0x2c   :  { %392 = vmatpush.bf16.msra.mxu2 %v2610_v17  ;;  %764 = vmatpush.bf16.msra.mxu1 %v2623_v27 }
  0x2e   :  { %406 = vmatpush.bf16.msra.mxu3 %v2605_v9  ;;  %751 = vmatpush.bf16.msra.mxu0 %v2633_v31 }
  0x30   :  { %393 = vmatpush.bf16.msra.mxu2 %v2617_v22 }
  0x32   :  { %407 = vmatpush.bf16.msra.mxu3 %v2614_v20 }
  0x34   :  { %394 = vmatpush.bf16.msra.mxu2 %v2626_v28 }
  0x36   :  { %408 = vmatpush.bf16.msra.mxu3 %v2623_v27 }
  0x38   :  { %395 = vmatpush.bf16.msra.mxu2 %v2633_v31 }
  0x8c   :  { %v120_v32 = vpop.f32.mrf.mxu1 }
  0x8e   :  { %v91_v39 = vpop.f32.mrf.mxu0 }
  0x94   :  { %v122_v16 = vpop.f32.mrf.mxu1 }
  0x96   :  { %v93_v26 = vpop.f32.mrf.mxu0 }
  0x9c   :  { %v232_v33 = vpop.f32.mrf.mxu3 }
  0x9d   :  { %v233_v34 = vadd.f32 %v232_v33, %v120_v32 }
  0x9e   :  { %v219_v35 = vpop.f32.mrf.mxu2 }
  0x9f   :  { %2315 = vtanh.f32 %v233_v34  ;;  %v220_v40 = vadd.f32 %v219_v35, %v91_v39  ;;  %v2129_v60 = vmul.f32 -1.442695, %v233_v34 }
  0xa1   :  { %v2128_v41 = vmul.f32 -1.442695, %v220_v40 }
  0xa3   :  { %2317 = vpow2.f32 %v2128_v41 }
  0xa4   :  { %v234_v36 = vpop.f32.mrf.mxu3 }
  0xa5   :  { %v2316_v37 = vpop.eup %2315 }
  0xa6   :  { %277 = vrot.lane.b32.xlu0 %v2316_v37, %s2579_s17  ;;  %v221_v38 = vpop.f32.mrf.mxu2 }
  0xa9   :  { %v2318_v42 = vpop.eup %2317 }
  0xaa   :  { %v242_v43 = vadd.f32 1.0, %v2318_v42 }
  0xac   :  { %2319 = vrcp.f32 %v242_v43  ;;  %vm249_vm1 = vweird.f32 %v242_v43  ;;  %v255_v48 = vand.u32 2147483648, %v242_v43  ;;  %v253_v50 = vand.u32 2147483647, %v242_v43 }
  0xae   :  { %v256_v51 = vor.u32 1.1754944e-38, %v255_v48  ;;  %vm254_vm4 = vcmp.eq.f32.partialorder %v253_v50, 8.507059e+37 }
  0xb2   :  { %v2320_v44 = vpop.eup %2319 }
  0xb3   :  { %v245_v45 = vmul.f32 %v2320_v44, %v242_v43  ;;  %vm250_vm2 = vweird.f32 %v2320_v44 }
  0xb4   :  { %vm251_vm3 = vmor %vm249_vm1, %vm250_vm2 }
  0xb5   :  { %v246_v46 = vsub.f32 1.0, %v245_v45 }
  0xb7   :  { %v247_v47 = vmul.f32 %v2320_v44, %v246_v46 }
  0xb9   :  { %v248_v49 = vadd.f32 %v2320_v44, %v247_v47 }
  0xbb   :  { %v252_v52 = vsel %vm251_vm3, %v2320_v44, %v248_v49 }
  0xbc   :  { %v257_v54 = vsel %vm254_vm4, %v256_v51, %v252_v52 }
  0xbd   :  { %v275_v56 = vmul.f32 0.0, %v257_v54 }
 0x118   :  { %v278_v53 = vpop.permute.xlu0 %277 }
 0x119   :  { %v280_v55 = vmul.f32 %v278_v53, %v257_v54  ;;  %v2275_v53 = vld [vmem:[%s3071_s0 + $0x8] sm:$0xff] }
 0x11a   :  { %2093 = vmatmul.msk.bf16.gmra.mxu1 %vm69_vm0, %v2275_v53  ;;  %2089 = vmatmul.msk.bf16.gmra.mxu0 %vm69_vm0, %v2275_v53 }
 0x11b   :  { %282 = vrot.lane.b32.xlu0 %v280_v55, %s2579_s17 }
 0x18d   :  { %v283_v57 = vpop.permute.xlu0 %282 }
 0x18e   :  { %v2667_v58 = vadd.f32 %v283_v57, %v275_v56 }
 0x190   :  { %2321 = vtanh.f32 %v2667_v58 }
 0x191   :  { %2323 = vpow2.f32 %v2129_v60 }
 0x196   :  { %v2322_v59 = vpop.eup %2321 }
 0x197   :  { %288 = vrot.lane.b32.xlu1 %v2322_v59, %s2579_s17  ;;  %v2324_v61 = vpop.eup %2323 }
 0x198   :  { %v243_v62 = vadd.f32 1.0, %v2324_v61 }
 0x19a   :  { %2325 = vrcp.f32 %v243_v62  ;;  %v270_v6 = vand.u32 2147483648, %v243_v62  ;;  %vm264_vm6 = vweird.f32 %v243_v62  ;;  %v268_v7 = vand.u32 2147483647, %v243_v62 }
 0x19c   :  { %v271_v10 = vor.u32 1.1754944e-38, %v270_v6  ;;  %vm269_vm8 = vcmp.eq.f32.partialorder %v268_v7, 8.507059e+37  ;;  %v125_v6 = vpop.f32.mrf.mxu1 }
 0x1a0   :  { %v2326_v63 = vpop.eup %2325 }
 0x1a1   :  { %v260_v1 = vmul.f32 %v2326_v63, %v243_v62  ;;  %vm265_vm5 = vweird.f32 %v2326_v63 }
 0x1a2   :  { %vm266_vm7 = vmor %vm264_vm6, %vm265_vm5 }
 0x1a3   :  { %v261_v2 = vsub.f32 1.0, %v260_v1 }
 0x1a5   :  { %v262_v3 = vmul.f32 %v2326_v63, %v261_v2 }
 0x1a7   :  { %v263_v5 = vadd.f32 %v2326_v63, %v262_v3 }
 0x1a9   :  { %v267_v8 = vsel %vm266_vm7, %v2326_v63, %v263_v5 }
 0x1aa   :  { %v272_v11 = vsel %vm269_vm8, %v271_v10, %v267_v8 }
 0x209   :  { %v289_v12 = vpop.permute.xlu1 %288 }
 0x20a   :  { %v291_v13 = vmul.f32 %v289_v12, %v272_v11 }
 0x20c   :  { %292 = vst.msk [vmem:[#allocation3] sm:$0xff] %vm206_vm9, %v291_v13  ;;  %v293_v14 = vpack.c.bf16 %v291_v13, %v291_v13 }
 0x20e   :  { %2130 = vmatmul.msk.bf16.vlgmr.msrb.gmra.mxu2 %vm206_vm9, %v293_v14  ;;  %2131 = vmatmul.msk.bf16.vlgmr.msrb.gmra.mxu3 %vm206_vm9, %v293_v14  ;;  %v96_v14 = vpop.f32.mrf.mxu0 }
 0x20f   :  { %494 = vmatpush.bf16.msrb.mxu3 %v2602_v4  ;;  %481 = vmatpush.bf16.msrb.mxu2 %v2610_v17 }
 0x213   :  { %v2676_v15 = vld [vmem:[#allocation3] sm:$0xff]  ;;  %495 = vmatpush.bf16.msrb.mxu3 %v2605_v9  ;;  %482 = vmatpush.bf16.msrb.mxu2 %v2617_v22 }
 0x214   :  { %925 = vst.msk [vmem:[#allocation4] sm:$0xff] %vm924_vm10, %v2676_v15 }
 0x217   :  { %496 = vmatpush.bf16.msrb.mxu3 %v2614_v20  ;;  %483 = vmatpush.bf16.msrb.mxu2 %v2626_v28 }
 0x21b   :  { %497 = vmatpush.bf16.msrb.mxu3 %v2623_v27  ;;  %484 = vmatpush.bf16.msrb.mxu2 %v2633_v31 }
 0x291   :  { %v308_v18 = vpop.f32.mrf.mxu2  ;;  %v321_v19 = vpop.f32.mrf.mxu3 }
 0x292   :  { %v322_v21 = vadd.f32 %v321_v19, %v122_v16  ;;  %v309_v29 = vadd.f32 %v308_v18, %v93_v26 }
 0x294   :  { %2327 = vtanh.f32 %v322_v21  ;;  %v2132_v30 = vmul.f32 -1.442695, %v309_v29  ;;  %v2133_v50 = vmul.f32 -1.442695, %v322_v21 }
 0x296   :  { %2329 = vpow2.f32 %v2132_v30 }
 0x299   :  { %v310_v23 = vpop.f32.mrf.mxu2  ;;  %v323_v24 = vpop.f32.mrf.mxu3 }
 0x29a   :  { %v2328_v25 = vpop.eup %2327 }
 0x29b   :  { %366 = vrot.lane.b32.xlu1 %v2328_v25, %s2579_s17 }
 0x29c   :  { %v2330_v32 = vpop.eup %2329 }
 0x29d   :  { %v331_v33 = vadd.f32 1.0, %v2330_v32 }
 0x29f   :  { %2331 = vrcp.f32 %v331_v33  ;;  %v344_v39 = vand.u32 2147483648, %v331_v33  ;;  %vm338_vm12 = vweird.f32 %v331_v33  ;;  %v342_v40 = vand.u32 2147483647, %v331_v33 }
 0x2a1   :  { %v345_v42 = vor.u32 1.1754944e-38, %v344_v39  ;;  %vm343_vm14 = vcmp.eq.f32.partialorder %v342_v40, 8.507059e+37 }
 0x2a5   :  { %v2332_v34 = vpop.eup %2331 }
 0x2a6   :  { %v334_v35 = vmul.f32 %v2332_v34, %v331_v33  ;;  %vm339_vm11 = vweird.f32 %v2332_v34 }
 0x2a7   :  { %vm340_vm13 = vmor %vm338_vm12, %vm339_vm11 }
 0x2a8   :  { %v335_v36 = vsub.f32 1.0, %v334_v35 }
 0x2aa   :  { %v336_v37 = vmul.f32 %v2332_v34, %v335_v36 }
 0x2ac   :  { %v337_v38 = vadd.f32 %v2332_v34, %v336_v37 }
 0x2ae   :  { %v341_v41 = vsel %vm340_vm13, %v2332_v34, %v337_v38 }
 0x2af   :  { %v346_v44 = vsel %vm343_vm14, %v345_v42, %v341_v41 }
 0x2b0   :  { %v364_v46 = vmul.f32 %v346_v44, %v2667_v58 }
 0x30d   :  { %v367_v43 = vpop.permute.xlu1 %366 }
 0x30e   :  { %v369_v45 = vmul.f32 %v367_v43, %v346_v44 }
 0x310   :  { %371 = vrot.lane.b32.xlu2 %v369_v45, %s2579_s17 }
 0x36a   :  { %v372_v47 = vpop.permute.xlu2 %371 }
 0x36b   :  { %v2689_v48 = vadd.f32 %v372_v47, %v364_v46 }
 0x36d   :  { %2333 = vtanh.f32 %v2689_v48 }
 0x36e   :  { %2335 = vpow2.f32 %v2133_v50 }
 0x373   :  { %v2334_v49 = vpop.eup %2333 }
 0x374   :  { %377 = vrot.lane.b32.xlu2 %v2334_v49, %s2579_s17  ;;  %v2336_v51 = vpop.eup %2335 }
 0x375   :  { %v332_v52 = vadd.f32 1.0, %v2336_v51 }
 0x377   :  { %2337 = vrcp.f32 %v332_v52  ;;  %v359_v59 = vand.u32 2147483648, %v332_v52  ;;  %vm353_vm1 = vweird.f32 %v332_v52  ;;  %v357_v60 = vand.u32 2147483647, %v332_v52 }
 0x379   :  { %v360_v62 = vor.u32 1.1754944e-38, %v359_v59  ;;  %vm358_vm3 = vcmp.eq.f32.partialorder %v357_v60, 8.507059e+37 }
 0x37d   :  { %v2338_v54 = vpop.eup %2337 }
 0x37e   :  { %v349_v55 = vmul.f32 %v2338_v54, %v332_v52  ;;  %vm354_vm15 = vweird.f32 %v2338_v54 }
 0x37f   :  { %vm355_vm2 = vmor %vm353_vm1, %vm354_vm15 }
 0x380   :  { %v350_v56 = vsub.f32 1.0, %v349_v55 }
 0x382   :  { %v351_v57 = vmul.f32 %v2338_v54, %v350_v56 }
 0x384   :  { %v352_v58 = vadd.f32 %v2338_v54, %v351_v57 }
 0x386   :  { %v356_v61 = vsel %vm355_vm2, %v2338_v54, %v352_v58 }
 0x387   :  { %v361_v63 = vsel %vm358_vm3, %v360_v62, %v356_v61 }
 0x3ce   :  { %v378_v1 = vpop.permute.xlu2 %377 }
 0x3cf   :  { %v380_v2 = vmul.f32 %v378_v1, %v361_v63 }
 0x3d1   :  { %381 = vst.msk [vmem:[#allocation3 + $0x8] sm:$0xff] %vm206_vm9, %v380_v2  ;;  %v382_v3 = vpack.c.bf16 %v380_v2, %v380_v2 }
 0x3d3   :  { %2134 = vmatmul.msk.bf16.vlgmr.msra.gmra.mxu2 %vm206_vm9, %v382_v3  ;;  %2135 = vmatmul.msk.bf16.vlgmr.msra.gmra.mxu3 %vm206_vm9, %v382_v3 }
 0x3d4   :  { %672 = vmatpush.bf16.msra.mxu3 %v2602_v4  ;;  %659 = vmatpush.bf16.msra.mxu2 %v2610_v17 }
 0x3d8   :  { %v2703_v5 = vld [vmem:[#allocation3 + $0x8] sm:$0xff]  ;;  %673 = vmatpush.bf16.msra.mxu3 %v2605_v9  ;;  %660 = vmatpush.bf16.msra.mxu2 %v2617_v22 }
 0x3d9   :  { %926 = vst.msk [vmem:[#allocation4 + $0x8] sm:$0xff] %vm924_vm10, %v2703_v5 }
 0x3dc   :  { %674 = vmatpush.bf16.msra.mxu3 %v2614_v20  ;;  %661 = vmatpush.bf16.msra.mxu2 %v2626_v28 }
 0x3e0   :  { %675 = vmatpush.bf16.msra.mxu3 %v2623_v27  ;;  %662 = vmatpush.bf16.msra.mxu2 %v2633_v31 }
 0x456   :  { %v397_v7 = vpop.f32.mrf.mxu2  ;;  %v410_v8 = vpop.f32.mrf.mxu3 }
 0x457   :  { %v411_v10 = vadd.f32 %v410_v8, %v125_v6  ;;  %v398_v16 = vadd.f32 %v397_v7, %v96_v14 }
 0x459   :  { %2339 = vtanh.f32 %v411_v10  ;;  %v2136_v18 = vmul.f32 -1.442695, %v398_v16  ;;  %v2137_v42 = vmul.f32 -1.442695, %v411_v10  ;;  %v2276_v16 = vld [vmem:[%s3071_s0 + $0x10] sm:$0xff] }
 0x45a   :  { %2094 = vmatmul.msk.bf16.gmra.mxu1 %vm69_vm0, %v2276_v16  ;;  %2090 = vmatmul.msk.bf16.gmra.mxu0 %vm69_vm0, %v2276_v16 }
 0x45b   :  { %2341 = vpow2.f32 %v2136_v18  ;;  %v2277_v18 = vld [vmem:[%s3071_s0 + $0x18] sm:$0xff]  ;;  %s2580_s0 = smov 96  }
 0x45e   :  { %v399_v11 = vpop.f32.mrf.mxu2  ;;  %v412_v12 = vpop.f32.mrf.mxu3 }
 0x45f   :  { %v2340_v13 = vpop.eup %2339 }
 0x460   :  { %455 = vrot.lane.b32.xlu0 %v2340_v13, %s2579_s17 }
 0x461   :  { %v2342_v19 = vpop.eup %2341 }
 0x462   :  { %v420_v21 = vadd.f32 1.0, %v2342_v19 }
 0x464   :  { %2343 = vrcp.f32 %v420_v21  ;;  %v433_v30 = vand.u32 2147483648, %v420_v21  ;;  %vm427_vm5 = vweird.f32 %v420_v21  ;;  %v431_v32 = vand.u32 2147483647, %v420_v21 }
 0x466   :  { %v434_v34 = vor.u32 1.1754944e-38, %v433_v30  ;;  %vm432_vm7 = vcmp.eq.f32.partialorder %v431_v32, 8.507059e+37 }
 0x46a   :  { %v2344_v23 = vpop.eup %2343  ;;  %2095 = vmatmul.msk.bf16.gmra.mxu1 %vm69_vm0, %v2277_v18  ;;  %2091 = vmatmul.msk.bf16.gmra.mxu0 %vm69_vm0, %v2277_v18 }
 0x46b   :  { %v423_v24 = vmul.f32 %v2344_v23, %v420_v21  ;;  %vm428_vm4 = vweird.f32 %v2344_v23 }
 0x46c   :  { %vm429_vm6 = vmor %vm427_vm5, %vm428_vm4 }
 0x46d   :  { %v424_v25 = vsub.f32 1.0, %v423_v24 }
 0x46f   :  { %v425_v26 = vmul.f32 %v2344_v23, %v424_v25 }
 0x471   :  { %v426_v29 = vadd.f32 %v2344_v23, %v425_v26 }
 0x473   :  { %v430_v33 = vsel %vm429_vm6, %v2344_v23, %v426_v29 }
 0x474   :  { %v435_v36 = vsel %vm432_vm7, %v434_v34, %v430_v33 }
 0x475   :  { %v453_v38 = vmul.f32 %v435_v36, %v2689_v48 }
 0x4d2   :  { %v456_v35 = vpop.permute.xlu0 %455 }
 0x4d3   :  { %v458_v37 = vmul.f32 %v456_v35, %v435_v36 }
 0x4d5   :  { %460 = vrot.lane.b32.xlu1 %v458_v37, %s2579_s17 }
 0x547   :  { %v461_v39 = vpop.permute.xlu1 %460 }
 0x548   :  { %v2716_v40 = vadd.f32 %v461_v39, %v453_v38 }
 0x54a   :  { %2345 = vtanh.f32 %v2716_v40 }
 0x54b   :  { %2347 = vpow2.f32 %v2137_v42 }
 0x550   :  { %v2346_v41 = vpop.eup %2345 }
 0x551   :  { %466 = vrot.lane.b32.xlu2 %v2346_v41, %s2579_s17  ;;  %v2348_v43 = vpop.eup %2347 }
 0x552   :  { %v421_v44 = vadd.f32 1.0, %v2348_v43 }
 0x554   :  { %2349 = vrcp.f32 %v421_v44  ;;  %v448_v48 = vand.u32 2147483648, %v421_v44  ;;  %vm442_vm11 = vweird.f32 %v421_v44  ;;  %v446_v51 = vand.u32 2147483647, %v421_v44 }
 0x556   :  { %v449_v53 = vor.u32 1.1754944e-38, %v448_v48  ;;  %vm447_vm13 = vcmp.eq.f32.partialorder %v446_v51, 8.507059e+37 }
 0x55a   :  { %v2350_v45 = vpop.eup %2349 }
 0x55b   :  { %v438_v46 = vmul.f32 %v2350_v45, %v421_v44  ;;  %vm443_vm8 = vweird.f32 %v2350_v45 }
 0x55c   :  { %vm444_vm12 = vmor %vm442_vm11, %vm443_vm8 }
 0x55d   :  { %v439_v47 = vsub.f32 1.0, %v438_v46 }
 0x55f   :  { %v440_v49 = vmul.f32 %v2350_v45, %v439_v47 }
 0x561   :  { %v441_v50 = vadd.f32 %v2350_v45, %v440_v49 }
 0x563   :  { %v445_v52 = vsel %vm444_vm12, %v2350_v45, %v441_v50 }
 0x564   :  { %v450_v54 = vsel %vm447_vm13, %v449_v53, %v445_v52 }
 0x5ab   :  { %v467_v55 = vpop.permute.xlu2 %466 }
 0x5ac   :  { %v469_v56 = vmul.f32 %v467_v55, %v450_v54 }
 0x5ae   :  { %470 = vst.msk [vmem:[#allocation3 + $0x10] sm:$0xff] %vm206_vm9, %v469_v56  ;;  %v471_v57 = vpack.c.bf16 %v469_v56, %v469_v56 }
 0x5b0   :  { %2138 = vmatmul.msk.bf16.vlgmr.msrb.gmra.mxu2 %vm206_vm9, %v471_v57  ;;  %2139 = vmatmul.msk.bf16.vlgmr.msrb.gmra.mxu3 %vm206_vm9, %v471_v57 }
 0x5b1   :  { %850 = vmatpush.bf16.msrb.mxu3 %v2602_v4  ;;  %837 = vmatpush.bf16.msrb.mxu2 %v2610_v17  ;;  %v127_v4 = vpop.f32.mrf.mxu1 }
 0x5b5   :  { %v2725_v58 = vld [vmem:[#allocation3 + $0x10] sm:$0xff]  ;;  %851 = vmatpush.bf16.msrb.mxu3 %v2605_v9  ;;  %838 = vmatpush.bf16.msrb.mxu2 %v2617_v22  ;;  %v98_v22 = vpop.f32.mrf.mxu0 }
 0x5b6   :  { %927 = vst.msk [vmem:[#allocation4 + $0x10] sm:$0xff] %vm924_vm10, %v2725_v58 }
 0x5b9   :  { %852 = vmatpush.bf16.msrb.mxu3 %v2614_v20  ;;  %839 = vmatpush.bf16.msrb.mxu2 %v2626_v28  ;;  %v130_v46 = vpop.f32.mrf.mxu1 }
 0x5bd   :  { %853 = vmatpush.bf16.msrb.mxu3 %v2623_v27  ;;  %840 = vmatpush.bf16.msrb.mxu2 %v2633_v31  ;;  %v101_v45 = vpop.f32.mrf.mxu0 }
 0x5c1   :  { %v2761_v49 = vpop.f32.mrf.mxu1 }
 0x5c5   :  { %v2759_v47 = vpop.f32.mrf.mxu0 }
 0x5c9   :  { %v2765_v48 = vpop.f32.mrf.mxu1 }
 0x5cd   :  { %v2763_v50 = vpop.f32.mrf.mxu0 }
 0x5d1   :  { %v2769_v52 = vpop.f32.mrf.mxu1 }
 0x5d5   :  { %v2767_v51 = vpop.f32.mrf.mxu0 }
 0x633   :  { %v486_v59 = vpop.f32.mrf.mxu2  ;;  %v499_v17 = vpop.f32.mrf.mxu3 }
 0x634   :  { %v500_v60 = vadd.f32 %v499_v17, %v127_v4  ;;  %v487_v63 = vadd.f32 %v486_v59, %v98_v22 }
 0x636   :  { %2351 = vtanh.f32 %v500_v60  ;;  %v2140_v1 = vmul.f32 -1.442695, %v487_v63  ;;  %v2141_v25 = vmul.f32 -1.442695, %v500_v60 }
 0x638   :  { %2353 = vpow2.f32 %v2140_v1 }
 0x63b   :  { %v488_v61 = vpop.f32.mrf.mxu2  ;;  %v501_v9 = vpop.f32.mrf.mxu3 }
 0x63c   :  { %v2352_v62 = vpop.eup %2351 }
 0x63d   :  { %544 = vrot.lane.b32.xlu0 %v2352_v62, %s2579_s17 }
 0x63e   :  { %v2354_v20 = vpop.eup %2353 }
 0x63f   :  { %v509_v28 = vadd.f32 1.0, %v2354_v20 }
 0x641   :  { %2355 = vrcp.f32 %v509_v28  ;;  %v522_v7 = vand.u32 2147483648, %v509_v28  ;;  %vm516_vm15 = vweird.f32 %v509_v28  ;;  %v520_v8 = vand.u32 2147483647, %v509_v28 }
 0x643   :  { %v523_v11 = vor.u32 1.1754944e-38, %v522_v7  ;;  %vm521_vm2 = vcmp.eq.f32.partialorder %v520_v8, 8.507059e+37 }
 0x647   :  { %v2356_v27 = vpop.eup %2355 }
 0x648   :  { %v512_v2 = vmul.f32 %v2356_v27, %v509_v28  ;;  %vm517_vm14 = vweird.f32 %v2356_v27 }
 0x649   :  { %vm518_vm1 = vmor %vm516_vm15, %vm517_vm14 }
 0x64a   :  { %v513_v31 = vsub.f32 1.0, %v512_v2 }
 0x64c   :  { %v514_v3 = vmul.f32 %v2356_v27, %v513_v31 }
 0x64e   :  { %v515_v6 = vadd.f32 %v2356_v27, %v514_v3 }
 0x650   :  { %v519_v10 = vsel %vm518_vm1, %v2356_v27, %v515_v6  ;;  %vm934_vm1 = vcmask 523520  }
 0x651   :  { %v524_v13 = vsel %vm521_vm2, %v523_v11, %v519_v10 }
 0x652   :  { %v542_v19 = vmul.f32 %v524_v13, %v2716_v40 }
 0x6af   :  { %v545_v12 = vpop.permute.xlu0 %544 }
 0x6b0   :  { %v547_v14 = vmul.f32 %v545_v12, %v524_v13 }
 0x6b2   :  { %549 = vrot.lane.b32.xlu1 %v547_v14, %s2579_s17 }
 0x724   :  { %v550_v21 = vpop.permute.xlu1 %549 }
 0x725   :  { %v2748_v23 = vadd.f32 %v550_v21, %v542_v19 }
 0x727   :  { %2357 = vtanh.f32 %v2748_v23 }
 0x728   :  { %2359 = vpow2.f32 %v2141_v25 }
 0x72d   :  { %v2358_v24 = vpop.eup %2357 }
 0x72e   :  { %555 = vrot.lane.b32.xlu2 %v2358_v24, %s2579_s17  ;;  %v2360_v26 = vpop.eup %2359 }
 0x72f   :  { %v510_v29 = vadd.f32 1.0, %v2360_v26 }
 0x731   :  { %2361 = vrcp.f32 %v510_v29  ;;  %v537_v36 = vand.u32 2147483648, %v510_v29  ;;  %vm531_vm3 = vweird.f32 %v510_v29  ;;  %v535_v37 = vand.u32 2147483647, %v510_v29 }
 0x733   :  { %v538_v39 = vor.u32 1.1754944e-38, %v537_v36  ;;  %vm536_vm5 = vcmp.eq.f32.partialorder %v535_v37, 8.507059e+37 }
 0x737   :  { %v2362_v30 = vpop.eup %2361 }
 0x738   :  { %v527_v32 = vmul.f32 %v2362_v30, %v510_v29  ;;  %vm532_vm0 = vweird.f32 %v2362_v30 }
 0x739   :  { %vm533_vm4 = vmor %vm531_vm3, %vm532_vm0 }
 0x73a   :  { %v528_v33 = vsub.f32 1.0, %v527_v32 }
 0x73c   :  { %v529_v34 = vmul.f32 %v2362_v30, %v528_v33 }
 0x73e   :  { %v530_v35 = vadd.f32 %v2362_v30, %v529_v34 }
 0x740   :  { %v534_v38 = vsel %vm533_vm4, %v2362_v30, %v530_v35 }
 0x741   :  { %v539_v40 = vsel %vm536_vm5, %v538_v39, %v534_v38 }
 0x788   :  { %v556_v41 = vpop.permute.xlu2 %555 }
 0x789   :  { %v558_v42 = vmul.f32 %v556_v41, %v539_v40 }
 0x78b   :  { %559 = vst.msk [vmem:[#allocation3 + $0x18] sm:$0xff] %vm206_vm9, %v558_v42  ;;  %v560_v43 = vpack.c.bf16 %v558_v42, %v558_v42 }
 0x78d   :  { %2142 = vmatmul.msk.bf16.vlgmr.msrb.gmra.mxu0 %vm206_vm9, %v560_v43  ;;  %2143 = vmatmul.msk.bf16.vlgmr.msrb.gmra.mxu1 %vm206_vm9, %v560_v43 }
 0x792   :  { %v2755_v44 = vld [vmem:[#allocation3 + $0x18] sm:$0xff] }
 0x793   :  { %928 = vst.msk [vmem:[#allocation4 + $0x18] sm:$0xff] %vm924_vm10, %v2755_v44 }
 0x80a   :  { %v575_v53 = vpop.f32.mrf.mxu0  ;;  %v588_v54 = vpop.f32.mrf.mxu1 }
 0x80b   :  { %v589_v55 = vadd.f32 %v588_v54, %v130_v46  ;;  %v576_v59 = vadd.f32 %v575_v53, %v101_v45 }
 0x80d   :  { %2363 = vtanh.f32 %v589_v55  ;;  %v2144_v17 = vmul.f32 -1.442695, %v576_v59  ;;  %v2145_v12 = vmul.f32 -1.442695, %v589_v55 }
 0x80f   :  { %2365 = vpow2.f32 %v2144_v17 }
 0x812   :  { %v577_v56 = vpop.f32.mrf.mxu0  ;;  %v590_v57 = vpop.f32.mrf.mxu1 }
 0x813   :  { %v2364_v4 = vpop.eup %2363 }
 0x814   :  { %633 = vrot.lane.b32.xlu0 %v2364_v4, %s2579_s17 }
 0x815   :  { %v2366_v60 = vpop.eup %2365 }
 0x816   :  { %v598_v61 = vadd.f32 1.0, %v2366_v60 }
 0x818   :  { %2367 = vrcp.f32 %v598_v61  ;;  %v611_v20 = vand.u32 2147483648, %v598_v61  ;;  %vm605_vm7 = vweird.f32 %v598_v61  ;;  %v609_v28 = vand.u32 2147483647, %v598_v61 }
 0x81a   :  { %v612_v2 = vor.u32 1.1754944e-38, %v611_v20  ;;  %vm610_vm11 = vcmp.eq.f32.partialorder %v609_v28, 8.507059e+37 }
 0x81e   :  { %v2368_v9 = vpop.eup %2367 }
 0x81f   :  { %v601_v62 = vmul.f32 %v2368_v9, %v598_v61  ;;  %vm606_vm6 = vweird.f32 %v2368_v9 }
 0x820   :  { %vm607_vm8 = vmor %vm605_vm7, %vm606_vm6 }
 0x821   :  { %v602_v22 = vsub.f32 1.0, %v601_v62 }
 0x823   :  { %v603_v63 = vmul.f32 %v2368_v9, %v602_v22 }
 0x825   :  { %v604_v1 = vadd.f32 %v2368_v9, %v603_v63 }
 0x827   :  { %v608_v27 = vsel %vm607_vm8, %v2368_v9, %v604_v1 }
 0x828   :  { %v613_v3 = vsel %vm610_vm11, %v612_v2, %v608_v27 }
 0x829   :  { %v631_v7 = vmul.f32 %v613_v3, %v2748_v23 }
 0x886   :  { %v634_v31 = vpop.permute.xlu0 %633 }
 0x887   :  { %v636_v6 = vmul.f32 %v634_v31, %v613_v3 }
 0x889   :  { %638 = vrot.lane.b32.xlu1 %v636_v6, %s2579_s17 }
 0x8fb   :  { %v639_v8 = vpop.permute.xlu1 %638 }
 0x8fc   :  { %v2774_v10 = vadd.f32 %v639_v8, %v631_v7 }
 0x8fe   :  { %2369 = vtanh.f32 %v2774_v10 }
 0x8ff   :  { %2371 = vpow2.f32 %v2145_v12 }
 0x904   :  { %v2370_v11 = vpop.eup %2369 }
 0x905   :  { %644 = vrot.lane.b32.xlu2 %v2370_v11, %s2579_s17  ;;  %v2372_v13 = vpop.eup %2371 }
 0x906   :  { %v599_v14 = vadd.f32 1.0, %v2372_v13 }
 0x908   :  { %2373 = vrcp.f32 %v599_v14  ;;  %v626_v23 = vand.u32 2147483648, %v599_v14  ;;  %vm620_vm13 = vweird.f32 %v599_v14  ;;  %v624_v25 = vand.u32 2147483647, %v599_v14 }
 0x90a   :  { %v627_v29 = vor.u32 1.1754944e-38, %v626_v23  ;;  %vm625_vm15 = vcmp.eq.f32.partialorder %v624_v25, 8.507059e+37 }
 0x90e   :  { %v2374_v16 = vpop.eup %2373 }
 0x90f   :  { %v616_v18 = vmul.f32 %v2374_v16, %v599_v14  ;;  %vm621_vm12 = vweird.f32 %v2374_v16 }
 0x910   :  { %vm622_vm14 = vmor %vm620_vm13, %vm621_vm12 }
 0x911   :  { %v617_v19 = vsub.f32 1.0, %v616_v18 }
 0x913   :  { %v618_v21 = vmul.f32 %v2374_v16, %v617_v19 }
 0x915   :  { %v619_v24 = vadd.f32 %v2374_v16, %v618_v21 }
 0x917   :  { %v623_v26 = vsel %vm622_vm14, %v2374_v16, %v619_v24 }
 0x918   :  { %v628_v30 = vsel %vm625_vm15, %v627_v29, %v623_v26 }
 0x95f   :  { %v645_v32 = vpop.permute.xlu2 %644 }
 0x960   :  { %v647_v33 = vmul.f32 %v645_v32, %v628_v30 }
 0x962   :  { %648 = vst.msk [vmem:[#allocation3 + $0x20] sm:$0xff] %vm206_vm9, %v647_v33  ;;  %v649_v34 = vpack.c.bf16 %v647_v33, %v647_v33 }
 0x964   :  { %2146 = vmatmul.msk.bf16.vlgmr.msra.gmra.mxu2 %vm206_vm9, %v649_v34  ;;  %2147 = vmatmul.msk.bf16.vlgmr.msra.gmra.mxu3 %vm206_vm9, %v649_v34 }
 0x969   :  { %v920_v35 = vld [vmem:[#allocation3 + $0x20] sm:$0xff] }
 0x96a   :  { %929 = vst.msk [vmem:[#allocation4 + $0x20] sm:$0xff] %vm924_vm10, %v920_v35 }
 0x96b   :  { %941 = vst.msk [vmem:[#allocation4 + $0x18] sm:$0xff] %vm934_vm1, %v920_v35 }
 0x96c   :  { %943 = vst.msk [vmem:[#allocation4 + $0x20] sm:$0xff] %vm934_vm1, %v2755_v44 }
 0x9e7   :  { %v664_v36 = vpop.f32.mrf.mxu2  ;;  %v677_v37 = vpop.f32.mrf.mxu3 }
 0x9e8   :  { %v678_v38 = vadd.f32 %v677_v37, %v2761_v49  ;;  %v665_v42 = vadd.f32 %v664_v36, %v2759_v47 }
 0x9ea   :  { %2375 = vtanh.f32 %v678_v38  ;;  %v2148_v43 = vmul.f32 -1.442695, %v665_v42  ;;  %v2149_v63 = vmul.f32 -1.442695, %v678_v38 }
 0x9ec   :  { %2377 = vpow2.f32 %v2148_v43 }
 0x9ef   :  { %v666_v39 = vpop.f32.mrf.mxu2  ;;  %v679_v40 = vpop.f32.mrf.mxu3 }
 0x9f0   :  { %v2376_v41 = vpop.eup %2375 }
 0x9f1   :  { %722 = vrot.lane.b32.xlu0 %v2376_v41, %s2579_s17 }
 0x9f2   :  { %v2378_v45 = vpop.eup %2377 }
 0x9f3   :  { %v687_v46 = vadd.f32 1.0, %v2378_v45 }
 0x9f5   :  { %2379 = vrcp.f32 %v687_v46  ;;  %v700_v49 = vand.u32 2147483648, %v687_v46  ;;  %vm694_vm0 = vweird.f32 %v687_v46  ;;  %v698_v57 = vand.u32 2147483647, %v687_v46 }
 0x9f7   :  { %v701_v59 = vor.u32 1.1754944e-38, %v700_v49  ;;  %vm699_vm4 = vcmp.eq.f32.partialorder %v698_v57, 8.507059e+37 }
 0x9fb   :  { %v2380_v53 = vpop.eup %2379 }
 0x9fc   :  { %v690_v54 = vmul.f32 %v2380_v53, %v687_v46  ;;  %vm695_vm2 = vweird.f32 %v2380_v53 }
 0x9fd   :  { %vm696_vm3 = vmor %vm694_vm0, %vm695_vm2 }
 0x9fe   :  { %v691_v44 = vsub.f32 1.0, %v690_v54 }
 0xa00   :  { %v692_v55 = vmul.f32 %v2380_v53, %v691_v44 }
 0xa02   :  { %v693_v56 = vadd.f32 %v2380_v53, %v692_v55 }
 0xa04   :  { %v697_v4 = vsel %vm696_vm3, %v2380_v53, %v693_v56 }
 0xa05   :  { %v702_v47 = vsel %vm699_vm4, %v701_v59, %v697_v4 }
 0xa06   :  { %v720_v61 = vmul.f32 %v702_v47, %v2774_v10 }
 0xa63   :  { %v723_v17 = vpop.permute.xlu0 %722 }
 0xa64   :  { %v725_v60 = vmul.f32 %v723_v17, %v702_v47 }
 0xa66   :  { %727 = vrot.lane.b32.xlu1 %v725_v60, %s2579_s17 }
 0xad8   :  { %v728_v9 = vpop.permute.xlu1 %727 }
 0xad9   :  { %v2790_v62 = vadd.f32 %v728_v9, %v720_v61 }
 0xadb   :  { %2381 = vtanh.f32 %v2790_v62 }
 0xadc   :  { %2383 = vpow2.f32 %v2149_v63 }
 0xae1   :  { %v2382_v22 = vpop.eup %2381 }
 0xae2   :  { %733 = vrot.lane.b32.xlu2 %v2382_v22, %s2579_s17  ;;  %v2384_v1 = vpop.eup %2383 }
 0xae3   :  { %v688_v20 = vadd.f32 1.0, %v2384_v1 }
 0xae5   :  { %2385 = vrcp.f32 %v688_v20  ;;  %v715_v6 = vand.u32 2147483648, %v688_v20  ;;  %vm709_vm6 = vweird.f32 %v688_v20  ;;  %v713_v7 = vand.u32 2147483647, %v688_v20 }
 0xae7   :  { %v716_v10 = vor.u32 1.1754944e-38, %v715_v6  ;;  %vm714_vm8 = vcmp.eq.f32.partialorder %v713_v7, 8.507059e+37 }
 0xaeb   :  { %v2386_v28 = vpop.eup %2385 }
 0xaec   :  { %v705_v27 = vmul.f32 %v2386_v28, %v688_v20  ;;  %vm710_vm5 = vweird.f32 %v2386_v28 }
 0xaed   :  { %vm711_vm7 = vmor %vm709_vm6, %vm710_vm5 }
 0xaee   :  { %v706_v2 = vsub.f32 1.0, %v705_v27 }
 0xaf0   :  { %v707_v31 = vmul.f32 %v2386_v28, %v706_v2 }
 0xaf2   :  { %v708_v3 = vadd.f32 %v2386_v28, %v707_v31 }
 0xaf4   :  { %v712_v8 = vsel %vm711_vm7, %v2386_v28, %v708_v3 }
 0xaf5   :  { %v717_v11 = vsel %vm714_vm8, %v716_v10, %v712_v8 }
 0xb3c   :  { %v734_v12 = vpop.permute.xlu2 %733 }
 0xb3d   :  { %v736_v13 = vmul.f32 %v734_v12, %v717_v11 }
 0xb3f   :  { %737 = vst.msk [vmem:[#allocation3 + $0x28] sm:$0xff] %vm206_vm9, %v736_v13  ;;  %v738_v14 = vpack.c.bf16 %v736_v13, %v736_v13 }
 0xb41   :  { %2150 = vmatmul.msk.bf16.vlgmr.msra.gmra.mxu0 %vm206_vm9, %v738_v14  ;;  %2151 = vmatmul.msk.bf16.vlgmr.msra.gmra.mxu1 %vm206_vm9, %v738_v14 }
 0xb46   :  { %v921_v16 = vld [vmem:[#allocation3 + $0x28] sm:$0xff] }
 0xb47   :  { %930 = vst.msk [vmem:[#allocation4 + $0x28] sm:$0xff] %vm924_vm10, %v921_v16 }
 0xb48   :  { %939 = vst.msk [vmem:[#allocation4 + $0x10] sm:$0xff] %vm934_vm1, %v921_v16 }
 0xb49   :  { %945 = vst.msk [vmem:[#allocation4 + $0x28] sm:$0xff] %vm934_vm1, %v2725_v58 }
 0xbbe   :  { %v753_v18 = vpop.f32.mrf.mxu0  ;;  %v766_v19 = vpop.f32.mrf.mxu1 }
 0xbbf   :  { %v767_v21 = vadd.f32 %v766_v19, %v2765_v48  ;;  %v754_v26 = vadd.f32 %v753_v18, %v2763_v50 }
 0xbc1   :  { %2387 = vtanh.f32 %v767_v21  ;;  %v2152_v29 = vmul.f32 -1.442695, %v754_v26  ;;  %v2153_v53 = vmul.f32 -1.442695, %v767_v21 }
 0xbc3   :  { %2389 = vpow2.f32 %v2152_v29  ;;  %v2218_v29 = vld [vmem:[#allocation6 + $0xd8] sm:$0xf0] }
 0xbc6   :  { %v755_v24 = vpop.f32.mrf.mxu0  ;;  %v768_v23 = vpop.f32.mrf.mxu1 }
 0xbc7   :  { %v2388_v25 = vpop.eup %2387  ;;  %v2302_v24 = vld [vmem:[#allocation6 + $0xe4] sm:$0xf]  ;;  %v2226_v23 = vld [vmem:[#allocation6 + $0xe8] sm:$0xf0] }
 0xbc8   :  { %811 = vrot.lane.b32.xlu0 %v2388_v25, %s2579_s17  ;;  %v2300_v25 = vld [vmem:[#allocation6 + $0xd4] sm:$0xf]  ;;  %v2821_v26 = vor.u32 %v2302_v24, %v2226_v23 }
 0xbc9   :  { %v2390_v30 = vpop.eup %2389 }
 0xbca   :  { %v776_v32 = vadd.f32 1.0, %v2390_v30  ;;  %1197 = vmatpush.bf16.msra.mxu3 %v2821_v26  ;;  %v2824_v30 = vor.u32 %v2300_v25, %v2218_v29 }
 0xbcc   :  { %2391 = vrcp.f32 %v776_v32  ;;  %v789_v48 = vand.u32 2147483648, %v776_v32  ;;  %vm783_vm12 = vweird.f32 %v776_v32  ;;  %v787_v37 = vand.u32 2147483647, %v776_v32 }
 0xbce   :  { %v790_v39 = vor.u32 1.1754944e-38, %v789_v48  ;;  %vm788_vm14 = vcmp.eq.f32.partialorder %v787_v37, 8.507059e+37  ;;  %1198 = vmatpush.bf16.msra.mxu3 %v2824_v30  ;;  %v2224_v37 = vld [vmem:[#allocation6 + $0xe0] sm:$0xf] }
 0xbd2   :  { %v2392_v33 = vpop.eup %2391 }
 0xbd3   :  { %v779_v34 = vmul.f32 %v2392_v33, %v776_v32  ;;  %vm784_vm11 = vweird.f32 %v2392_v33 }
 0xbd4   :  { %vm785_vm13 = vmor %vm783_vm12, %vm784_vm11 }
 0xbd5   :  { %v780_v58 = vsub.f32 1.0, %v779_v34 }
 0xbd7   :  { %v781_v35 = vmul.f32 %v2392_v33, %v780_v58 }
 0xbd9   :  { %v782_v36 = vadd.f32 %v2392_v33, %v781_v35 }
 0xbdb   :  { %v786_v38 = vsel %vm785_vm13, %v2392_v33, %v782_v36 }
 0xbdc   :  { %v791_v50 = vsel %vm788_vm14, %v790_v39, %v786_v38  ;;  %v2303_v38 = vld [vmem:[#allocation6 + $0xe4] sm:$0xf0]  ;;  %v2298_v39 = vld [vmem:[#allocation6 + $0xc4] sm:$0xf] }
 0xbdd   :  { %v809_v42 = vmul.f32 %v791_v50, %v2790_v62 }
 0xc3a   :  { %v812_v40 = vpop.permute.xlu0 %811 }
 0xc3b   :  { %v814_v41 = vmul.f32 %v812_v40, %v791_v50  ;;  %v2831_v40 = vor.u32 %v2303_v38, %v2224_v37  ;;  %v2210_v50 = vld [vmem:[#allocation6 + $0xc8] sm:$0xf0]  ;;  %v954_v37 = vld [vmem:[#allocation4 + $0x20] sm:$0xff] }
 0xc3d   :  { %816 = vrot.lane.b32.xlu1 %v814_v41, %s2579_s17  ;;  %v2833_v41 = vor.u32 %v2298_v39, %v2210_v50  ;;  %1184 = vmatpush.bf16.msra.mxu2 %v2831_v40 }
 0xc3f   :  { %1199 = vmatpush.bf16.msra.mxu3 %v2833_v41 }
 0xcaf   :  { %v817_v43 = vpop.permute.xlu1 %816 }
 0xcb0   :  { %v2806_v45 = vadd.f32 %v817_v43, %v809_v42  ;;  %v2294_v42 = vld [vmem:[#allocation6 + $0x84] sm:$0xf]  ;;  %v2186_v43 = vld [vmem:[#allocation6 + $0x88] sm:$0xf0] }
 0xcb2   :  { %2393 = vtanh.f32 %v2806_v45 }
 0xcb3   :  { %2395 = vpow2.f32 %v2153_v53  ;;  %v2295_v53 = vld [vmem:[#allocation6 + $0x84] sm:$0xf0] }
 0xcb8   :  { %v2394_v46 = vpop.eup %2393 }
 0xcb9   :  { %822 = vrot.lane.b32.xlu2 %v2394_v46, %s2579_s17  ;;  %v2396_v54 = vpop.eup %2395  ;;  %v2189_v46 = vor.u32 %v2294_v42, %v2186_v43 }
 0xcba   :  { %v777_v44 = vadd.f32 1.0, %v2396_v54  ;;  %v2216_v54 = vld [vmem:[#allocation6 + $0xd0] sm:$0xf] }
 0xcbb   :  { %1055 = vmatpush.bf16.msrb.mxu1 %v2189_v46 }
 0xcbc   :  { %2397 = vrcp.f32 %v777_v44  ;;  %v804_v59 = vand.u32 2147483648, %v777_v44  ;;  %vm798_vm2 = vweird.f32 %v777_v44  ;;  %v802_v17 = vand.u32 2147483647, %v777_v44 }
 0xcbe   :  { %v805_v60 = vor.u32 1.1754944e-38, %v804_v59  ;;  %vm803_vm3 = vcmp.eq.f32.partialorder %v802_v17, 8.507059e+37  ;;  %v2292_v59 = vld [vmem:[#allocation6 + $0x74] sm:$0xf]  ;;  %v2178_v17 = vld [vmem:[#allocation6 + $0x78] sm:$0xf0] }
 0xcc2   :  { %v2398_v55 = vpop.eup %2397 }
 0xcc3   :  { %v794_v56 = vmul.f32 %v2398_v55, %v777_v44  ;;  %vm799_vm15 = vweird.f32 %v2398_v55  ;;  %v2301_v44 = vld [vmem:[#allocation6 + $0xd4] sm:$0xf0] }
 0xcc4   :  { %vm800_vm0 = vmor %vm798_vm2, %vm799_vm15 }
 0xcc5   :  { %v795_v49 = vsub.f32 1.0, %v794_v56  ;;  %v2838_v56 = vor.u32 %v2301_v44, %v2216_v54  ;;  %v1080_v54 = vld [vmem:[#allocation6 + $0x90] sm:$0x11] }
 0xcc6   :  { %v1081_v44 = vunpack.c.l.bf16 %v1080_v54 }
 0xcc7   :  { %v796_v57 = vmul.f32 %v2398_v55, %v795_v49  ;;  %v2296_v49 = vld [vmem:[#allocation6 + $0xb4] sm:$0xf]  ;;  %1185 = vmatpush.bf16.msra.mxu2 %v2838_v56 }
 0xcc9   :  { %v797_v4 = vadd.f32 %v2398_v55, %v796_v57  ;;  %v2202_v57 = vld [vmem:[#allocation6 + $0xb8] sm:$0xf0] }
 0xccb   :  { %v801_v47 = vsel %vm800_vm0, %v2398_v55, %v797_v4  ;;  %v2840_v4 = vor.u32 %v2296_v49, %v2202_v57  ;;  %v1086_v49 = vperm.slane %v1081_v44, 0 }
 0xccc   :  { %v806_v61 = vsel %vm803_vm3, %v805_v60, %v801_v47  ;;  %v2176_v47 = vld [vmem:[#allocation6 + $0x70] sm:$0xf]  ;;  %v2181_v60 = vor.u32 %v2292_v59, %v2178_v17 }
 0xccd   :  { %1200 = vmatpush.bf16.msra.mxu3 %v2840_v4 }
 0xcce   :  { %1056 = vmatpush.bf16.msrb.mxu1 %v2181_v60 }
 0xd13   :  { %v823_v9 = vpop.permute.xlu2 %822 }
 0xd14   :  { %v825_v62 = vmul.f32 %v823_v9, %v806_v61  ;;  %v2293_v61 = vld [vmem:[#allocation6 + $0x74] sm:$0xf0]  ;;  %v2208_v9 = vld [vmem:[#allocation6 + $0xc0] sm:$0xf] }
 0xd16   :  { %826 = vst.msk [vmem:[#allocation3 + $0x30] sm:$0xff] %vm206_vm9, %v825_v62  ;;  %v827_v22 = vpack.c.bf16 %v825_v62, %v825_v62  ;;  %v2299_v62 = vld [vmem:[#allocation6 + $0xc4] sm:$0xf0] }
 0xd18   :  { %2154 = vmatmul.msk.bf16.vlgmr.msrb.gmra.mxu2 %vm206_vm9, %v827_v22  ;;  %2155 = vmatmul.msk.bf16.vlgmr.msrb.gmra.mxu3 %vm206_vm9, %v827_v22 }
 0xd19   :  { %1285 = vmatpush.bf16.msrb.mxu3 %v2821_v26 }
 0xd1d   :  { %v922_v63 = vld [vmem:[#allocation3 + $0x30] sm:$0xff]  ;;  %1286 = vmatpush.bf16.msrb.mxu3 %v2824_v30 }
 0xd1e   :  { %931 = vst.msk [vmem:[#allocation4 + $0x30] sm:$0xff] %vm924_vm10, %v922_v63 }
 0xd1f   :  { %937 = vst.msk [vmem:[#allocation4 + $0x8] sm:$0xff] %vm934_vm1, %v922_v63  ;;  %v2177_v63 = vor.u32 %v2293_v61, %v2176_v47 }
 0xd20   :  { %947 = vst.msk [vmem:[#allocation4 + $0x30] sm:$0xff] %vm934_vm1, %v2703_v5 }
 0xd21   :  { %1287 = vmatpush.bf16.msrb.mxu3 %v2833_v41 }
 0xd25   :  { %1288 = vmatpush.bf16.msrb.mxu3 %v2840_v4 }
 0xd27   :  { %v956_v50 = vld [vmem:[#allocation4 + $0x30] sm:$0xff] }
 0xd28   :  { %1201 = vmatmul.bf16.vlgmr.msra.gmra.mxu3 %v2578_v0 }
 0xd29   :  { %1373 = vmatpush.bf16.msra.mxu3 %v2821_v26 }
 0xd2d   :  { %1374 = vmatpush.bf16.msra.mxu3 %v2824_v30 }
 0xd31   :  { %1375 = vmatpush.bf16.msra.mxu3 %v2833_v41 }
 0xd35   :  { %1376 = vmatpush.bf16.msra.mxu3 %v2840_v4 }
 0xd9b   :  { %v842_v1 = vpop.f32.mrf.mxu2  ;;  %v855_v20 = vpop.f32.mrf.mxu3 }
 0xd9c   :  { %v856_v28 = vadd.f32 %v855_v20, %v2769_v52  ;;  %v843_v3 = vadd.f32 %v842_v1, %v2767_v51  ;;  %v2844_v1 = vor.u32 %v2299_v62, %v2208_v9  ;;  %v2290_v20 = vld [vmem:[#allocation6 + $0x64] sm:$0xf] }
 0xd9e   :  { %2399 = vtanh.f32 %v856_v28  ;;  %v2156_v6 = vmul.f32 -1.442695, %v843_v3  ;;  %v2157_v35 = vmul.f32 -1.442695, %v856_v28  ;;  %v2170_v28 = vld [vmem:[#allocation6 + $0x68] sm:$0xf0]  ;;  %1186 = vmatpush.bf16.msra.mxu2 %v2844_v1 }
 0xd9f   :  { %v2291_v3 = vld [vmem:[#allocation6 + $0x64] sm:$0xf0] }
 0xda0   :  { %2401 = vpow2.f32 %v2156_v6  ;;  %v2200_v6 = vld [vmem:[#allocation6 + $0xb0] sm:$0xf] }
 0xda3   :  { %v844_v27 = vpop.f32.mrf.mxu2  ;;  %v857_v2 = vpop.f32.mrf.mxu3 }
 0xda4   :  { %v2400_v31 = vpop.eup %2399  ;;  %v2168_v27 = vld [vmem:[#allocation6 + $0x60] sm:$0xf] }
 0xda5   :  { %900 = vrot.lane.b32.xlu0 %v2400_v31, %s2579_s17  ;;  %v2173_v31 = vor.u32 %v2290_v20, %v2170_v28 }
 0xda6   :  { %v2402_v7 = vpop.eup %2401 }
 0xda7   :  { %v865_v8 = vadd.f32 1.0, %v2402_v7  ;;  %v2297_v7 = vld [vmem:[#allocation6 + $0xb4] sm:$0xf0]  ;;  %1057 = vmatpush.bf16.msrb.mxu1 %v2173_v31 }
 0xda9   :  { %2403 = vrcp.f32 %v865_v8  ;;  %v878_v52 = vand.u32 2147483648, %v865_v8  ;;  %vm872_vm5 = vweird.f32 %v865_v8  ;;  %v876_v14 = vand.u32 2147483647, %v865_v8 }
 0xdab   :  { %v879_v18 = vor.u32 1.1754944e-38, %v878_v52  ;;  %vm877_vm7 = vcmp.eq.f32.partialorder %v876_v14, 8.507059e+37  ;;  %v2289_v52 = vld [vmem:[#allocation6 + $0x54] sm:$0xf0]  ;;  %v1202_v43 = vpop.f32.mrf.mxu3 }
 0xdaf   :  { %v2404_v10 = vpop.eup %2403 }
 0xdb0   :  { %v868_v11 = vmul.f32 %v2404_v10, %v865_v8  ;;  %vm873_vm4 = vweird.f32 %v2404_v10  ;;  %v2169_v8 = vor.u32 %v2291_v3, %v2168_v27  ;;  %v2910_v27 = vld [vmem:[#allocation6 + $0xa0] sm:$0x11] }
 0xdb1   :  { %vm874_vm6 = vmor %vm872_vm5, %vm873_vm4 }
 0xdb2   :  { %v869_v5 = vsub.f32 1.0, %v868_v11  ;;  %v2288_v11 = vld [vmem:[#allocation6 + $0x54] sm:$0xf] }
 0xdb3   :  { %v1204_v46 = vpop.f32.mrf.mxu3 }
 0xdb4   :  { %v870_v12 = vmul.f32 %v2404_v10, %v869_v5  ;;  %v2162_v5 = vld [vmem:[#allocation6 + $0x58] sm:$0xf0] }
 0xdb6   :  { %v871_v13 = vadd.f32 %v2404_v10, %v870_v12  ;;  %v2160_v12 = vld [vmem:[#allocation6 + $0x50] sm:$0xf] }
 0xdb7   :  { %v2161_v14 = vor.u32 %v2289_v52, %v2160_v12 }
 0xdb8   :  { %v875_v16 = vsel %vm874_vm6, %v2404_v10, %v871_v13  ;;  %v2850_v10 = vor.u32 %v2297_v7, %v2200_v6  ;;  %v2165_v13 = vor.u32 %v2288_v11, %v2162_v5 }
 0xdb9   :  { %v880_v51 = vsel %vm877_vm7, %v879_v18, %v875_v16 }
 0xdba   :  { %v898_v32 = vmul.f32 %v880_v51, %v2806_v45  ;;  %v2184_v45 = vld [vmem:[#allocation6 + $0x80] sm:$0xf]  ;;  %1187 = vmatpush.bf16.msra.mxu2 %v2850_v10  ;;  %1058 = vmatpush.bf16.msrb.mxu1 %v2165_v13 }
 0xdbb   :  { %v2185_v55 = vor.u32 %v2295_v53, %v2184_v45 }
 0xdbd   :  { %1026 = vmatpush.bf16.msrb.mxu0 %v2185_v55  ;;  %1188 = vmatmul.bf16.vlgmr.msra.gmra.mxu2 %v2578_v0  ;;  %v1082_v55 = vunpack.c.h.bf16 %v1080_v54 }
 0xdbe   :  { %1272 = vmatpush.bf16.msrb.mxu2 %v2831_v40  ;;  %1549 = vmatpush.bf16.msra.mxu1 %v2821_v26 }
 0xdbf   :  { %v1087_v57 = vperm.slane %v1082_v55, 0 }
 0xdc1   :  { %1027 = vmatpush.bf16.msrb.mxu0 %v2177_v63 }
 0xdc2   :  { %1273 = vmatpush.bf16.msrb.mxu2 %v2838_v56  ;;  %1550 = vmatpush.bf16.msra.mxu1 %v2824_v30 }
 0xdc5   :  { %1028 = vmatpush.bf16.msrb.mxu0 %v2169_v8  ;;  %v1085_v8 = vunpack.c.h.bf16 %v2910_v27 }
 0xdc6   :  { %1274 = vmatpush.bf16.msrb.mxu2 %v2844_v1  ;;  %1551 = vmatpush.bf16.msra.mxu1 %v2833_v41 }
 0xdc7   :  { %v1093_v13 = vadd.f32 %v1085_v8, %v1082_v55 }
 0xdc9   :  { %1029 = vmatpush.bf16.msrb.mxu0 %v2161_v14  ;;  %v2929_v52 = vperm.slane %v1093_v13, 0 }
 0xdca   :  { %1275 = vmatpush.bf16.msrb.mxu2 %v2850_v10  ;;  %1552 = vmatpush.bf16.msra.mxu1 %v2840_v4 }
 0xdcd   :  { %1536 = vmatpush.bf16.msra.mxu0 %v2831_v40 }
 0xdce   :  { %1360 = vmatpush.bf16.msra.mxu2 %v2831_v40 }
 0xdd1   :  { %1537 = vmatpush.bf16.msra.mxu0 %v2838_v56 }
 0xdd2   :  { %1361 = vmatpush.bf16.msra.mxu2 %v2838_v56 }
 0xdd5   :  { %1538 = vmatpush.bf16.msra.mxu0 %v2844_v1 }
 0xdd6   :  { %1362 = vmatpush.bf16.msra.mxu2 %v2844_v1 }
 0xdd9   :  { %1539 = vmatpush.bf16.msra.mxu0 %v2850_v10 }
 0xdda   :  { %1363 = vmatpush.bf16.msra.mxu2 %v2850_v10 }
 0xe17   :  { %v901_v19 = vpop.permute.xlu0 %900 }
 0xe18   :  { %v903_v21 = vmul.f32 %v901_v19, %v880_v51 }
 0xe1a   :  { %905 = vrot.lane.b32.xlu1 %v903_v21, %s2579_s17 }
 0xe40   :  { %v1189_v45 = vpop.f32.mrf.mxu2 }
 0xe48   :  { %v1191_v53 = vpop.f32.mrf.mxu2 }
 0xe8c   :  { %v906_v33 = vpop.permute.xlu1 %905 }
 0xe8d   :  { %v908_v34 = vadd.f32 %v906_v33, %v898_v32 }
 0xe8f   :  { %2405 = vtanh.f32 %v908_v34  ;;  %v951_v34 = vld [vmem:[#allocation4 + $0x8] sm:$0xff] }
 0xe90   :  { %2407 = vpow2.f32 %v2157_v35  ;;  %v953_v35 = vld [vmem:[#allocation4 + $0x18] sm:$0xff] }
 0xe95   :  { %v2406_v58 = vpop.eup %2405 }
 0xe96   :  { %911 = vrot.lane.b32.xlu2 %v2406_v58, %s2579_s17  ;;  %v2408_v36 = vpop.eup %2407 }
 0xe97   :  { %v2829_v48 = vadd.f32 1.0, %v2408_v36 }
 0xe99   :  { %2409 = vrcp.f32 %v2829_v48  ;;  %v893_v0 = vand.u32 2147483648, %v2829_v48  ;;  %vm887_vm11 = vweird.f32 %v2829_v48  ;;  %v891_v51 = vand.u32 2147483647, %v2829_v48 }
 0xe9b   :  { %v894_v24 = vor.u32 1.1754944e-38, %v893_v0  ;;  %vm892_vm13 = vcmp.eq.f32.partialorder %v891_v51, 8.507059e+37 }
 0xe9f   :  { %v2410_v22 = vpop.eup %2409 }
 0xea0   :  { %v883_v2 = vmul.f32 %v2410_v22, %v2829_v48  ;;  %vm888_vm8 = vweird.f32 %v2410_v22  ;;  %v955_v48 = vld [vmem:[#allocation4 + $0x28] sm:$0xff] }
 0xea1   :  { %vm889_vm12 = vmor %vm887_vm11, %vm888_vm8  ;;  %v960_v38 = vpack.c.bf16 %v955_v48, %v954_v37 }
 0xea2   :  { %v884_v16 = vsub.f32 1.0, %v883_v2  ;;  %v1084_v2 = vunpack.c.l.bf16 %v2910_v27 }
 0xea4   :  { %v885_v18 = vmul.f32 %v2410_v22, %v884_v16  ;;  %v1092_v6 = vadd.f32 %v1084_v2, %v1081_v44 }
 0xea6   :  { %v886_v19 = vadd.f32 %v2410_v22, %v885_v18  ;;  %v2919_v7 = vperm.slane %v1092_v6, 0 }
 0xea8   :  { %v890_v21 = vsel %vm889_vm12, %v2410_v22, %v886_v19 }
 0xea9   :  { %v895_v23 = vsel %vm892_vm13, %v894_v24, %v890_v21 }
 0xef0   :  { %v912_v25 = vpop.permute.xlu2 %911 }
 0xef1   :  { %v914_v29 = vmul.f32 %v912_v25, %v895_v23 }
 0xef3   :  { %915 = vst.msk [vmem:[#allocation3 + $0x38] sm:$0xff] %vm206_vm9, %v914_v29 }
 0xefa   :  { %v923_v32 = vld [vmem:[#allocation3 + $0x38] sm:$0xff] }
 0xefb   :  { %932 = vst.msk [vmem:[#allocation4 + $0x38] sm:$0xff] %vm924_vm10, %v923_v32 }
 0xefc   :  { %935 = vst.msk [vmem:[#allocation4] sm:$0xff] %vm934_vm1, %v923_v32 }
 0xefd   :  { %949 = vst.msk [vmem:[#allocation4 + $0x38] sm:$0xff] %vm934_vm1, %v2676_v15  ;;  %v952_v15 = vld [vmem:[#allocation4 + $0x10] sm:$0xff] }
 0xefe   :  { %v959_v36 = vpack.c.bf16 %v953_v35, %v952_v15 }
 0xf03   :  { %v950_v33 = vld [vmem:[#allocation4] sm:$0xff] }
 0xf04   :  { %v958_v58 = vpack.c.bf16 %v951_v34, %v950_v33  ;;  %v957_v39 = vld [vmem:[#allocation4 + $0x38] sm:$0xff] }
 0xf05   :  { %v961_v42 = vpack.c.bf16 %v957_v39, %v956_v50 }
 0xf06   :  { %2190 = vmatmul.msk.bf16.vlgmr.msrb.gmra.mxu0 %vm206_vm9, %v958_v58  ;;  %2194 = vmatmul.msk.bf16.vlgmr.msrb.gmra.mxu1 %vm206_vm9, %v958_v58 }
 0xf07   :  { %1725 = vmatpush.bf16.msrb.mxu1 %v2821_v26  ;;  %1712 = vmatpush.bf16.msrb.mxu0 %v2831_v40 }
 0xf0b   :  { %1726 = vmatpush.bf16.msrb.mxu1 %v2824_v30  ;;  %1713 = vmatpush.bf16.msrb.mxu0 %v2838_v56 }
 0xf0f   :  { %1727 = vmatpush.bf16.msrb.mxu1 %v2833_v41  ;;  %1714 = vmatpush.bf16.msrb.mxu0 %v2844_v1 }
 0xf13   :  { %1728 = vmatpush.bf16.msrb.mxu1 %v2840_v4  ;;  %1715 = vmatpush.bf16.msrb.mxu0 %v2850_v10 }
 0xf16   :  { %2191 = vmatmul.msk.bf16.gmra.mxu0 %vm206_vm9, %v959_v36  ;;  %2195 = vmatmul.msk.bf16.gmra.mxu1 %vm206_vm9, %v959_v36 }
 0xf26   :  { %2192 = vmatmul.msk.bf16.gmra.mxu0 %vm206_vm9, %v960_v38  ;;  %2196 = vmatmul.msk.bf16.gmra.mxu1 %vm206_vm9, %v960_v38 }
 0xf36   :  { %2193 = vmatmul.msk.bf16.gmra.mxu0 %vm206_vm9, %v961_v42  ;;  %2197 = vmatmul.msk.bf16.gmra.mxu1 %vm206_vm9, %v961_v42 }
 0xf83   :  { %v1031_v59 = vpop.f32.mrf.mxu0  ;;  %v1060_v17 = vpop.f32.mrf.mxu1 }
 0xf84   :  { %v1088_v47 = vadd.f32 %v1086_v49, %v1031_v59  ;;  %v1089_v60 = vadd.f32 %v1087_v57, %v1060_v17 }
 0xf86   :  { %v1203_v61 = vadd.f32 %v1202_v43, %v1089_v60  ;;  %v1190_v9 = vadd.f32 %v1189_v45, %v1088_v47 }
 0xf88   :  { %2411 = vtanh.f32 %v1203_v61  ;;  %v2230_v23 = vmul.f32 -1.442695, %v1190_v9  ;;  %v2231_v53 = vmul.f32 -1.442695, %v1203_v61 }
 0xf8a   :  { %2413 = vpow2.f32 %v2230_v23 }
 0xf8b   :  { %v2901_v62 = vpop.f32.mrf.mxu0  ;;  %v2903_v22 = vpop.f32.mrf.mxu1 }
 0xf8e   :  { %v2412_v63 = vpop.eup %2411 }
 0xf8f   :  { %1247 = vrot.lane.b32.xlu0 %v2412_v63, %s2579_s17 }
 0xf90   :  { %v2414_v25 = vpop.eup %2413 }
 0xf91   :  { %v1212_v29 = vadd.f32 1.0, %v2414_v25 }
 0xf93   :  { %v2906_v20 = vpop.f32.mrf.mxu0  ;;  %v2908_v28 = vpop.f32.mrf.mxu1  ;;  %2415 = vrcp.f32 %v1212_v29  ;;  %v1225_v35 = vand.u32 2147483648, %v1212_v29  ;;  %vm1219_vm14 = vweird.f32 %v1212_v29  ;;  %v1223_v36 = vand.u32 2147483647, %v1212_v29 }
 0xf95   :  { %v1226_v37 = vor.u32 1.1754944e-38, %v1225_v35  ;;  %vm1224_vm2 = vcmp.eq.f32.partialorder %v1223_v36, 8.507059e+37 }
 0xf99   :  { %v2416_v32 = vpop.eup %2415 }
 0xf9a   :  { %v1215_v33 = vmul.f32 %v2416_v32, %v1212_v29  ;;  %vm1220_vm1 = vweird.f32 %v2416_v32 }
 0xf9b   :  { %v2913_v31 = vpop.f32.mrf.mxu0  ;;  %v2915_v3 = vpop.f32.mrf.mxu1  ;;  %vm1221_vm15 = vmor %vm1219_vm14, %vm1220_vm1 }
 0xf9c   :  { %v1216_v34 = vsub.f32 1.0, %v1215_v33 }
 0xf9e   :  { %v1217_v58 = vmul.f32 %v2416_v32, %v1216_v34 }
 0xfa0   :  { %v1218_v15 = vadd.f32 %v2416_v32, %v1217_v58 }
 0xfa2   :  { %v1222_v48 = vsel %vm1221_vm15, %v2416_v32, %v1218_v15 }
 0xfa3   :  { %v1041_v11 = vpop.f32.mrf.mxu0  ;;  %v2922_v5 = vpop.f32.mrf.mxu1  ;;  %v1227_v39 = vsel %vm1224_vm2, %v1226_v37, %v1222_v48 }
 0xfa4   :  { %v2925_v12 = vadd.f32 %v2919_v7, %v1041_v11  ;;  %v1245_v42 = vmul.f32 0.0, %v1227_v39 }
 0xfab   :  { %v1043_v14 = vpop.f32.mrf.mxu0  ;;  %v1072_v16 = vpop.f32.mrf.mxu1 }
 0xfac   :  { %v2932_v18 = vadd.f32 %v2919_v7, %v1043_v14  ;;  %v2935_v19 = vadd.f32 %v2929_v52, %v1072_v16  ;;  %v1096_v14 = vadd.f32 %v2919_v7, %v2901_v62  ;;  %v1097_v16 = vadd.f32 %v2929_v52, %v2903_v22 }
 0xfb3   :  { %v1046_v0 = vpop.f32.mrf.mxu0  ;;  %v1075_v51 = vpop.f32.mrf.mxu1 }
 0xfb4   :  { %v2938_v21 = vadd.f32 %v2919_v7, %v1046_v0  ;;  %v2941_v24 = vadd.f32 %v2929_v52, %v1075_v51 }
0x1001   :  { %v1248_v38 = vpop.permute.xlu0 %1247 }
0x1002   :  { %v1250_v50 = vmul.f32 %v1248_v38, %v1227_v39 }
0x1004   :  { %1252 = vrot.lane.b32.xlu1 %v1250_v50, %s2579_s17 }
0x1076   :  { %v1253_v43 = vpop.permute.xlu1 %1252 }
0x1077   :  { %v2944_v45 = vadd.f32 %v1253_v43, %v1245_v42 }
0x1079   :  { %2417 = vtanh.f32 %v2944_v45 }
0x107a   :  { %2419 = vpow2.f32 %v2231_v53 }
0x107f   :  { %v2418_v46 = vpop.eup %2417 }
0x1080   :  { %1258 = vrot.lane.b32.xlu2 %v2418_v46, %s2579_s17  ;;  %v2420_v54 = vpop.eup %2419 }
0x1081   :  { %v1213_v44 = vadd.f32 1.0, %v2420_v54 }
0x1083   :  { %2421 = vrcp.f32 %v1213_v44  ;;  %v1240_v47 = vand.u32 2147483648, %v1213_v44  ;;  %vm1234_vm3 = vweird.f32 %v1213_v44  ;;  %v1238_v60 = vand.u32 2147483647, %v1213_v44 }
0x1085   :  { %v1241_v63 = vor.u32 1.1754944e-38, %v1240_v47  ;;  %vm1239_vm5 = vcmp.eq.f32.partialorder %v1238_v60, 8.507059e+37 }
0x1089   :  { %v2422_v55 = vpop.eup %2421 }
0x108a   :  { %v1230_v49 = vmul.f32 %v2422_v55, %v1213_v44  ;;  %vm1235_vm0 = vweird.f32 %v2422_v55 }
0x108b   :  { %vm1236_vm4 = vmor %vm1234_vm3, %vm1235_vm0 }
0x108c   :  { %v1231_v57 = vsub.f32 1.0, %v1230_v49 }
0x108e   :  { %v1232_v59 = vmul.f32 %v2422_v55, %v1231_v57 }
0x1090   :  { %v1233_v17 = vadd.f32 %v2422_v55, %v1232_v59 }
0x1092   :  { %v1237_v9 = vsel %vm1236_vm4, %v2422_v55, %v1233_v17 }
0x1093   :  { %v1242_v6 = vsel %vm1239_vm5, %v1241_v63, %v1237_v9 }
0x10da   :  { %v1259_v11 = vpop.permute.xlu2 %1258 }
0x10db   :  { %v1261_v61 = vmul.f32 %v1259_v11, %v1242_v6 }
0x10dd   :  { %v1262_v13 = vpack.c.bf16 %v1261_v61, %v1261_v61 }
0x10df   :  { %2232 = vmatmul.msk.bf16.vlgmr.msrb.gmra.mxu2 %vm206_vm9, %v1262_v13  ;;  %2233 = vmatmul.msk.bf16.vlgmr.msrb.gmra.mxu3 %vm206_vm9, %v1262_v13 }
0x10e0   :  { %1461 = vmatpush.bf16.msrb.mxu3 %v2821_v26  ;;  %1448 = vmatpush.bf16.msrb.mxu2 %v2831_v40 }
0x10e4   :  { %1462 = vmatpush.bf16.msrb.mxu3 %v2824_v30  ;;  %1449 = vmatpush.bf16.msrb.mxu2 %v2838_v56 }
0x10e8   :  { %1463 = vmatpush.bf16.msrb.mxu3 %v2833_v41  ;;  %1450 = vmatpush.bf16.msrb.mxu2 %v2844_v1 }
0x10ec   :  { %1464 = vmatpush.bf16.msrb.mxu3 %v2840_v4  ;;  %1451 = vmatpush.bf16.msrb.mxu2 %v2850_v10 }
0x1162   :  { %v1277_v0 = vpop.f32.mrf.mxu2  ;;  %v1290_v51 = vpop.f32.mrf.mxu3 }
0x1163   :  { %v1278_v23 = vadd.f32 %v1277_v0, %v1096_v14  ;;  %v1291_v25 = vadd.f32 %v1290_v51, %v1097_v16  ;;  %v1098_v51 = vadd.f32 %v2919_v7, %v2906_v20 }
0x1165   :  { %2423 = vtanh.f32 %v1291_v25  ;;  %v2234_v34 = vmul.f32 -1.442695, %v1278_v23  ;;  %v2235_v49 = vmul.f32 -1.442695, %v1291_v25  ;;  %v1099_v23 = vadd.f32 %v2929_v52, %v2908_v28 }
0x1167   :  { %2425 = vpow2.f32 %v2234_v34 }
0x116a   :  { %v1279_v29 = vpop.f32.mrf.mxu2  ;;  %v1292_v32 = vpop.f32.mrf.mxu3 }
0x116b   :  { %v2424_v33 = vpop.eup %2423 }
0x116c   :  { %1335 = vrot.lane.b32.xlu0 %v2424_v33, %s2579_s17 }
0x116d   :  { %v2426_v58 = vpop.eup %2425 }
0x116e   :  { %v1300_v15 = vadd.f32 1.0, %v2426_v58 }
0x1170   :  { %2427 = vrcp.f32 %v1300_v15  ;;  %v1313_v37 = vand.u32 2147483648, %v1300_v15  ;;  %vm1307_vm7 = vweird.f32 %v1300_v15  ;;  %v1311_v38 = vand.u32 2147483647, %v1300_v15 }
0x1172   :  { %v1314_v50 = vor.u32 1.1754944e-38, %v1313_v37  ;;  %vm1312_vm11 = vcmp.eq.f32.partialorder %v1311_v38, 8.507059e+37 }
0x1176   :  { %v2428_v35 = vpop.eup %2427 }
0x1177   :  { %v1303_v62 = vmul.f32 %v2428_v35, %v1300_v15  ;;  %vm1308_vm6 = vweird.f32 %v2428_v35 }
0x1178   :  { %vm1309_vm8 = vmor %vm1307_vm7, %vm1308_vm6 }
0x1179   :  { %v1304_v36 = vsub.f32 1.0, %v1303_v62 }
0x117b   :  { %v1305_v48 = vmul.f32 %v2428_v35, %v1304_v36 }
0x117d   :  { %v1306_v22 = vadd.f32 %v2428_v35, %v1305_v48 }
0x117f   :  { %v1310_v39 = vsel %vm1309_vm8, %v2428_v35, %v1306_v22 }
0x1180   :  { %v1315_v43 = vsel %vm1312_vm11, %v1314_v50, %v1310_v39 }
0x1181   :  { %v1333_v53 = vmul.f32 %v1315_v43, %v2944_v45 }
0x11de   :  { %v1336_v42 = vpop.permute.xlu0 %1335 }
0x11df   :  { %v1338_v46 = vmul.f32 %v1336_v42, %v1315_v43 }
0x11e1   :  { %1340 = vrot.lane.b32.xlu1 %v1338_v46, %s2579_s17 }
0x1253   :  { %v1341_v54 = vpop.permute.xlu1 %1340 }
0x1254   :  { %v2965_v44 = vadd.f32 %v1341_v54, %v1333_v53 }
0x1256   :  { %2429 = vtanh.f32 %v2965_v44 }
0x1257   :  { %2431 = vpow2.f32 %v2235_v49 }
0x125c   :  { %v2430_v55 = vpop.eup %2429 }
0x125d   :  { %1346 = vrot.lane.b32.xlu2 %v2430_v55, %s2579_s17  ;;  %v2432_v57 = vpop.eup %2431 }
0x125e   :  { %v1301_v59 = vadd.f32 1.0, %v2432_v57 }
0x1260   :  { %2433 = vrcp.f32 %v1301_v59  ;;  %v1328_v45 = vand.u32 2147483648, %v1301_v59  ;;  %vm1322_vm13 = vweird.f32 %v1301_v59  ;;  %v1326_v6 = vand.u32 2147483647, %v1301_v59 }
0x1262   :  { %v1329_v61 = vor.u32 1.1754944e-38, %v1328_v45  ;;  %vm1327_vm14 = vcmp.eq.f32.partialorder %v1326_v6, 8.507059e+37 }
0x1266   :  { %v2434_v17 = vpop.eup %2433 }
0x1267   :  { %v1318_v47 = vmul.f32 %v2434_v17, %v1301_v59  ;;  %vm1323_vm12 = vweird.f32 %v2434_v17 }
0x1268   :  { %vm1324_vm1 = vmor %vm1322_vm13, %vm1323_vm12 }
0x1269   :  { %v1319_v60 = vsub.f32 1.0, %v1318_v47 }
0x126b   :  { %v1320_v9 = vmul.f32 %v2434_v17, %v1319_v60 }
0x126d   :  { %v1321_v63 = vadd.f32 %v2434_v17, %v1320_v9 }
0x126f   :  { %v1325_v11 = vsel %vm1324_vm1, %v2434_v17, %v1321_v63 }
0x1270   :  { %v1330_v13 = vsel %vm1327_vm14, %v1329_v61, %v1325_v11 }
0x12b7   :  { %v1347_v14 = vpop.permute.xlu2 %1346 }
0x12b8   :  { %v1349_v16 = vmul.f32 %v1347_v14, %v1330_v13 }
0x12ba   :  { %v1350_v0 = vpack.c.bf16 %v1349_v16, %v1349_v16 }
0x12bc   :  { %2236 = vmatmul.msk.bf16.vlgmr.msra.gmra.mxu2 %vm206_vm9, %v1350_v0  ;;  %2237 = vmatmul.msk.bf16.vlgmr.msra.gmra.mxu3 %vm206_vm9, %v1350_v0 }
0x12bd   :  { %1637 = vmatpush.bf16.msra.mxu3 %v2821_v26  ;;  %1624 = vmatpush.bf16.msra.mxu2 %v2831_v40 }
0x12c1   :  { %1638 = vmatpush.bf16.msra.mxu3 %v2824_v30  ;;  %1625 = vmatpush.bf16.msra.mxu2 %v2838_v56 }
0x12c5   :  { %1639 = vmatpush.bf16.msra.mxu3 %v2833_v41  ;;  %1626 = vmatpush.bf16.msra.mxu2 %v2844_v1 }
0x12c9   :  { %1640 = vmatpush.bf16.msra.mxu3 %v2840_v4  ;;  %1627 = vmatpush.bf16.msra.mxu2 %v2850_v10 }
0x133f   :  { %v1365_v25 = vpop.f32.mrf.mxu2  ;;  %v1378_v29 = vpop.f32.mrf.mxu3 }
0x1340   :  { %v1366_v32 = vadd.f32 %v1365_v25, %v1098_v51  ;;  %v1379_v33 = vadd.f32 %v1378_v29, %v1099_v23  ;;  %v1100_v23 = vadd.f32 %v2919_v7, %v2913_v31  ;;  %v1101_v25 = vadd.f32 %v2929_v52, %v2915_v3 }
0x1342   :  { %2435 = vtanh.f32 %v1379_v33  ;;  %v2238_v35 = vmul.f32 -1.442695, %v1366_v32  ;;  %v2239_v59 = vmul.f32 -1.442695, %v1379_v33 }
0x1344   :  { %2437 = vpow2.f32 %v2238_v35 }
0x1347   :  { %v1367_v34 = vpop.f32.mrf.mxu2  ;;  %v1380_v58 = vpop.f32.mrf.mxu3 }
0x1348   :  { %v2436_v15 = vpop.eup %2435 }
0x1349   :  { %1423 = vrot.lane.b32.xlu0 %v2436_v15, %s2579_s17 }
0x134a   :  { %v2438_v62 = vpop.eup %2437 }
0x134b   :  { %v1388_v36 = vadd.f32 1.0, %v2438_v62 }
0x134d   :  { %2439 = vrcp.f32 %v1388_v36  ;;  %v1401_v38 = vand.u32 2147483648, %v1388_v36  ;;  %vm1395_vm2 = vweird.f32 %v1388_v36  ;;  %v1399_v39 = vand.u32 2147483647, %v1388_v36 }
0x134f   :  { %v1402_v42 = vor.u32 1.1754944e-38, %v1401_v38  ;;  %vm1400_vm3 = vcmp.eq.f32.partialorder %v1399_v39, 8.507059e+37 }
0x1353   :  { %v2440_v48 = vpop.eup %2439 }
0x1354   :  { %v1391_v20 = vmul.f32 %v2440_v48, %v1388_v36  ;;  %vm1396_vm15 = vweird.f32 %v2440_v48 }
0x1355   :  { %vm1397_vm0 = vmor %vm1395_vm2, %vm1396_vm15 }
0x1356   :  { %v1392_v22 = vsub.f32 1.0, %v1391_v20 }
0x1358   :  { %v1393_v37 = vmul.f32 %v2440_v48, %v1392_v22 }
0x135a   :  { %v1394_v28 = vadd.f32 %v2440_v48, %v1393_v37 }
0x135c   :  { %v1398_v50 = vsel %vm1397_vm0, %v2440_v48, %v1394_v28 }
0x135d   :  { %v1403_v46 = vsel %vm1400_vm3, %v1402_v42, %v1398_v50 }
0x135e   :  { %v1421_v54 = vmul.f32 %v1403_v46, %v2965_v44 }
0x13bb   :  { %v1424_v43 = vpop.permute.xlu0 %1423 }
0x13bc   :  { %v1426_v53 = vmul.f32 %v1424_v43, %v1403_v46 }
0x13be   :  { %1428 = vrot.lane.b32.xlu1 %v1426_v53, %s2579_s17 }
0x1430   :  { %v1429_v55 = vpop.permute.xlu1 %1428 }
0x1431   :  { %v2986_v49 = vadd.f32 %v1429_v55, %v1421_v54 }
0x1433   :  { %2441 = vtanh.f32 %v2986_v49 }
0x1434   :  { %2443 = vpow2.f32 %v2239_v59 }
0x1439   :  { %v2442_v57 = vpop.eup %2441 }
0x143a   :  { %1434 = vrot.lane.b32.xlu2 %v2442_v57, %s2579_s17  ;;  %v2444_v17 = vpop.eup %2443 }
0x143b   :  { %v1389_v47 = vadd.f32 1.0, %v2444_v17 }
0x143d   :  { %2445 = vrcp.f32 %v1389_v47  ;;  %v1416_v44 = vand.u32 2147483648, %v1389_v47  ;;  %vm1410_vm5 = vweird.f32 %v1389_v47  ;;  %v1414_v11 = vand.u32 2147483647, %v1389_v47 }
0x143f   :  { %v1417_v13 = vor.u32 1.1754944e-38, %v1416_v44  ;;  %vm1415_vm7 = vcmp.eq.f32.partialorder %v1414_v11, 8.507059e+37 }
0x1443   :  { %v2446_v60 = vpop.eup %2445 }
0x1444   :  { %v1406_v9 = vmul.f32 %v2446_v60, %v1389_v47  ;;  %vm1411_vm4 = vweird.f32 %v2446_v60 }
0x1445   :  { %vm1412_vm6 = vmor %vm1410_vm5, %vm1411_vm4 }
0x1446   :  { %v1407_v63 = vsub.f32 1.0, %v1406_v9 }
0x1448   :  { %v1408_v45 = vmul.f32 %v2446_v60, %v1407_v63 }
0x144a   :  { %v1409_v6 = vadd.f32 %v2446_v60, %v1408_v45 }
0x144c   :  { %v1413_v61 = vsel %vm1412_vm6, %v2446_v60, %v1409_v6 }
0x144d   :  { %v1418_v14 = vsel %vm1415_vm7, %v1417_v13, %v1413_v61 }
0x1494   :  { %v1435_v16 = vpop.permute.xlu2 %1434 }
0x1495   :  { %v1437_v0 = vmul.f32 %v1435_v16, %v1418_v14 }
0x1497   :  { %v1438_v51 = vpack.c.bf16 %v1437_v0, %v1437_v0 }
0x1499   :  { %2240 = vmatmul.msk.bf16.vlgmr.msrb.gmra.mxu2 %vm206_vm9, %v1438_v51  ;;  %2241 = vmatmul.msk.bf16.vlgmr.msrb.gmra.mxu3 %vm206_vm9, %v1438_v51  ;;  %v3021_v51 = vpop.f32.mrf.mxu0 }
0x149a   :  { %1813 = vmatpush.bf16.msrb.mxu3 %v2821_v26  ;;  %1800 = vmatpush.bf16.msrb.mxu2 %v2831_v40 }
0x149e   :  { %1814 = vmatpush.bf16.msrb.mxu3 %v2824_v30  ;;  %1801 = vmatpush.bf16.msrb.mxu2 %v2838_v56 }
0x14a2   :  { %1815 = vmatpush.bf16.msrb.mxu3 %v2833_v41  ;;  %1802 = vmatpush.bf16.msrb.mxu2 %v2844_v1 }
0x14a6   :  { %1816 = vmatpush.bf16.msrb.mxu3 %v2840_v4  ;;  %1803 = vmatpush.bf16.msrb.mxu2 %v2850_v10 }
0x151c   :  { %v1453_v29 = vpop.f32.mrf.mxu2  ;;  %v1466_v32 = vpop.f32.mrf.mxu3 }
0x151d   :  { %v1454_v33 = vadd.f32 %v1453_v29, %v1100_v23  ;;  %v1467_v34 = vadd.f32 %v1466_v32, %v1101_v25  ;;  %v3023_v23 = vpop.f32.mrf.mxu1 }
0x151f   :  { %2447 = vtanh.f32 %v1467_v34  ;;  %v2242_v62 = vmul.f32 -1.442695, %v1454_v33  ;;  %v2243_v59 = vmul.f32 -1.442695, %v1467_v34 }
0x1521   :  { %2449 = vpow2.f32 %v2242_v62 }
0x1524   :  { %v1455_v58 = vpop.f32.mrf.mxu2  ;;  %v1468_v15 = vpop.f32.mrf.mxu3 }
0x1525   :  { %v2448_v35 = vpop.eup %2447 }
0x1526   :  { %1511 = vrot.lane.b32.xlu0 %v2448_v35, %s2579_s17 }
0x1527   :  { %v2450_v36 = vpop.eup %2449 }
0x1528   :  { %v1476_v48 = vadd.f32 1.0, %v2450_v36 }
0x152a   :  { %2451 = vrcp.f32 %v1476_v48  ;;  %v1489_v28 = vand.u32 2147483648, %v1476_v48  ;;  %vm1483_vm11 = vweird.f32 %v1476_v48  ;;  %v1487_v38 = vand.u32 2147483647, %v1476_v48 }
0x152c   :  { %v1490_v50 = vor.u32 1.1754944e-38, %v1489_v28  ;;  %vm1488_vm13 = vcmp.eq.f32.partialorder %v1487_v38, 8.507059e+37 }
0x1530   :  { %v2452_v20 = vpop.eup %2451 }
0x1531   :  { %v1479_v31 = vmul.f32 %v2452_v20, %v1476_v48  ;;  %vm1484_vm8 = vweird.f32 %v2452_v20 }
0x1532   :  { %vm1485_vm12 = vmor %vm1483_vm11, %vm1484_vm8 }
0x1533   :  { %v1480_v22 = vsub.f32 1.0, %v1479_v31 }
0x1535   :  { %v1481_v37 = vmul.f32 %v2452_v20, %v1480_v22 }
0x1537   :  { %v1482_v3 = vadd.f32 %v2452_v20, %v1481_v37 }
0x1539   :  { %v1486_v39 = vsel %vm1485_vm12, %v2452_v20, %v1482_v3 }
0x153a   :  { %v1491_v43 = vsel %vm1488_vm13, %v1490_v50, %v1486_v39 }
0x153b   :  { %v1509_v53 = vmul.f32 %v1491_v43, %v2986_v49 }
0x1598   :  { %v1512_v42 = vpop.permute.xlu0 %1511 }
0x1599   :  { %v1514_v46 = vmul.f32 %v1512_v42, %v1491_v43 }
0x159b   :  { %1516 = vrot.lane.b32.xlu1 %v1514_v46, %s2579_s17 }
0x160d   :  { %v1517_v54 = vpop.permute.xlu1 %1516 }
0x160e   :  { %v3007_v55 = vadd.f32 %v1517_v54, %v1509_v53 }
0x1610   :  { %2453 = vtanh.f32 %v3007_v55 }
0x1611   :  { %2455 = vpow2.f32 %v2243_v59 }
0x1616   :  { %v2454_v57 = vpop.eup %2453 }
0x1617   :  { %1522 = vrot.lane.b32.xlu2 %v2454_v57, %s2579_s17  ;;  %v2456_v17 = vpop.eup %2455 }
0x1618   :  { %v1477_v47 = vadd.f32 1.0, %v2456_v17 }
0x161a   :  { %2457 = vrcp.f32 %v1477_v47  ;;  %v1504_v49 = vand.u32 2147483648, %v1477_v47  ;;  %vm1498_vm14 = vweird.f32 %v1477_v47  ;;  %v1502_v44 = vand.u32 2147483647, %v1477_v47 }
0x161c   :  { %v1505_v61 = vor.u32 1.1754944e-38, %v1504_v49  ;;  %vm1503_vm2 = vcmp.eq.f32.partialorder %v1502_v44, 8.507059e+37 }
0x1620   :  { %v2458_v60 = vpop.eup %2457 }
0x1621   :  { %v1494_v9 = vmul.f32 %v2458_v60, %v1477_v47  ;;  %vm1499_vm1 = vweird.f32 %v2458_v60 }
0x1622   :  { %vm1500_vm15 = vmor %vm1498_vm14, %vm1499_vm1 }
0x1623   :  { %v1495_v63 = vsub.f32 1.0, %v1494_v9 }
0x1625   :  { %v1496_v45 = vmul.f32 %v2458_v60, %v1495_v63 }
0x1627   :  { %v1497_v6 = vadd.f32 %v2458_v60, %v1496_v45 }
0x1629   :  { %v1501_v11 = vsel %vm1500_vm15, %v2458_v60, %v1497_v6 }
0x162a   :  { %v1506_v13 = vsel %vm1503_vm2, %v1505_v61, %v1501_v11 }
0x1671   :  { %v1523_v14 = vpop.permute.xlu2 %1522 }
0x1672   :  { %v1525_v16 = vmul.f32 %v1523_v14, %v1506_v13 }
0x1674   :  { %v1526_v0 = vpack.c.bf16 %v1525_v16, %v1525_v16 }
0x1676   :  { %2244 = vmatmul.msk.bf16.vlgmr.msra.gmra.mxu0 %vm206_vm9, %v1526_v0  ;;  %2245 = vmatmul.msk.bf16.vlgmr.msra.gmra.mxu1 %vm206_vm9, %v1526_v0 }
0x1677   :  { %1901 = vmatpush.bf16.msra.mxu1 %v2821_v26  ;;  %1888 = vmatpush.bf16.msra.mxu0 %v2831_v40  ;;  %v1103_v26 = vadd.f32 %v2929_v52, %v2922_v5 }
0x167b   :  { %1902 = vmatpush.bf16.msra.mxu1 %v2824_v30  ;;  %1889 = vmatpush.bf16.msra.mxu0 %v2838_v56 }
0x167f   :  { %1903 = vmatpush.bf16.msra.mxu1 %v2833_v41  ;;  %1890 = vmatpush.bf16.msra.mxu0 %v2844_v1 }
0x1683   :  { %1904 = vmatpush.bf16.msra.mxu1 %v2840_v4  ;;  %1891 = vmatpush.bf16.msra.mxu0 %v2850_v10 }
0x16f3   :  { %v1541_v40 = vpop.f32.mrf.mxu0  ;;  %v1554_v25 = vpop.f32.mrf.mxu1 }
0x16f4   :  { %v1542_v30 = vadd.f32 %v1541_v40, %v2925_v12  ;;  %v1555_v56 = vadd.f32 %v1554_v25, %v1103_v26 }
0x16f6   :  { %2459 = vtanh.f32 %v1555_v56  ;;  %v2246_v4 = vmul.f32 -1.442695, %v1542_v30  ;;  %v2247_v38 = vmul.f32 -1.442695, %v1555_v56 }
0x16f8   :  { %2461 = vpow2.f32 %v2246_v4 }
0x16fb   :  { %v1543_v41 = vpop.f32.mrf.mxu0  ;;  %v1556_v29 = vpop.f32.mrf.mxu1 }
0x16fc   :  { %v2460_v1 = vpop.eup %2459 }
0x16fd   :  { %1599 = vrot.lane.b32.xlu0 %v2460_v1, %s2579_s17 }
0x16fe   :  { %v2462_v10 = vpop.eup %2461 }
0x16ff   :  { %v1564_v32 = vadd.f32 1.0, %v2462_v10 }
0x1701   :  { %2463 = vrcp.f32 %v1564_v32  ;;  %v1577_v35 = vand.u32 2147483648, %v1564_v32  ;;  %vm1571_vm3 = vweird.f32 %v1564_v32  ;;  %v1575_v12 = vand.u32 2147483647, %v1564_v32 }
0x1703   :  { %v1578_v36 = vor.u32 1.1754944e-38, %v1577_v35  ;;  %vm1576_vm5 = vcmp.eq.f32.partialorder %v1575_v12, 8.507059e+37 }
0x1707   :  { %v2464_v33 = vpop.eup %2463 }
0x1708   :  { %v1567_v34 = vmul.f32 %v2464_v33, %v1564_v32  ;;  %vm1572_vm0 = vweird.f32 %v2464_v33 }
0x1709   :  { %vm1573_vm4 = vmor %vm1571_vm3, %vm1572_vm0 }
0x170a   :  { %v1568_v58 = vsub.f32 1.0, %v1567_v34 }
0x170c   :  { %v1569_v5 = vmul.f32 %v2464_v33, %v1568_v58 }
0x170e   :  { %v1570_v15 = vadd.f32 %v2464_v33, %v1569_v5 }
0x1710   :  { %v1574_v62 = vsel %vm1573_vm4, %v2464_v33, %v1570_v15 }
0x1711   :  { %v1579_v20 = vsel %vm1576_vm5, %v1578_v36, %v1574_v62 }
0x1712   :  { %v1597_v22 = vmul.f32 %v1579_v20, %v3007_v55 }
0x176f   :  { %v1600_v48 = vpop.permute.xlu0 %1599 }
0x1770   :  { %v1602_v31 = vmul.f32 %v1600_v48, %v1579_v20 }
0x1772   :  { %1604 = vrot.lane.b32.xlu1 %v1602_v31, %s2579_s17 }
0x17e4   :  { %v1605_v37 = vpop.permute.xlu1 %1604 }
0x17e5   :  { %v1607_v3 = vadd.f32 %v1605_v37, %v1597_v22 }
0x17e7   :  { %2465 = vtanh.f32 %v1607_v3 }
0x17e8   :  { %2467 = vpow2.f32 %v2247_v38 }
0x17ed   :  { %v2466_v28 = vpop.eup %2465 }
0x17ee   :  { %1610 = vrot.lane.b32.xlu2 %v2466_v28, %s2579_s17  ;;  %v2468_v39 = vpop.eup %2467 }
0x17ef   :  { %v1565_v50 = vadd.f32 1.0, %v2468_v39 }
0x17f1   :  { %2469 = vrcp.f32 %v1565_v50  ;;  %v1592_v57 = vand.u32 2147483648, %v1565_v50  ;;  %vm1586_vm7 = vweird.f32 %v1565_v50  ;;  %v1590_v55 = vand.u32 2147483647, %v1565_v50 }
0x17f3   :  { %v1593_v17 = vor.u32 1.1754944e-38, %v1592_v57  ;;  %vm1591_vm11 = vcmp.eq.f32.partialorder %v1590_v55, 8.507059e+37 }
0x17f7   :  { %v2470_v42 = vpop.eup %2469 }
0x17f8   :  { %v1582_v43 = vmul.f32 %v2470_v42, %v1565_v50  ;;  %vm1587_vm6 = vweird.f32 %v2470_v42 }
0x17f9   :  { %vm1588_vm8 = vmor %vm1586_vm7, %vm1587_vm6 }
0x17fa   :  { %v1583_v46 = vsub.f32 1.0, %v1582_v43 }
0x17fc   :  { %v1584_v53 = vmul.f32 %v2470_v42, %v1583_v46 }
0x17fe   :  { %v1585_v54 = vadd.f32 %v2470_v42, %v1584_v53 }
0x1800   :  { %v1589_v59 = vsel %vm1588_vm8, %v2470_v42, %v1585_v54 }
0x1801   :  { %v1594_v47 = vsel %vm1591_vm11, %v1593_v17, %v1589_v59 }
0x1848   :  { %v1611_v60 = vpop.permute.xlu2 %1610 }
0x1849   :  { %v1613_v9 = vmul.f32 %v1611_v60, %v1594_v47 }
0x184b   :  { %v1614_v63 = vpack.c.bf16 %v1613_v9, %v1613_v9 }
0x184d   :  { %2248 = vmatmul.msk.bf16.vlgmr.msra.gmra.mxu2 %vm206_vm9, %v1614_v63  ;;  %2249 = vmatmul.msk.bf16.vlgmr.msra.gmra.mxu3 %vm206_vm9, %v1614_v63 }
0x18d0   :  { %v1629_v45 = vpop.f32.mrf.mxu2  ;;  %v1642_v6 = vpop.f32.mrf.mxu3 }
0x18d1   :  { %v1630_v49 = vadd.f32 %v1629_v45, %v2932_v18  ;;  %v1643_v44 = vadd.f32 %v1642_v6, %v2935_v19 }
0x18d3   :  { %2471 = vtanh.f32 %v1643_v44  ;;  %v2250_v14 = vmul.f32 -1.442695, %v1630_v49  ;;  %v2251_v5 = vmul.f32 -1.442695, %v1643_v44 }
0x18d5   :  { %2473 = vpow2.f32 %v2250_v14 }
0x18d8   :  { %v1631_v11 = vpop.f32.mrf.mxu2  ;;  %v1644_v61 = vpop.f32.mrf.mxu3 }
0x18d9   :  { %v2472_v13 = vpop.eup %2471 }
0x18da   :  { %1687 = vrot.lane.b32.xlu0 %v2472_v13, %s2579_s17 }
0x18db   :  { %v2474_v16 = vpop.eup %2473 }
0x18dc   :  { %v1652_v0 = vadd.f32 1.0, %v2474_v16 }
0x18de   :  { %2475 = vrcp.f32 %v1652_v0  ;;  %v1665_v18 = vand.u32 2147483648, %v1652_v0  ;;  %vm1659_vm13 = vweird.f32 %v1652_v0  ;;  %v1663_v19 = vand.u32 2147483647, %v1652_v0 }
0x18e0   :  { %v1666_v29 = vor.u32 1.1754944e-38, %v1665_v18  ;;  %vm1664_vm14 = vcmp.eq.f32.partialorder %v1663_v19, 8.507059e+37 }
0x18e4   :  { %v2476_v26 = vpop.eup %2475 }
0x18e5   :  { %v1655_v40 = vmul.f32 %v2476_v26, %v1652_v0  ;;  %vm1660_vm12 = vweird.f32 %v2476_v26 }
0x18e6   :  { %vm1661_vm1 = vmor %vm1659_vm13, %vm1660_vm12 }
0x18e7   :  { %v1656_v25 = vsub.f32 1.0, %v1655_v40 }
0x18e9   :  { %v1657_v30 = vmul.f32 %v2476_v26, %v1656_v25 }
0x18eb   :  { %v1658_v56 = vadd.f32 %v2476_v26, %v1657_v30 }
0x18ed   :  { %v1662_v41 = vsel %vm1661_vm1, %v2476_v26, %v1658_v56 }
0x18ee   :  { %v1667_v4 = vsel %vm1664_vm14, %v1666_v29, %v1662_v41 }
0x18ef   :  { %v1685_v32 = vmul.f32 %v1667_v4, %v1607_v3 }
0x194c   :  { %v1688_v1 = vpop.permute.xlu0 %1687 }
0x194d   :  { %v1690_v10 = vmul.f32 %v1688_v1, %v1667_v4 }
0x194f   :  { %1692 = vrot.lane.b32.xlu1 %v1690_v10, %s2579_s17 }
0x19c1   :  { %v1693_v33 = vpop.permute.xlu1 %1692 }
0x19c2   :  { %v1695_v34 = vadd.f32 %v1693_v33, %v1685_v32 }
0x19c4   :  { %2477 = vtanh.f32 %v1695_v34 }
0x19c5   :  { %2479 = vpow2.f32 %v2251_v5 }
0x19ca   :  { %v2478_v58 = vpop.eup %2477 }
0x19cb   :  { %1698 = vrot.lane.b32.xlu2 %v2478_v58, %s2579_s17  ;;  %v2480_v15 = vpop.eup %2479 }
0x19cc   :  { %v1653_v35 = vadd.f32 1.0, %v2480_v15  ;;  %v1108_v15 = vadd.f32 %v2919_v7, %v3021_v51 }
0x19ce   :  { %2481 = vrcp.f32 %v1653_v35  ;;  %v1680_v31 = vand.u32 2147483648, %v1653_v35  ;;  %vm1674_vm2 = vweird.f32 %v1653_v35  ;;  %v1678_v22 = vand.u32 2147483647, %v1653_v35 }
0x19d0   :  { %v1681_v3 = vor.u32 1.1754944e-38, %v1680_v31  ;;  %vm1679_vm3 = vcmp.eq.f32.partialorder %v1678_v22, 8.507059e+37 }
0x19d4   :  { %v2482_v12 = vpop.eup %2481 }
0x19d5   :  { %v1670_v62 = vmul.f32 %v2482_v12, %v1653_v35  ;;  %vm1675_vm15 = vweird.f32 %v2482_v12  ;;  %v1109_v35 = vadd.f32 %v2929_v52, %v3023_v23 }
0x19d6   :  { %vm1676_vm0 = vmor %vm1674_vm2, %vm1675_vm15 }
0x19d7   :  { %v1671_v36 = vsub.f32 1.0, %v1670_v62 }
0x19d9   :  { %v1672_v48 = vmul.f32 %v2482_v12, %v1671_v36 }
0x19db   :  { %v1673_v20 = vadd.f32 %v2482_v12, %v1672_v48 }
0x19dd   :  { %v1677_v37 = vsel %vm1676_vm0, %v2482_v12, %v1673_v20 }
0x19de   :  { %v1682_v28 = vsel %vm1679_vm3, %v1681_v3, %v1677_v37 }
0x1a25   :  { %v1699_v38 = vpop.permute.xlu2 %1698 }
0x1a26   :  { %v1701_v39 = vmul.f32 %v1699_v38, %v1682_v28 }
0x1a28   :  { %v1702_v50 = vpack.c.bf16 %v1701_v39, %v1701_v39 }
0x1a2a   :  { %2252 = vmatmul.msk.bf16.vlgmr.msrb.gmra.mxu0 %vm206_vm9, %v1702_v50  ;;  %2253 = vmatmul.msk.bf16.vlgmr.msrb.gmra.mxu1 %vm206_vm9, %v1702_v50 }
0x1aa7   :  { %v1717_v42 = vpop.f32.mrf.mxu0  ;;  %v1730_v43 = vpop.f32.mrf.mxu1 }
0x1aa8   :  { %v1718_v46 = vadd.f32 %v1717_v42, %v2938_v21  ;;  %v1731_v53 = vadd.f32 %v1730_v43, %v2941_v24 }
0x1aaa   :  { %2483 = vtanh.f32 %v1731_v53  ;;  %v2254_v59 = vmul.f32 -1.442695, %v1718_v46  ;;  %v2255_v40 = vmul.f32 -1.442695, %v1731_v53 }
0x1aac   :  { %2485 = vpow2.f32 %v2254_v59 }
0x1aaf   :  { %v1719_v54 = vpop.f32.mrf.mxu0  ;;  %v1732_v57 = vpop.f32.mrf.mxu1 }
0x1ab0   :  { %v2484_v55 = vpop.eup %2483 }
0x1ab1   :  { %1775 = vrot.lane.b32.xlu0 %v2484_v55, %s2579_s17 }
0x1ab2   :  { %v2486_v17 = vpop.eup %2485 }
0x1ab3   :  { %v1740_v47 = vadd.f32 1.0, %v2486_v17 }
0x1ab5   :  { %2487 = vrcp.f32 %v1740_v47  ;;  %v1753_v21 = vand.u32 2147483648, %v1740_v47  ;;  %vm1747_vm5 = vweird.f32 %v1740_v47  ;;  %v1751_v24 = vand.u32 2147483647, %v1740_v47 }
0x1ab7   :  { %v1754_v44 = vor.u32 1.1754944e-38, %v1753_v21  ;;  %vm1752_vm7 = vcmp.eq.f32.partialorder %v1751_v24, 8.507059e+37 }
0x1abb   :  { %v2488_v60 = vpop.eup %2487 }
0x1abc   :  { %v1743_v9 = vmul.f32 %v2488_v60, %v1740_v47  ;;  %vm1748_vm4 = vweird.f32 %v2488_v60 }
0x1abd   :  { %vm1749_vm6 = vmor %vm1747_vm5, %vm1748_vm4 }
0x1abe   :  { %v1744_v63 = vsub.f32 1.0, %v1743_v9 }
0x1ac0   :  { %v1745_v45 = vmul.f32 %v2488_v60, %v1744_v63 }
0x1ac2   :  { %v1746_v6 = vadd.f32 %v2488_v60, %v1745_v45 }
0x1ac4   :  { %v1750_v49 = vsel %vm1749_vm6, %v2488_v60, %v1746_v6 }
0x1ac5   :  { %v1755_v61 = vsel %vm1752_vm7, %v1754_v44, %v1750_v49 }
0x1ac6   :  { %v1773_v14 = vmul.f32 %v1755_v61, %v1695_v34 }
0x1b23   :  { %v1776_v11 = vpop.permute.xlu0 %1775 }
0x1b24   :  { %v1778_v13 = vmul.f32 %v1776_v11, %v1755_v61 }
0x1b26   :  { %1780 = vrot.lane.b32.xlu1 %v1778_v13, %s2579_s17 }
0x1b98   :  { %v1781_v16 = vpop.permute.xlu1 %1780 }
0x1b99   :  { %v1783_v0 = vadd.f32 %v1781_v16, %v1773_v14 }
0x1b9b   :  { %2489 = vtanh.f32 %v1783_v0 }
0x1b9c   :  { %2491 = vpow2.f32 %v2255_v40 }
0x1ba1   :  { %v2490_v26 = vpop.eup %2489 }
0x1ba2   :  { %1786 = vrot.lane.b32.xlu2 %v2490_v26, %s2579_s17  ;;  %v2492_v25 = vpop.eup %2491  ;;  %v1125_v26 = vperm.slane %v1085_v8, 0 }
0x1ba3   :  { %v1741_v30 = vadd.f32 1.0, %v2492_v25 }
0x1ba5   :  { %2493 = vrcp.f32 %v1741_v30  ;;  %v1768_v1 = vand.u32 2147483648, %v1741_v30  ;;  %vm1762_vm11 = vweird.f32 %v1741_v30  ;;  %v1766_v4 = vand.u32 2147483647, %v1741_v30 }
0x1ba7   :  { %v1769_v32 = vor.u32 1.1754944e-38, %v1768_v1  ;;  %vm1767_vm13 = vcmp.eq.f32.partialorder %v1766_v4, 8.507059e+37 }
0x1bab   :  { %v2494_v56 = vpop.eup %2493 }
0x1bac   :  { %v1758_v18 = vmul.f32 %v2494_v56, %v1741_v30  ;;  %vm1763_vm8 = vweird.f32 %v2494_v56 }
0x1bad   :  { %vm1764_vm12 = vmor %vm1762_vm11, %vm1763_vm8 }
0x1bae   :  { %v1759_v19 = vsub.f32 1.0, %v1758_v18 }
0x1bb0   :  { %v1760_v41 = vmul.f32 %v2494_v56, %v1759_v19 }
0x1bb2   :  { %v1761_v29 = vadd.f32 %v2494_v56, %v1760_v41  ;;  %v1124_v41 = vperm.slane %v1084_v2, 0 }
0x1bb4   :  { %v1765_v10 = vsel %vm1764_vm12, %v2494_v56, %v1761_v29 }
0x1bb5   :  { %v1770_v33 = vsel %vm1767_vm13, %v1769_v32, %v1765_v10 }
0x1bfc   :  { %v1787_v34 = vpop.permute.xlu2 %1786 }
0x1bfd   :  { %v1789_v58 = vmul.f32 %v1787_v34, %v1770_v33 }
0x1bff   :  { %v1790_v5 = vpack.c.bf16 %v1789_v58, %v1789_v58 }
0x1c01   :  { %2256 = vmatmul.msk.bf16.vlgmr.msrb.gmra.mxu2 %vm206_vm9, %v1790_v5  ;;  %2257 = vmatmul.msk.bf16.vlgmr.msrb.gmra.mxu3 %vm206_vm9, %v1790_v5 }
0x1c84   :  { %v1805_v12 = vpop.f32.mrf.mxu2  ;;  %v1818_v62 = vpop.f32.mrf.mxu3 }
0x1c85   :  { %v1806_v36 = vadd.f32 %v1805_v12, %v1108_v15  ;;  %v1819_v48 = vadd.f32 %v1818_v62, %v1109_v35 }
0x1c87   :  { %2495 = vtanh.f32 %v1819_v48  ;;  %v2258_v37 = vmul.f32 -1.442695, %v1806_v36  ;;  %v2259_v47 = vmul.f32 -1.442695, %v1819_v48 }
0x1c89   :  { %2497 = vpow2.f32 %v2258_v37 }
0x1c8c   :  { %v1807_v20 = vpop.f32.mrf.mxu2  ;;  %v1820_v31 = vpop.f32.mrf.mxu3 }
0x1c8d   :  { %v2496_v22 = vpop.eup %2495 }
0x1c8e   :  { %1863 = vrot.lane.b32.xlu0 %v2496_v22, %s2579_s17 }
0x1c8f   :  { %v2498_v3 = vpop.eup %2497 }
0x1c90   :  { %v1828_v28 = vadd.f32 1.0, %v2498_v3 }
0x1c92   :  { %2499 = vrcp.f32 %v1828_v28  ;;  %v1841_v23 = vand.u32 2147483648, %v1828_v28  ;;  %vm1835_vm14 = vweird.f32 %v1828_v28  ;;  %v1839_v50 = vand.u32 2147483647, %v1828_v28 }
0x1c94   :  { %v1842_v43 = vor.u32 1.1754944e-38, %v1841_v23  ;;  %vm1840_vm2 = vcmp.eq.f32.partialorder %v1839_v50, 8.507059e+37 }
0x1c98   :  { %v2500_v38 = vpop.eup %2499 }
0x1c99   :  { %v1831_v7 = vmul.f32 %v2500_v38, %v1828_v28  ;;  %vm1836_vm1 = vweird.f32 %v2500_v38  ;;  %v2270_v28 = vld [vmem:[#allocation6 + $0x100] sm:$0xf] }
0x1c9a   :  { %vm1837_vm15 = vmor %vm1835_vm14, %vm1836_vm1 }
0x1c9b   :  { %v1832_v51 = vsub.f32 1.0, %v1831_v7  ;;  %v2266_v7 = vld [vmem:[#allocation6 + $0xf0] sm:$0xf] }
0x1c9d   :  { %v1833_v39 = vmul.f32 %v2500_v38, %v1832_v51 }
0x1c9f   :  { %v1834_v52 = vadd.f32 %v2500_v38, %v1833_v39  ;;  %v2304_v39 = vld [vmem:[#allocation6 + $0xf4] sm:$0xf0] }
0x1ca1   :  { %v1838_v42 = vsel %vm1837_vm15, %v2500_v38, %v1834_v52  ;;  %v2305_v38 = vld [vmem:[#allocation6 + $0x104] sm:$0xf0]  ;;  %v2267_v52 = vor.u32 %v2304_v39, %v2266_v7 }
0x1ca2   :  { %v1843_v53 = vsel %vm1840_vm2, %v1842_v43, %v1838_v42  ;;  %v2271_v51 = vor.u32 %v2305_v38, %v2270_v28 }
0x1ca3   :  { %v1861_v57 = vmul.f32 %v1843_v53, %v1783_v0 }
0x1ca4   :  { %1998 = vmatpush.bf16.msra.mxu2 %v2271_v51 }
0x1ca8   :  { %1999 = vmatpush.bf16.msra.mxu2 %v2267_v52 }
0x1d00   :  { %v1864_v46 = vpop.permute.xlu0 %1863 }
0x1d01   :  { %v1866_v54 = vmul.f32 %v1864_v46, %v1843_v53 }
0x1d03   :  { %1868 = vrot.lane.b32.xlu1 %v1866_v54, %s2579_s17 }
0x1d75   :  { %v1869_v55 = vpop.permute.xlu1 %1868 }
0x1d76   :  { %v1871_v59 = vadd.f32 %v1869_v55, %v1861_v57 }
0x1d78   :  { %2501 = vtanh.f32 %v1871_v59 }
0x1d79   :  { %2503 = vpow2.f32 %v2259_v47 }
0x1d7e   :  { %v2502_v17 = vpop.eup %2501 }
0x1d7f   :  { %1874 = vrot.lane.b32.xlu2 %v2502_v17, %s2579_s17  ;;  %v2504_v60 = vpop.eup %2503 }
0x1d80   :  { %v1829_v9 = vadd.f32 1.0, %v2504_v60 }
0x1d82   :  { %2505 = vrcp.f32 %v1829_v9  ;;  %v1856_v49 = vand.u32 2147483648, %v1829_v9  ;;  %vm1850_vm3 = vweird.f32 %v1829_v9  ;;  %v1854_v44 = vand.u32 2147483647, %v1829_v9 }
0x1d84   :  { %v1857_v61 = vor.u32 1.1754944e-38, %v1856_v49  ;;  %vm1855_vm5 = vcmp.eq.f32.partialorder %v1854_v44, 8.507059e+37 }
0x1d88   :  { %v2506_v63 = vpop.eup %2505 }
0x1d89   :  { %v1846_v45 = vmul.f32 %v2506_v63, %v1829_v9  ;;  %vm1851_vm0 = vweird.f32 %v2506_v63 }
0x1d8a   :  { %vm1852_vm4 = vmor %vm1850_vm3, %vm1851_vm0 }
0x1d8b   :  { %v1847_v6 = vsub.f32 1.0, %v1846_v45 }
0x1d8d   :  { %v1848_v21 = vmul.f32 %v2506_v63, %v1847_v6  ;;  %v2008_v6 = vld [vmem:[#allocation6 + $0x120] sm:$0x1] }
0x1d8f   :  { %v1849_v24 = vadd.f32 %v2506_v63, %v1848_v21 }
0x1d91   :  { %v1853_v11 = vsel %vm1852_vm4, %v2506_v63, %v1849_v24  ;;  %v1970_v63 = vld [vmem:[#allocation6 + $0x110] sm:$0x1]  ;;  %v2009_v24 = vunpack.c.l.bf16 %v2008_v6 }
0x1d92   :  { %v1858_v13 = vsel %vm1855_vm5, %v1857_v61, %v1853_v11  ;;  %v1971_v45 = vunpack.c.l.bf16 %v1970_v63 }
0x1d93   :  { %v2012_v11 = vperm.slane %v2009_v24, 0 }
0x1d94   :  { %v1973_v21 = vperm.slane %v1971_v45, 0 }
0x1dd9   :  { %v1875_v14 = vpop.permute.xlu2 %1874 }
0x1dda   :  { %v1877_v16 = vmul.f32 %v1875_v14, %v1858_v13 }
0x1ddc   :  { %v1878_v0 = vpack.c.bf16 %v1877_v16, %v1877_v16 }
0x1dde   :  { %2260 = vmatmul.msk.bf16.vlgmr.msra.gmra.mxu0 %vm206_vm9, %v1878_v0  ;;  %2261 = vmatmul.msk.bf16.vlgmr.msra.gmra.mxu1 %vm206_vm9, %v1878_v0 }
0x1e5b   :  { %v1893_v40 = vpop.f32.mrf.mxu0  ;;  %v1906_v25 = vpop.f32.mrf.mxu1 }
0x1e5c   :  { %v1907_v30 = vadd.f32 %v1906_v25, %v1125_v26  ;;  %v1894_v29 = vadd.f32 %v1893_v40, %v1124_v41  ;;  %v2010_v26 = vld [vmem:[#allocation6 + $0x130] sm:$0x1] }
0x1e5d   :  { %v2011_v40 = vunpack.c.l.bf16 %v2010_v26 }
0x1e5e   :  { %2507 = vtanh.f32 %v1907_v30  ;;  %v2262_v1 = vmul.f32 -1.442695, %v1894_v29  ;;  %v2263_v22 = vmul.f32 -1.442695, %v1907_v30 }
0x1e5f   :  { %v2017_v25 = vperm.slane %v2011_v40, 0 }
0x1e60   :  { %2509 = vpow2.f32 %v2262_v1 }
0x1e63   :  { %v1895_v56 = vpop.f32.mrf.mxu0  ;;  %v1908_v18 = vpop.f32.mrf.mxu1 }
0x1e64   :  { %v2508_v19 = vpop.eup %2507 }
0x1e65   :  { %1951 = vrot.lane.b32.xlu0 %v2508_v19, %s2579_s17 }
0x1e66   :  { %v2510_v4 = vpop.eup %2509 }
0x1e67   :  { %v1916_v10 = vadd.f32 1.0, %v2510_v4 }
0x1e69   :  { %2511 = vrcp.f32 %v1916_v10  ;;  %v1929_v5 = vand.u32 2147483648, %v1916_v10  ;;  %vm1923_vm7 = vweird.f32 %v1916_v10  ;;  %v1927_v15 = vand.u32 2147483647, %v1916_v10 }
0x1e6b   :  { %v1930_v12 = vor.u32 1.1754944e-38, %v1929_v5  ;;  %vm1928_vm11 = vcmp.eq.f32.partialorder %v1927_v15, 8.507059e+37 }
0x1e6f   :  { %v2512_v32 = vpop.eup %2511 }
0x1e70   :  { %v1919_v8 = vmul.f32 %v2512_v32, %v1916_v10  ;;  %vm1924_vm6 = vweird.f32 %v2512_v32 }
0x1e71   :  { %vm1925_vm8 = vmor %vm1923_vm7, %vm1924_vm6 }
0x1e72   :  { %v1920_v33 = vsub.f32 1.0, %v1919_v8 }
0x1e74   :  { %v1921_v34 = vmul.f32 %v2512_v32, %v1920_v33 }
0x1e76   :  { %v1922_v58 = vadd.f32 %v2512_v32, %v1921_v34 }
0x1e78   :  { %v1926_v35 = vsel %vm1925_vm8, %v2512_v32, %v1922_v58 }
0x1e79   :  { %v1931_v2 = vsel %vm1928_vm11, %v1930_v12, %v1926_v35 }
0x1e7a   :  { %v1949_v36 = vmul.f32 %v1931_v2, %v1871_v59 }
0x1ed7   :  { %v1952_v27 = vpop.permute.xlu0 %1951 }
0x1ed8   :  { %v1954_v62 = vmul.f32 %v1952_v27, %v1931_v2 }
0x1eda   :  { %1956 = vrot.lane.b32.xlu1 %v1954_v62, %s2579_s17 }
0x1f4c   :  { %v1957_v48 = vpop.permute.xlu1 %1956 }
0x1f4d   :  { %v1959_v20 = vadd.f32 %v1957_v48, %v1949_v36 }
0x1f4f   :  { %2513 = vtanh.f32 %v1959_v20 }
0x1f50   :  { %2515 = vpow2.f32 %v2263_v22 }
0x1f55   :  { %v2514_v31 = vpop.eup %2513 }
0x1f56   :  { %1962 = vrot.lane.b32.xlu2 %v2514_v31, %s2579_s17  ;;  %v2516_v37 = vpop.eup %2515 }
0x1f57   :  { %v1917_v3 = vadd.f32 1.0, %v2516_v37 }
0x1f59   :  { %2517 = vrcp.f32 %v1917_v3  ;;  %v1944_v53 = vand.u32 2147483648, %v1917_v3  ;;  %vm1938_vm13 = vweird.f32 %v1917_v3  ;;  %v1942_v54 = vand.u32 2147483647, %v1917_v3 }
0x1f5b   :  { %v1945_v55 = vor.u32 1.1754944e-38, %v1944_v53  ;;  %vm1943_vm14 = vcmp.eq.f32.partialorder %v1942_v54, 8.507059e+37 }
0x1f5f   :  { %v2518_v23 = vpop.eup %2517 }
0x1f60   :  { %v1934_v50 = vmul.f32 %v2518_v23, %v1917_v3  ;;  %vm1939_vm12 = vweird.f32 %v2518_v23 }
0x1f61   :  { %vm1940_vm1 = vmor %vm1938_vm13, %vm1939_vm12 }
0x1f62   :  { %v1935_v42 = vsub.f32 1.0, %v1934_v50 }
0x1f64   :  { %v1936_v43 = vmul.f32 %v2518_v23, %v1935_v42 }
0x1f66   :  { %v1937_v46 = vadd.f32 %v2518_v23, %v1936_v43 }
0x1f68   :  { %v1941_v57 = vsel %vm1940_vm1, %v2518_v23, %v1937_v46 }
0x1f69   :  { %v1946_v59 = vsel %vm1943_vm14, %v1945_v55, %v1941_v57 }
0x1fb0   :  { %v1963_v17 = vpop.permute.xlu2 %1962 }
0x1fb1   :  { %v1965_v47 = vmul.f32 %v1963_v17, %v1946_v59 }
0x1fb3   :  { %v1972_v60 = vpack.c.bf16 %v1965_v47, %v1965_v47 }
0x1fb5   :  { %1975 = vrot.lane.b32.xlu0 %v1972_v60, %s2580_s0 }
0x2027   :  { %v1976_v9 = vpop.permute.xlu0 %1975 }
0x2028   :  { %2272 = vmatmul.msk.bf16.vlgmr.msra.gmra.mxu2 %vm924_vm10, %v1976_v9 }
0x20ab   :  { %v2001_v49 = vpop.f32.mrf.mxu2 }
0x20ac   :  { %v2002_v44 = vadd.f32 %v2001_v49, %v1973_v21 }
0x20ae   :  { %vm2005_vm15 = vcmp.gt.f32.partialorder %v2002_v44, 0.0  ;;  %v2006_v61 = vmul.f32 0.01, %v2002_v44 }
0x20b0   :  { %v2007_v13 = vsel %vm2005_vm15, %v2002_v44, %v2006_v61 }
0x20b1   :  { %v2013_v14 = vmul.f32 %v2012_v11, %v2007_v13 }
0x20b3   :  { %v2003_v16 = vpop.f32.mrf.mxu2  ;;  %v2014_v0 = vsel %vm924_vm10, %v2013_v14, 0.0 }
0x20b4   :  { %2015 = vadd.xlane.f32.xlu1 %v2014_v0 }
0x2127   :  { %v2016_v30 = vpop.xlane.xlu1 %2015 }
0x2128   :  { %v2018_v56 = vadd.f32 %v2017_v25, %v2016_v30 }
0x212a   :  { %v2273_v18 = vmul.f32 -1.442695, %v2018_v56 }
0x212c   :  { %2519 = vpow2.f32 %v2273_v18 }
0x2132   :  { %v2520_v19 = vpop.eup %2519 }
0x2133   :  { %v2022_v41 = vadd.f32 1.0, %v2520_v19 }
0x2135   :  { %2521 = vrcp.f32 %v2022_v41  ;;  %v2034_v10 = vand.u32 2147483648, %v2022_v41  ;;  %v2032_v8 = vand.u32 2147483647, %v2022_v41  ;;  %vm2028_vm0 = vweird.f32 %v2022_v41 }
0x2137   :  { %v2035_v34 = vor.u32 1.1754944e-38, %v2034_v10  ;;  %vm2033_vm4 = vcmp.eq.f32.partialorder %v2032_v8, 8.507059e+37 }
0x213b   :  { %v2522_v29 = vpop.eup %2521 }
0x213c   :  { %v2024_v1 = vmul.f32 %v2522_v29, %v2022_v41  ;;  %vm2029_vm2 = vweird.f32 %v2522_v29 }
0x213d   :  { %vm2030_vm3 = vmor %vm2028_vm0, %vm2029_vm2 }
0x213e   :  { %v2025_v4 = vsub.f32 1.0, %v2024_v1 }
0x2140   :  { %v2026_v32 = vmul.f32 %v2522_v29, %v2025_v4 }
0x2142   :  { %v2027_v33 = vadd.f32 %v2522_v29, %v2026_v32 }
0x2144   :  { %v2031_v58 = vsel %vm2030_vm3, %v2522_v29, %v2027_v33 }
0x2145   :  { %v2036_v5 = vsel %vm2033_vm4, %v2035_v34, %v2031_v58 }
0x2146   :  { %2040 = vperm.xlu2 %2313, %v2036_v5  }
0x21a0   :  { %v2041_v15 = vpop.permute.xlu2 %2040 }
0x21a1   :  { %v2044_v35 = vsel %vm924_vm10, %v2041_v15, %v1965_v47 }
0x21a2   :  { %v2045_v12 = vsel %vm206_vm9, %v2044_v35, 0.0 }
0x21a3   :  { %2046 = vst [vmem:[#allocation9] sm:$0xff] %v2045_v12 }
0x21a4   :  { %2057 = dma.vmem_to_hbm [thread:$0]  %s2053_s25, 128, %s2055_s28, [#allocation8]  }
0x21a5   :  { %2573 = dma.done.wait [#allocation8], 128  }
0x21a6   :  { %2574 = vsyncadd [#allocation8], 4294967168 }
0x21a7   :  { %2062 = vsyncpa [#allocation7], 1 }
0x21a8   :  { %2063 = vsyncpa [#allocation8], 1 }

</bundles_post_ra>
